<compile_context>
chip_gen: v6e
topology: v6e:2x2x1
jax: 0.10.0
libtpu: 0.0.40
codegen_flags: <defaults>
</compile_context>

<pallas_src>
import functools

import jax
import jax.numpy as jnp
from jax.experimental import pallas as pl
from jax.experimental.pallas import tpu as pltpu

MAX_ROW_TILE = 2048                     # packed rows per grid step (sweepable)
ACT_VMEM_BUDGET = 32 * 1024 * 1024      # double-buffered activation tiles
VMEM_LIMIT = 48 * 1024 * 1024           # scoped-VMEM request (safe v5e..v7x)


# ------------------------------ layout helpers -------------------------------

def _pack_factor(p, c):
    """Pixels packed per row so the lane dim approaches 128 (4 at C=32)."""
    g = 1
    while g * 2 * c <= 128 and p % (g * 2) == 0:
        g *= 2
    return g


def _row_tile(pq, n1, lanes):
    """Largest multiple-of-8 divisor of pq within the tile / VMEM budget.

    Prefers >= 2 grid steps so v7x's two TensorCores both get work.
    TODO(synk): switch to pl.cdiv + padded/masked tail for shapes whose packed
    pixel count has no good multiple-of-8 divisor.
    """
    if pq % 8 != 0:
        raise ValueError("packed pixel count N*H*W/g must be a multiple of 8")
    lane_pad = ((max(lanes, 128) + 127) // 128) * 128

    def act_bytes(tr):
        # x1 + x2 + out1 + out2 + per-stage (mask, noise), double-buffered f32.
        return 2 * (4 + 2 * n1) * tr * lane_pad * 4

    cap = min(MAX_ROW_TILE, pq)
    if pq >= 16:
        cap = min(cap, pq // 2)         # keep grid length >= 2 when possible
    for t in range(cap, 7, -1):
        if pq % t == 0 and t % 8 == 0 and act_bytes(t) <= ACT_VMEM_BUDGET:
            return t
    return 8


def _block_diag(w, g):
    """g-fold block-diagonal copy of a (ci, co) weight -> (g*ci, g*co)."""
    ci, co = w.shape
    out = jnp.zeros((g * ci, g * co), w.dtype)
    for k in range(g):
        out = out.at[k * ci:(k + 1) * ci, k * co:(k + 1) * co].set(w)
    return out


def _pack_pim_w1(w1, c, g):
    """Pack PIM's (2c, c) W1 so a packed-lane [x | y] operand hits it."""
    return jnp.concatenate(
        [_block_diag(w1[:c], g), _block_diag(w1[c:], g)], axis=0)


# --------------------------------- kernel ------------------------------------

def _festage_kernel(x1_ref, x2_ref, mask_ref, noise_ref,
                    wblk_ref, bblk_ref, w1_ref, b1_ref, w2_ref, b2_ref,
                    o1_ref, o2_ref, loss_ref, *, n1, fuse_concat):
    x1 = x1_ref[...].astype(jnp.float32)
    x2 = x2_ref[...].astype(jnp.float32)
    lanes = x1.shape[-1]
    partial = jnp.float32(0.0)

    for s in range(n1):                 # TODO(synk): lax.fori_loop for large n1
        wb, bb = wblk_ref[s], bblk_ref[s]
        w1, b1 = w1_ref[s], b1_ref[s]
        w2, b2 = w2_ref[s], b2_ref[s]

        # SRCBlock stand-in (shared weights for x1 and x2).
        x1 = x1 + jax.nn.gelu(
            jnp.dot(x1, wb, preferred_element_type=jnp.float32) + bb)
        x2 = x2 + jax.nn.gelu(
            jnp.dot(x2, wb, preferred_element_type=jnp.float32) + bb)

        def pim(a, b):
            # PIM stand-in: a + gelu([a, b] @ W1 + b1) @ W2 + b2
            if fuse_concat:   # single K=2*lanes MXU contraction
                h = jnp.dot(jnp.concatenate([a, b], axis=-1), w1,
                            preferred_element_type=jnp.float32)
            else:
                h = (jnp.dot(a, w1[:lanes], preferred_element_type=jnp.float32)
                     + jnp.dot(b, w1[lanes:], preferred_element_type=jnp.float32))
            h = jax.nn.gelu(h + b1)
            return a + jnp.dot(h, w2, preferred_element_type=jnp.float32) + b2

        # diff loss: mask path only on x1, noise path only on x2.
        d1 = pim(x1, x1 * mask_ref[s]) - x1
        d2 = pim(x2, x2 * noise_ref[s]) - x2
        partial = partial + jnp.sum(d1 * d1) + jnp.sum(d2 * d2)

        # state update uses the pre-update pair, exactly as in the reference.
        x1, x2 = pim(x1, x2), pim(x2, x1)

    o1_ref[...] = x1.astype(o1_ref.dtype)
    o2_ref[...] = x2.astype(o2_ref.dtype)
    # Lane-dense per-block partial; host sums one element per block.
    loss_ref[...] = jnp.broadcast_to(partial, loss_ref.shape).astype(jnp.float32)


# --------------------------------- FEStage ------------------------------------

def init_festage_params(key, dim, n1):
    params = {"blocks": [], "checks": []}
    for _ in range(n1):
        key, k1, k2, k3 = jax.random.split(key, 4)
        params["blocks"].append({
            "w": 0.02 * jax.random.normal(k1, (dim, dim), jnp.float32),
            "b": jnp.zeros((1, dim), jnp.float32),
        })
        params["checks"].append({
            "w1": 0.02 * jax.random.normal(k2, (2 * dim, dim), jnp.float32),
            "b1": jnp.zeros((1, dim), jnp.float32),
            "w2": 0.02 * jax.random.normal(k3, (dim, dim), jnp.float32),
            "b2": jnp.zeros((1, dim), jnp.float32),
        })
    return params


def festage_forward(x1, x2, params, n1, key):
    # x1, x2: (N, H, W, C) float32   (PyTorch reference is NCHW)
    n, hgt, wid, c = x1.shape
    p = n * hgt * wid
    g = _pack_factor(p, c)
    lanes = g * c
    pq = p // g
    tr = _row_tile(pq, n1, lanes)
    nb = pq // tr

    # -- host-side per-stage random factors --------------------------------
    # WindowMaskSimple(keep=0.5): x/keep * m1 / keep * m2 == x * (4*m1*m2)
    #   m1 Bernoulli(0.5) per element, m2 Bernoulli(0.5) per (batch, width).
    # NoiseSimple(drop=0.5):      x * ((2u-1)*0.5 + 1)    == x * (u + 0.5)
    # TODO(synk): generate these in-kernel with pltpu.prng_random_bits on real
    # TPU (removes a 2*n1*P*C HBM stream); not lowerable in interpret mode.
    ks = jax.random.split(key, 3 * n1)
    mask4, noise = [], []
    for s in range(n1):
        m1 = jnp.floor(jax.random.uniform(ks[3 * s], (n, hgt, wid, c),
                                          jnp.float32) + 0.5)
        m2 = jnp.floor(jax.random.uniform(ks[3 * s + 1], (n, 1, wid, 1),
                                          jnp.float32) + 0.5)
        mask4.append((4.0 * m1 * m2).reshape(pq, lanes))
        u = jax.random.uniform(ks[3 * s + 2], (n, hgt, wid, c), jnp.float32)
        noise.append((u + 0.5).reshape(pq, lanes))
    mask4 = jnp.stack(mask4)            # (n1, pq, lanes)
    noise = jnp.stack(noise)            # (n1, pq, lanes)

    # -- packed (block-diagonal) per-stage weights, stacked over stages ------
    wblk = jnp.stack([_block_diag(params["blocks"][s]["w"], g) for s in range(n1)])
    bblk = jnp.stack([jnp.tile(params["blocks"][s]["b"], (1, g)) for s in range(n1)])
    w1p = jnp.stack([_pack_pim_w1(params["checks"][s]["w1"], c, g) for s in range(n1)])
    b1p = jnp.stack([jnp.tile(params["checks"][s]["b1"], (1, g)) for s in range(n1)])
    w2p = jnp.stack([_block_diag(params["checks"][s]["w2"], g) for s in range(n1)])
    b2p = jnp.stack([jnp.tile(params["checks"][s]["b2"], (1, g)) for s in range(n1)])

    x1f = x1.reshape(pq, lanes)
    x2f = x2.reshape(pq, lanes)

    row_spec = pl.BlockSpec((tr, lanes), lambda i: (i, 0))
    stage_row_spec = pl.BlockSpec((n1, tr, lanes), lambda i: (0, i, 0))

    def const3(shape):
        return pl.BlockSpec(shape, lambda i: (0, 0, 0))

    kernel = functools.partial(_festage_kernel, n1=n1,
                               fuse_concat=(lanes % 128 == 0))

    out1, out2, loss = pl.pallas_call(
        kernel,
        out_shape=(jax.ShapeDtypeStruct((pq, lanes), x1.dtype),
                   jax.ShapeDtypeStruct((pq, lanes), x2.dtype),
                   jax.ShapeDtypeStruct((nb, 8, 128), jnp.float32)),
        grid=(nb,),
        in_specs=[row_spec, row_spec, stage_row_spec, stage_row_spec,
                  const3((n1, lanes, lanes)), const3((n1, 1, lanes)),
                  const3((n1, 2 * lanes, lanes)), const3((n1, 1, lanes)),
                  const3((n1, lanes, lanes)), const3((n1, 1, lanes))],
        out_specs=(row_spec, row_spec,
                   pl.BlockSpec((1, 8, 128), lambda i: (i, 0, 0))),
        compiler_params=pltpu.CompilerParams(
            dimension_semantics=("parallel",),
            vmem_limit_bytes=VMEM_LIMIT),
    )(x1f, x2f, mask4, noise, wblk, bblk, w1p, b1p, w2p, b2p)

    # diffList += mean(d1^2) + mean(d2^2) per stage, then / n1 / 2.
    diff = loss[:, 0, 0].sum() / jnp.float32(p * c)
    out1 = out1.reshape(n, hgt, wid, c)
    out2 = out2.reshape(n, hgt, wid, c)
    return out1, out2, diff / n1 / 2.0


if __name__ == "__main__":
    N, H, W, C = 2, 16, 16, 32
    n1 = 2

    root = jax.random.PRNGKey(0)
    kx1, kx2, kparam, kdrop = jax.random.split(root, 4)

    x1 = jax.random.normal(kx1, (N, H, W, C), jnp.float32)
    x2 = jax.random.normal(kx2, (N, H, W, C), jnp.float32)
    params = init_festage_params(kparam, C, n1)

    o1, o2, diff = festage_forward(x1, x2, params, n1, kdrop)
    jax.block_until_ready((o1, o2, diff))

    assert o1.shape == (N, H, W, C) and o2.shape == (N, H, W, C)
    assert diff.shape == () and bool(jnp.isfinite(diff))
    print("KERNEL_OK")
</pallas_src>

<mosaic_0001>
module attributes {stable_mosaic.version = 11 : i64} {
  func.func @_festage_kernel(%arg0: i32, %arg1: memref<64x128xf32, #tpu.memory_space<vmem>>, %arg2: memref<64x128xf32, #tpu.memory_space<vmem>>, %arg3: memref<2x64x128xf32, #tpu.memory_space<vmem>>, %arg4: memref<2x64x128xf32, #tpu.memory_space<vmem>>, %arg5: memref<2x128x128xf32, #tpu.memory_space<vmem>>, %arg6: memref<2x1x128xf32, #tpu.memory_space<vmem>>, %arg7: memref<2x256x128xf32, #tpu.memory_space<vmem>>, %arg8: memref<2x1x128xf32, #tpu.memory_space<vmem>>, %arg9: memref<2x128x128xf32, #tpu.memory_space<vmem>>, %arg10: memref<2x1x128xf32, #tpu.memory_space<vmem>>, %arg11: memref<64x128xf32, #tpu.memory_space<vmem>>, %arg12: memref<64x128xf32, #tpu.memory_space<vmem>>, %arg13: memref<1x8x128xf32, #tpu.memory_space<vmem>>) attributes {dimension_semantics = [#tpu.dimension_semantics<parallel>], iteration_bounds = array<i64: 2>, scalar_prefetch = 0 : i64, scratch_operands = 0 : i64, tpu.core_type = #tpu.core_type<tc>, window_params = [{transform_indices = @transform_0, window_bounds = array<i64: 64, 128>}, {transform_indices = @transform_1, window_bounds = array<i64: 64, 128>}, {transform_indices = @transform_2, window_bounds = array<i64: 2, 64, 128>}, {transform_indices = @transform_3, window_bounds = array<i64: 2, 64, 128>}, {pipeline_mode = #tpu.pipeline_mode<synchronous>, transform_indices = @transform_4, window_bounds = array<i64: 2, 128, 128>}, {pipeline_mode = #tpu.pipeline_mode<synchronous>, transform_indices = @transform_5, window_bounds = array<i64: 2, 1, 128>}, {pipeline_mode = #tpu.pipeline_mode<synchronous>, transform_indices = @transform_6, window_bounds = array<i64: 2, 256, 128>}, {pipeline_mode = #tpu.pipeline_mode<synchronous>, transform_indices = @transform_7, window_bounds = array<i64: 2, 1, 128>}, {pipeline_mode = #tpu.pipeline_mode<synchronous>, transform_indices = @transform_8, window_bounds = array<i64: 2, 128, 128>}, {pipeline_mode = #tpu.pipeline_mode<synchronous>, transform_indices = @transform_9, window_bounds = array<i64: 2, 1, 128>}, {transform_indices = @transform_10, window_bounds = array<i64: 64, 128>}, {transform_indices = @transform_11, window_bounds = array<i64: 64, 128>}, {transform_indices = @transform_12, window_bounds = array<i64: 1, 8, 128>}]} {
    %c0 = arith.constant 0 : index
    %c0_0 = arith.constant 0 : index
    %0 = vector.load %arg1[%c0, %c0_0] : memref<64x128xf32, #tpu.memory_space<vmem>>, vector<64x128xf32>
    %c0_1 = arith.constant 0 : index
    %c0_2 = arith.constant 0 : index
    %1 = vector.load %arg2[%c0_1, %c0_2] : memref<64x128xf32, #tpu.memory_space<vmem>>, vector<64x128xf32>
    %c0_3 = arith.constant 0 : index
    %c0_4 = arith.constant 0 : index
    %c0_5 = arith.constant 0 : index
    %2 = vector.load %arg5[%c0_3, %c0_4, %c0_5] : memref<2x128x128xf32, #tpu.memory_space<vmem>>, vector<1x128x128xf32>
    %3 = vector.shape_cast %2 : vector<1x128x128xf32> to vector<128x128xf32>
    %c0_6 = arith.constant 0 : index
    %c0_7 = arith.constant 0 : index
    %c0_8 = arith.constant 0 : index
    %4 = vector.load %arg6[%c0_6, %c0_7, %c0_8] : memref<2x1x128xf32, #tpu.memory_space<vmem>>, vector<1x1x128xf32>
    %5 = vector.shape_cast %4 : vector<1x1x128xf32> to vector<1x128xf32>
    %c0_9 = arith.constant 0 : index
    %c0_10 = arith.constant 0 : index
    %c0_11 = arith.constant 0 : index
    %6 = vector.load %arg7[%c0_9, %c0_10, %c0_11] : memref<2x256x128xf32, #tpu.memory_space<vmem>>, vector<1x256x128xf32>
    %7 = vector.shape_cast %6 : vector<1x256x128xf32> to vector<256x128xf32>
    %c0_12 = arith.constant 0 : index
    %c0_13 = arith.constant 0 : index
    %c0_14 = arith.constant 0 : index
    %8 = vector.load %arg8[%c0_12, %c0_13, %c0_14] : memref<2x1x128xf32, #tpu.memory_space<vmem>>, vector<1x1x128xf32>
    %9 = vector.shape_cast %8 : vector<1x1x128xf32> to vector<1x128xf32>
    %c0_15 = arith.constant 0 : index
    %c0_16 = arith.constant 0 : index
    %c0_17 = arith.constant 0 : index
    %10 = vector.load %arg9[%c0_15, %c0_16, %c0_17] : memref<2x128x128xf32, #tpu.memory_space<vmem>>, vector<1x128x128xf32>
    %11 = vector.shape_cast %10 : vector<1x128x128xf32> to vector<128x128xf32>
    %c0_18 = arith.constant 0 : index
    %c0_19 = arith.constant 0 : index
    %c0_20 = arith.constant 0 : index
    %12 = vector.load %arg10[%c0_18, %c0_19, %c0_20] : memref<2x1x128xf32, #tpu.memory_space<vmem>>, vector<1x1x128xf32>
    %13 = vector.shape_cast %12 : vector<1x1x128xf32> to vector<1x128xf32>
    %cst = arith.constant dense<0.000000e+00> : vector<64x128xf32>
    %14 = tpu.matmul %0, %3, %cst {dimension_numbers = #tpu.dot_dimension_numbers<[1], [0], [0], [1], [0, 0, 1, 1], [], []>} : vector<64x128xf32>, vector<128x128xf32>, vector<64x128xf32> -> vector<64x128xf32>
    %15 = vector.broadcast %5 : vector<1x128xf32> to vector<64x128xf32>
    %16 = arith.addf %14, %15 : vector<64x128xf32>
    %17 = arith.mulf %16, %16 : vector<64x128xf32>
    %18 = arith.mulf %16, %17 : vector<64x128xf32>
    %cst_21 = arith.constant 4.471500e-02 : f32
    %19 = vector.broadcast %cst_21 : f32 to vector<64x128xf32>
    %20 = arith.mulf %19, %18 : vector<64x128xf32>
    %21 = arith.addf %16, %20 : vector<64x128xf32>
    %cst_22 = arith.constant 0.797884583 : f32
    %22 = vector.broadcast %cst_22 : f32 to vector<64x128xf32>
    %23 = arith.mulf %22, %21 : vector<64x128xf32>
    %24 = math.tanh %23 : vector<64x128xf32>
    %cst_23 = arith.constant 1.000000e+00 : f32
    %25 = vector.broadcast %cst_23 : f32 to vector<64x128xf32>
    %26 = arith.addf %25, %24 : vector<64x128xf32>
    %cst_24 = arith.constant 5.000000e-01 : f32
    %27 = vector.broadcast %cst_24 : f32 to vector<64x128xf32>
    %28 = arith.mulf %27, %26 : vector<64x128xf32>
    %29 = arith.mulf %16, %28 : vector<64x128xf32>
    %30 = arith.addf %0, %29 : vector<64x128xf32>
    %cst_25 = arith.constant dense<0.000000e+00> : vector<64x128xf32>
    %31 = tpu.matmul %1, %3, %cst_25 {dimension_numbers = #tpu.dot_dimension_numbers<[1], [0], [0], [1], [0, 0, 1, 1], [], []>} : vector<64x128xf32>, vector<128x128xf32>, vector<64x128xf32> -> vector<64x128xf32>
    %32 = vector.broadcast %5 : vector<1x128xf32> to vector<64x128xf32>
    %33 = arith.addf %31, %32 : vector<64x128xf32>
    %34 = arith.mulf %33, %33 : vector<64x128xf32>
    %35 = arith.mulf %33, %34 : vector<64x128xf32>
    %cst_26 = arith.constant 4.471500e-02 : f32
    %36 = vector.broadcast %cst_26 : f32 to vector<64x128xf32>
    %37 = arith.mulf %36, %35 : vector<64x128xf32>
    %38 = arith.addf %33, %37 : vector<64x128xf32>
    %cst_27 = arith.constant 0.797884583 : f32
    %39 = vector.broadcast %cst_27 : f32 to vector<64x128xf32>
    %40 = arith.mulf %39, %38 : vector<64x128xf32>
    %41 = math.tanh %40 : vector<64x128xf32>
    %cst_28 = arith.constant 1.000000e+00 : f32
    %42 = vector.broadcast %cst_28 : f32 to vector<64x128xf32>
    %43 = arith.addf %42, %41 : vector<64x128xf32>
    %cst_29 = arith.constant 5.000000e-01 : f32
    %44 = vector.broadcast %cst_29 : f32 to vector<64x128xf32>
    %45 = arith.mulf %44, %43 : vector<64x128xf32>
    %46 = arith.mulf %33, %45 : vector<64x128xf32>
    %47 = arith.addf %1, %46 : vector<64x128xf32>
    %c0_30 = arith.constant 0 : index
    %c0_31 = arith.constant 0 : index
    %c0_32 = arith.constant 0 : index
    %48 = vector.load %arg3[%c0_30, %c0_31, %c0_32] : memref<2x64x128xf32, #tpu.memory_space<vmem>>, vector<1x64x128xf32>
    %49 = vector.shape_cast %48 : vector<1x64x128xf32> to vector<64x128xf32>
    %50 = arith.mulf %30, %49 : vector<64x128xf32>
    %51 = tpu.concatenate %30, %50 in 1 : vector<64x128xf32>, vector<64x128xf32> -> vector<64x256xf32>
    %cst_33 = arith.constant dense<0.000000e+00> : vector<64x128xf32>
    %52 = tpu.matmul %51, %7, %cst_33 {dimension_numbers = #tpu.dot_dimension_numbers<[1], [0], [0], [1], [0, 0, 1, 1], [], []>} : vector<64x256xf32>, vector<256x128xf32>, vector<64x128xf32> -> vector<64x128xf32>
    %53 = vector.broadcast %9 : vector<1x128xf32> to vector<64x128xf32>
    %54 = arith.addf %52, %53 : vector<64x128xf32>
    %55 = arith.mulf %54, %54 : vector<64x128xf32>
    %56 = arith.mulf %54, %55 : vector<64x128xf32>
    %cst_34 = arith.constant 4.471500e-02 : f32
    %57 = vector.broadcast %cst_34 : f32 to vector<64x128xf32>
    %58 = arith.mulf %57, %56 : vector<64x128xf32>
    %59 = arith.addf %54, %58 : vector<64x128xf32>
    %cst_35 = arith.constant 0.797884583 : f32
    %60 = vector.broadcast %cst_35 : f32 to vector<64x128xf32>
    %61 = arith.mulf %60, %59 : vector<64x128xf32>
    %62 = math.tanh %61 : vector<64x128xf32>
    %cst_36 = arith.constant 1.000000e+00 : f32
    %63 = vector.broadcast %cst_36 : f32 to vector<64x128xf32>
    %64 = arith.addf %63, %62 : vector<64x128xf32>
    %cst_37 = arith.constant 5.000000e-01 : f32
    %65 = vector.broadcast %cst_37 : f32 to vector<64x128xf32>
    %66 = arith.mulf %65, %64 : vector<64x128xf32>
    %67 = arith.mulf %54, %66 : vector<64x128xf32>
    %cst_38 = arith.constant dense<0.000000e+00> : vector<64x128xf32>
    %68 = tpu.matmul %67, %11, %cst_38 {dimension_numbers = #tpu.dot_dimension_numbers<[1], [0], [0], [1], [0, 0, 1, 1], [], []>} : vector<64x128xf32>, vector<128x128xf32>, vector<64x128xf32> -> vector<64x128xf32>
    %69 = arith.addf %30, %68 : vector<64x128xf32>
    %70 = vector.broadcast %13 : vector<1x128xf32> to vector<64x128xf32>
    %71 = arith.addf %69, %70 : vector<64x128xf32>
    %72 = arith.subf %71, %30 : vector<64x128xf32>
    %c0_39 = arith.constant 0 : index
    %c0_40 = arith.constant 0 : index
    %c0_41 = arith.constant 0 : index
    %73 = vector.load %arg4[%c0_39, %c0_40, %c0_41] : memref<2x64x128xf32, #tpu.memory_space<vmem>>, vector<1x64x128xf32>
    %74 = vector.shape_cast %73 : vector<1x64x128xf32> to vector<64x128xf32>
    %75 = arith.mulf %47, %74 : vector<64x128xf32>
    %76 = tpu.concatenate %47, %75 in 1 : vector<64x128xf32>, vector<64x128xf32> -> vector<64x256xf32>
    %cst_42 = arith.constant dense<0.000000e+00> : vector<64x128xf32>
    %77 = tpu.matmul %76, %7, %cst_42 {dimension_numbers = #tpu.dot_dimension_numbers<[1], [0], [0], [1], [0, 0, 1, 1], [], []>} : vector<64x256xf32>, vector<256x128xf32>, vector<64x128xf32> -> vector<64x128xf32>
    %78 = vector.broadcast %9 : vector<1x128xf32> to vector<64x128xf32>
    %79 = arith.addf %77, %78 : vector<64x128xf32>
    %80 = arith.mulf %79, %79 : vector<64x128xf32>
    %81 = arith.mulf %79, %80 : vector<64x128xf32>
    %cst_43 = arith.constant 4.471500e-02 : f32
    %82 = vector.broadcast %cst_43 : f32 to vector<64x128xf32>
    %83 = arith.mulf %82, %81 : vector<64x128xf32>
    %84 = arith.addf %79, %83 : vector<64x128xf32>
    %cst_44 = arith.constant 0.797884583 : f32
    %85 = vector.broadcast %cst_44 : f32 to vector<64x128xf32>
    %86 = arith.mulf %85, %84 : vector<64x128xf32>
    %87 = math.tanh %86 : vector<64x128xf32>
    %cst_45 = arith.constant 1.000000e+00 : f32
    %88 = vector.broadcast %cst_45 : f32 to vector<64x128xf32>
    %89 = arith.addf %88, %87 : vector<64x128xf32>
    %cst_46 = arith.constant 5.000000e-01 : f32
    %90 = vector.broadcast %cst_46 : f32 to vector<64x128xf32>
    %91 = arith.mulf %90, %89 : vector<64x128xf32>
    %92 = arith.mulf %79, %91 : vector<64x128xf32>
    %cst_47 = arith.constant dense<0.000000e+00> : vector<64x128xf32>
    %93 = tpu.matmul %92, %11, %cst_47 {dimension_numbers = #tpu.dot_dimension_numbers<[1], [0], [0], [1], [0, 0, 1, 1], [], []>} : vector<64x128xf32>, vector<128x128xf32>, vector<64x128xf32> -> vector<64x128xf32>
    %94 = arith.addf %47, %93 : vector<64x128xf32>
    %95 = vector.broadcast %13 : vector<1x128xf32> to vector<64x128xf32>
    %96 = arith.addf %94, %95 : vector<64x128xf32>
    %97 = arith.subf %96, %47 : vector<64x128xf32>
    %98 = arith.mulf %72, %72 : vector<64x128xf32>
    %99 = vector.shape_cast %98 : vector<64x128xf32> to vector<1x64x128xf32>
    %cst_48 = arith.constant dense<0.000000e+00> : vector<1xf32>
    %100 = vector.multi_reduction <add>, %99, %cst_48 [1, 2] : vector<1x64x128xf32> to vector<1xf32>
    %101 = vector.shape_cast %100 : vector<1xf32> to vector<1x1x1xf32>
    %102 = vector.extract %101[0, 0, 0] : f32 from vector<1x1x1xf32>
    %cst_49 = arith.constant 0.000000e+00 : f32
    %103 = arith.addf %cst_49, %102 : f32
    %104 = arith.mulf %97, %97 : vector<64x128xf32>
    %105 = vector.shape_cast %104 : vector<64x128xf32> to vector<1x64x128xf32>
    %cst_50 = arith.constant dense<0.000000e+00> : vector<1xf32>
    %106 = vector.multi_reduction <add>, %105, %cst_50 [1, 2] : vector<1x64x128xf32> to vector<1xf32>
    %107 = vector.shape_cast %106 : vector<1xf32> to vector<1x1x1xf32>
    %108 = vector.extract %107[0, 0, 0] : f32 from vector<1x1x1xf32>
    %109 = arith.addf %103, %108 : f32
    %110 = tpu.concatenate %30, %47 in 1 : vector<64x128xf32>, vector<64x128xf32> -> vector<64x256xf32>
    %cst_51 = arith.constant dense<0.000000e+00> : vector<64x128xf32>
    %111 = tpu.matmul %110, %7, %cst_51 {dimension_numbers = #tpu.dot_dimension_numbers<[1], [0], [0], [1], [0, 0, 1, 1], [], []>} : vector<64x256xf32>, vector<256x128xf32>, vector<64x128xf32> -> vector<64x128xf32>
    %112 = vector.broadcast %9 : vector<1x128xf32> to vector<64x128xf32>
    %113 = arith.addf %111, %112 : vector<64x128xf32>
    %114 = arith.mulf %113, %113 : vector<64x128xf32>
    %115 = arith.mulf %113, %114 : vector<64x128xf32>
    %cst_52 = arith.constant 4.471500e-02 : f32
    %116 = vector.broadcast %cst_52 : f32 to vector<64x128xf32>
    %117 = arith.mulf %116, %115 : vector<64x128xf32>
    %118 = arith.addf %113, %117 : vector<64x128xf32>
    %cst_53 = arith.constant 0.797884583 : f32
    %119 = vector.broadcast %cst_53 : f32 to vector<64x128xf32>
    %120 = arith.mulf %119, %118 : vector<64x128xf32>
    %121 = math.tanh %120 : vector<64x128xf32>
    %cst_54 = arith.constant 1.000000e+00 : f32
    %122 = vector.broadcast %cst_54 : f32 to vector<64x128xf32>
    %123 = arith.addf %122, %121 : vector<64x128xf32>
    %cst_55 = arith.constant 5.000000e-01 : f32
    %124 = vector.broadcast %cst_55 : f32 to vector<64x128xf32>
    %125 = arith.mulf %124, %123 : vector<64x128xf32>
    %126 = arith.mulf %113, %125 : vector<64x128xf32>
    %cst_56 = arith.constant dense<0.000000e+00> : vector<64x128xf32>
    %127 = tpu.matmul %126, %11, %cst_56 {dimension_numbers = #tpu.dot_dimension_numbers<[1], [0], [0], [1], [0, 0, 1, 1], [], []>} : vector<64x128xf32>, vector<128x128xf32>, vector<64x128xf32> -> vector<64x128xf32>
    %128 = arith.addf %30, %127 : vector<64x128xf32>
    %129 = vector.broadcast %13 : vector<1x128xf32> to vector<64x128xf32>
    %130 = arith.addf %128, %129 : vector<64x128xf32>
    %131 = tpu.concatenate %47, %30 in 1 : vector<64x128xf32>, vector<64x128xf32> -> vector<64x256xf32>
    %cst_57 = arith.constant dense<0.000000e+00> : vector<64x128xf32>
    %132 = tpu.matmul %131, %7, %cst_57 {dimension_numbers = #tpu.dot_dimension_numbers<[1], [0], [0], [1], [0, 0, 1, 1], [], []>} : vector<64x256xf32>, vector<256x128xf32>, vector<64x128xf32> -> vector<64x128xf32>
    %133 = vector.broadcast %9 : vector<1x128xf32> to vector<64x128xf32>
    %134 = arith.addf %132, %133 : vector<64x128xf32>
    %135 = arith.mulf %134, %134 : vector<64x128xf32>
    %136 = arith.mulf %134, %135 : vector<64x128xf32>
    %cst_58 = arith.constant 4.471500e-02 : f32
    %137 = vector.broadcast %cst_58 : f32 to vector<64x128xf32>
    %138 = arith.mulf %137, %136 : vector<64x128xf32>
    %139 = arith.addf %134, %138 : vector<64x128xf32>
    %cst_59 = arith.constant 0.797884583 : f32
    %140 = vector.broadcast %cst_59 : f32 to vector<64x128xf32>
    %141 = arith.mulf %140, %139 : vector<64x128xf32>
    %142 = math.tanh %141 : vector<64x128xf32>
    %cst_60 = arith.constant 1.000000e+00 : f32
    %143 = vector.broadcast %cst_60 : f32 to vector<64x128xf32>
    %144 = arith.addf %143, %142 : vector<64x128xf32>
    %cst_61 = arith.constant 5.000000e-01 : f32
    %145 = vector.broadcast %cst_61 : f32 to vector<64x128xf32>
    %146 = arith.mulf %145, %144 : vector<64x128xf32>
    %147 = arith.mulf %134, %146 : vector<64x128xf32>
    %cst_62 = arith.constant dense<0.000000e+00> : vector<64x128xf32>
    %148 = tpu.matmul %147, %11, %cst_62 {dimension_numbers = #tpu.dot_dimension_numbers<[1], [0], [0], [1], [0, 0, 1, 1], [], []>} : vector<64x128xf32>, vector<128x128xf32>, vector<64x128xf32> -> vector<64x128xf32>
    %149 = arith.addf %47, %148 : vector<64x128xf32>
    %150 = vector.broadcast %13 : vector<1x128xf32> to vector<64x128xf32>
    %151 = arith.addf %149, %150 : vector<64x128xf32>
    %c1 = arith.constant 1 : index
    %c0_63 = arith.constant 0 : index
    %c0_64 = arith.constant 0 : index
    %152 = vector.load %arg5[%c1, %c0_63, %c0_64] : memref<2x128x128xf32, #tpu.memory_space<vmem>>, vector<1x128x128xf32>
    %153 = vector.shape_cast %152 : vector<1x128x128xf32> to vector<128x128xf32>
    %c1_65 = arith.constant 1 : index
    %c0_66 = arith.constant 0 : index
    %c0_67 = arith.constant 0 : index
    %154 = vector.load %arg6[%c1_65, %c0_66, %c0_67] : memref<2x1x128xf32, #tpu.memory_space<vmem>>, vector<1x1x128xf32>
    %155 = vector.shape_cast %154 : vector<1x1x128xf32> to vector<1x128xf32>
    %c1_68 = arith.constant 1 : index
    %c0_69 = arith.constant 0 : index
    %c0_70 = arith.constant 0 : index
    %156 = vector.load %arg7[%c1_68, %c0_69, %c0_70] : memref<2x256x128xf32, #tpu.memory_space<vmem>>, vector<1x256x128xf32>
    %157 = vector.shape_cast %156 : vector<1x256x128xf32> to vector<256x128xf32>
    %c1_71 = arith.constant 1 : index
    %c0_72 = arith.constant 0 : index
    %c0_73 = arith.constant 0 : index
    %158 = vector.load %arg8[%c1_71, %c0_72, %c0_73] : memref<2x1x128xf32, #tpu.memory_space<vmem>>, vector<1x1x128xf32>
    %159 = vector.shape_cast %158 : vector<1x1x128xf32> to vector<1x128xf32>
    %c1_74 = arith.constant 1 : index
    %c0_75 = arith.constant 0 : index
    %c0_76 = arith.constant 0 : index
    %160 = vector.load %arg9[%c1_74, %c0_75, %c0_76] : memref<2x128x128xf32, #tpu.memory_space<vmem>>, vector<1x128x128xf32>
    %161 = vector.shape_cast %160 : vector<1x128x128xf32> to vector<128x128xf32>
    %c1_77 = arith.constant 1 : index
    %c0_78 = arith.constant 0 : index
    %c0_79 = arith.constant 0 : index
    %162 = vector.load %arg10[%c1_77, %c0_78, %c0_79] : memref<2x1x128xf32, #tpu.memory_space<vmem>>, vector<1x1x128xf32>
    %163 = vector.shape_cast %162 : vector<1x1x128xf32> to vector<1x128xf32>
    %cst_80 = arith.constant dense<0.000000e+00> : vector<64x128xf32>
    %164 = tpu.matmul %130, %153, %cst_80 {dimension_numbers = #tpu.dot_dimension_numbers<[1], [0], [0], [1], [0, 0, 1, 1], [], []>} : vector<64x128xf32>, vector<128x128xf32>, vector<64x128xf32> -> vector<64x128xf32>
    %165 = vector.broadcast %155 : vector<1x128xf32> to vector<64x128xf32>
    %166 = arith.addf %164, %165 : vector<64x128xf32>
    %167 = arith.mulf %166, %166 : vector<64x128xf32>
    %168 = arith.mulf %166, %167 : vector<64x128xf32>
    %cst_81 = arith.constant 4.471500e-02 : f32
    %169 = vector.broadcast %cst_81 : f32 to vector<64x128xf32>
    %170 = arith.mulf %169, %168 : vector<64x128xf32>
    %171 = arith.addf %166, %170 : vector<64x128xf32>
    %cst_82 = arith.constant 0.797884583 : f32
    %172 = vector.broadcast %cst_82 : f32 to vector<64x128xf32>
    %173 = arith.mulf %172, %171 : vector<64x128xf32>
    %174 = math.tanh %173 : vector<64x128xf32>
    %cst_83 = arith.constant 1.000000e+00 : f32
    %175 = vector.broadcast %cst_83 : f32 to vector<64x128xf32>
    %176 = arith.addf %175, %174 : vector<64x128xf32>
    %cst_84 = arith.constant 5.000000e-01 : f32
    %177 = vector.broadcast %cst_84 : f32 to vector<64x128xf32>
    %178 = arith.mulf %177, %176 : vector<64x128xf32>
    %179 = arith.mulf %166, %178 : vector<64x128xf32>
    %180 = arith.addf %130, %179 : vector<64x128xf32>
    %cst_85 = arith.constant dense<0.000000e+00> : vector<64x128xf32>
    %181 = tpu.matmul %151, %153, %cst_85 {dimension_numbers = #tpu.dot_dimension_numbers<[1], [0], [0], [1], [0, 0, 1, 1], [], []>} : vector<64x128xf32>, vector<128x128xf32>, vector<64x128xf32> -> vector<64x128xf32>
    %182 = vector.broadcast %155 : vector<1x128xf32> to vector<64x128xf32>
    %183 = arith.addf %181, %182 : vector<64x128xf32>
    %184 = arith.mulf %183, %183 : vector<64x128xf32>
    %185 = arith.mulf %183, %184 : vector<64x128xf32>
    %cst_86 = arith.constant 4.471500e-02 : f32
    %186 = vector.broadcast %cst_86 : f32 to vector<64x128xf32>
    %187 = arith.mulf %186, %185 : vector<64x128xf32>
    %188 = arith.addf %183, %187 : vector<64x128xf32>
    %cst_87 = arith.constant 0.797884583 : f32
    %189 = vector.broadcast %cst_87 : f32 to vector<64x128xf32>
    %190 = arith.mulf %189, %188 : vector<64x128xf32>
    %191 = math.tanh %190 : vector<64x128xf32>
    %cst_88 = arith.constant 1.000000e+00 : f32
    %192 = vector.broadcast %cst_88 : f32 to vector<64x128xf32>
    %193 = arith.addf %192, %191 : vector<64x128xf32>
    %cst_89 = arith.constant 5.000000e-01 : f32
    %194 = vector.broadcast %cst_89 : f32 to vector<64x128xf32>
    %195 = arith.mulf %194, %193 : vector<64x128xf32>
    %196 = arith.mulf %183, %195 : vector<64x128xf32>
    %197 = arith.addf %151, %196 : vector<64x128xf32>
    %c1_90 = arith.constant 1 : index
    %c0_91 = arith.constant 0 : index
    %c0_92 = arith.constant 0 : index
    %198 = vector.load %arg3[%c1_90, %c0_91, %c0_92] : memref<2x64x128xf32, #tpu.memory_space<vmem>>, vector<1x64x128xf32>
    %199 = vector.shape_cast %198 : vector<1x64x128xf32> to vector<64x128xf32>
    %200 = arith.mulf %180, %199 : vector<64x128xf32>
    %201 = tpu.concatenate %180, %200 in 1 : vector<64x128xf32>, vector<64x128xf32> -> vector<64x256xf32>
    %cst_93 = arith.constant dense<0.000000e+00> : vector<64x128xf32>
    %202 = tpu.matmul %201, %157, %cst_93 {dimension_numbers = #tpu.dot_dimension_numbers<[1], [0], [0], [1], [0, 0, 1, 1], [], []>} : vector<64x256xf32>, vector<256x128xf32>, vector<64x128xf32> -> vector<64x128xf32>
    %203 = vector.broadcast %159 : vector<1x128xf32> to vector<64x128xf32>
    %204 = arith.addf %202, %203 : vector<64x128xf32>
    %205 = arith.mulf %204, %204 : vector<64x128xf32>
    %206 = arith.mulf %204, %205 : vector<64x128xf32>
    %cst_94 = arith.constant 4.471500e-02 : f32
    %207 = vector.broadcast %cst_94 : f32 to vector<64x128xf32>
    %208 = arith.mulf %207, %206 : vector<64x128xf32>
    %209 = arith.addf %204, %208 : vector<64x128xf32>
    %cst_95 = arith.constant 0.797884583 : f32
    %210 = vector.broadcast %cst_95 : f32 to vector<64x128xf32>
    %211 = arith.mulf %210, %209 : vector<64x128xf32>
    %212 = math.tanh %211 : vector<64x128xf32>
    %cst_96 = arith.constant 1.000000e+00 : f32
    %213 = vector.broadcast %cst_96 : f32 to vector<64x128xf32>
    %214 = arith.addf %213, %212 : vector<64x128xf32>
    %cst_97 = arith.constant 5.000000e-01 : f32
    %215 = vector.broadcast %cst_97 : f32 to vector<64x128xf32>
    %216 = arith.mulf %215, %214 : vector<64x128xf32>
    %217 = arith.mulf %204, %216 : vector<64x128xf32>
    %cst_98 = arith.constant dense<0.000000e+00> : vector<64x128xf32>
    %218 = tpu.matmul %217, %161, %cst_98 {dimension_numbers = #tpu.dot_dimension_numbers<[1], [0], [0], [1], [0, 0, 1, 1], [], []>} : vector<64x128xf32>, vector<128x128xf32>, vector<64x128xf32> -> vector<64x128xf32>
    %219 = arith.addf %180, %218 : vector<64x128xf32>
    %220 = vector.broadcast %163 : vector<1x128xf32> to vector<64x128xf32>
    %221 = arith.addf %219, %220 : vector<64x128xf32>
    %222 = arith.subf %221, %180 : vector<64x128xf32>
    %c1_99 = arith.constant 1 : index
    %c0_100 = arith.constant 0 : index
    %c0_101 = arith.constant 0 : index
    %223 = vector.load %arg4[%c1_99, %c0_100, %c0_101] : memref<2x64x128xf32, #tpu.memory_space<vmem>>, vector<1x64x128xf32>
    %224 = vector.shape_cast %223 : vector<1x64x128xf32> to vector<64x128xf32>
    %225 = arith.mulf %197, %224 : vector<64x128xf32>
    %226 = tpu.concatenate %197, %225 in 1 : vector<64x128xf32>, vector<64x128xf32> -> vector<64x256xf32>
    %cst_102 = arith.constant dense<0.000000e+00> : vector<64x128xf32>
    %227 = tpu.matmul %226, %157, %cst_102 {dimension_numbers = #tpu.dot_dimension_numbers<[1], [0], [0], [1], [0, 0, 1, 1], [], []>} : vector<64x256xf32>, vector<256x128xf32>, vector<64x128xf32> -> vector<64x128xf32>
    %228 = vector.broadcast %159 : vector<1x128xf32> to vector<64x128xf32>
    %229 = arith.addf %227, %228 : vector<64x128xf32>
    %230 = arith.mulf %229, %229 : vector<64x128xf32>
    %231 = arith.mulf %229, %230 : vector<64x128xf32>
    %cst_103 = arith.constant 4.471500e-02 : f32
    %232 = vector.broadcast %cst_103 : f32 to vector<64x128xf32>
    %233 = arith.mulf %232, %231 : vector<64x128xf32>
    %234 = arith.addf %229, %233 : vector<64x128xf32>
    %cst_104 = arith.constant 0.797884583 : f32
    %235 = vector.broadcast %cst_104 : f32 to vector<64x128xf32>
    %236 = arith.mulf %235, %234 : vector<64x128xf32>
    %237 = math.tanh %236 : vector<64x128xf32>
    %cst_105 = arith.constant 1.000000e+00 : f32
    %238 = vector.broadcast %cst_105 : f32 to vector<64x128xf32>
    %239 = arith.addf %238, %237 : vector<64x128xf32>
    %cst_106 = arith.constant 5.000000e-01 : f32
    %240 = vector.broadcast %cst_106 : f32 to vector<64x128xf32>
    %241 = arith.mulf %240, %239 : vector<64x128xf32>
    %242 = arith.mulf %229, %241 : vector<64x128xf32>
    %cst_107 = arith.constant dense<0.000000e+00> : vector<64x128xf32>
    %243 = tpu.matmul %242, %161, %cst_107 {dimension_numbers = #tpu.dot_dimension_numbers<[1], [0], [0], [1], [0, 0, 1, 1], [], []>} : vector<64x128xf32>, vector<128x128xf32>, vector<64x128xf32> -> vector<64x128xf32>
    %244 = arith.addf %197, %243 : vector<64x128xf32>
    %245 = vector.broadcast %163 : vector<1x128xf32> to vector<64x128xf32>
    %246 = arith.addf %244, %245 : vector<64x128xf32>
    %247 = arith.subf %246, %197 : vector<64x128xf32>
    %248 = arith.mulf %222, %222 : vector<64x128xf32>
    %249 = vector.shape_cast %248 : vector<64x128xf32> to vector<1x64x128xf32>
    %cst_108 = arith.constant dense<0.000000e+00> : vector<1xf32>
    %250 = vector.multi_reduction <add>, %249, %cst_108 [1, 2] : vector<1x64x128xf32> to vector<1xf32>
    %251 = vector.shape_cast %250 : vector<1xf32> to vector<1x1x1xf32>
    %252 = vector.extract %251[0, 0, 0] : f32 from vector<1x1x1xf32>
    %253 = arith.addf %109, %252 : f32
    %254 = arith.mulf %247, %247 : vector<64x128xf32>
    %255 = vector.shape_cast %254 : vector<64x128xf32> to vector<1x64x128xf32>
    %cst_109 = arith.constant dense<0.000000e+00> : vector<1xf32>
    %256 = vector.multi_reduction <add>, %255, %cst_109 [1, 2] : vector<1x64x128xf32> to vector<1xf32>
    %257 = vector.shape_cast %256 : vector<1xf32> to vector<1x1x1xf32>
    %258 = vector.extract %257[0, 0, 0] : f32 from vector<1x1x1xf32>
    %259 = arith.addf %253, %258 : f32
    %260 = tpu.concatenate %180, %197 in 1 : vector<64x128xf32>, vector<64x128xf32> -> vector<64x256xf32>
    %cst_110 = arith.constant dense<0.000000e+00> : vector<64x128xf32>
    %261 = tpu.matmul %260, %157, %cst_110 {dimension_numbers = #tpu.dot_dimension_numbers<[1], [0], [0], [1], [0, 0, 1, 1], [], []>} : vector<64x256xf32>, vector<256x128xf32>, vector<64x128xf32> -> vector<64x128xf32>
    %262 = vector.broadcast %159 : vector<1x128xf32> to vector<64x128xf32>
    %263 = arith.addf %261, %262 : vector<64x128xf32>
    %264 = arith.mulf %263, %263 : vector<64x128xf32>
    %265 = arith.mulf %263, %264 : vector<64x128xf32>
    %cst_111 = arith.constant 4.471500e-02 : f32
    %266 = vector.broadcast %cst_111 : f32 to vector<64x128xf32>
    %267 = arith.mulf %266, %265 : vector<64x128xf32>
    %268 = arith.addf %263, %267 : vector<64x128xf32>
    %cst_112 = arith.constant 0.797884583 : f32
    %269 = vector.broadcast %cst_112 : f32 to vector<64x128xf32>
    %270 = arith.mulf %269, %268 : vector<64x128xf32>
    %271 = math.tanh %270 : vector<64x128xf32>
    %cst_113 = arith.constant 1.000000e+00 : f32
    %272 = vector.broadcast %cst_113 : f32 to vector<64x128xf32>
    %273 = arith.addf %272, %271 : vector<64x128xf32>
    %cst_114 = arith.constant 5.000000e-01 : f32
    %274 = vector.broadcast %cst_114 : f32 to vector<64x128xf32>
    %275 = arith.mulf %274, %273 : vector<64x128xf32>
    %276 = arith.mulf %263, %275 : vector<64x128xf32>
    %cst_115 = arith.constant dense<0.000000e+00> : vector<64x128xf32>
    %277 = tpu.matmul %276, %161, %cst_115 {dimension_numbers = #tpu.dot_dimension_numbers<[1], [0], [0], [1], [0, 0, 1, 1], [], []>} : vector<64x128xf32>, vector<128x128xf32>, vector<64x128xf32> -> vector<64x128xf32>
    %278 = arith.addf %180, %277 : vector<64x128xf32>
    %279 = vector.broadcast %163 : vector<1x128xf32> to vector<64x128xf32>
    %280 = arith.addf %278, %279 : vector<64x128xf32>
    %281 = tpu.concatenate %197, %180 in 1 : vector<64x128xf32>, vector<64x128xf32> -> vector<64x256xf32>
    %cst_116 = arith.constant dense<0.000000e+00> : vector<64x128xf32>
    %282 = tpu.matmul %281, %157, %cst_116 {dimension_numbers = #tpu.dot_dimension_numbers<[1], [0], [0], [1], [0, 0, 1, 1], [], []>} : vector<64x256xf32>, vector<256x128xf32>, vector<64x128xf32> -> vector<64x128xf32>
    %283 = vector.broadcast %159 : vector<1x128xf32> to vector<64x128xf32>
    %284 = arith.addf %282, %283 : vector<64x128xf32>
    %285 = arith.mulf %284, %284 : vector<64x128xf32>
    %286 = arith.mulf %284, %285 : vector<64x128xf32>
    %cst_117 = arith.constant 4.471500e-02 : f32
    %287 = vector.broadcast %cst_117 : f32 to vector<64x128xf32>
    %288 = arith.mulf %287, %286 : vector<64x128xf32>
    %289 = arith.addf %284, %288 : vector<64x128xf32>
    %cst_118 = arith.constant 0.797884583 : f32
    %290 = vector.broadcast %cst_118 : f32 to vector<64x128xf32>
    %291 = arith.mulf %290, %289 : vector<64x128xf32>
    %292 = math.tanh %291 : vector<64x128xf32>
    %cst_119 = arith.constant 1.000000e+00 : f32
    %293 = vector.broadcast %cst_119 : f32 to vector<64x128xf32>
    %294 = arith.addf %293, %292 : vector<64x128xf32>
    %cst_120 = arith.constant 5.000000e-01 : f32
    %295 = vector.broadcast %cst_120 : f32 to vector<64x128xf32>
    %296 = arith.mulf %295, %294 : vector<64x128xf32>
    %297 = arith.mulf %284, %296 : vector<64x128xf32>
    %cst_121 = arith.constant dense<0.000000e+00> : vector<64x128xf32>
    %298 = tpu.matmul %297, %161, %cst_121 {dimension_numbers = #tpu.dot_dimension_numbers<[1], [0], [0], [1], [0, 0, 1, 1], [], []>} : vector<64x128xf32>, vector<128x128xf32>, vector<64x128xf32> -> vector<64x128xf32>
    %299 = arith.addf %197, %298 : vector<64x128xf32>
    %300 = vector.broadcast %163 : vector<1x128xf32> to vector<64x128xf32>
    %301 = arith.addf %299, %300 : vector<64x128xf32>
    %c0_122 = arith.constant 0 : index
    %c0_123 = arith.constant 0 : index
    %302 = vector.load %arg11[%c0_122, %c0_123] : memref<64x128xf32, #tpu.memory_space<vmem>>, vector<64x128xf32>
    tpu.vector_store %arg11[%c0_122, %c0_123], %280 {strides = array<i32>} : memref<64x128xf32, #tpu.memory_space<vmem>>, vector<64x128xf32>,
    %c0_124 = arith.constant 0 : index
    %c0_125 = arith.constant 0 : index
    %303 = vector.load %arg12[%c0_124, %c0_125] : memref<64x128xf32, #tpu.memory_space<vmem>>, vector<64x128xf32>
    tpu.vector_store %arg12[%c0_124, %c0_125], %301 {strides = array<i32>} : memref<64x128xf32, #tpu.memory_space<vmem>>, vector<64x128xf32>,
    %304 = vector.broadcast %259 : f32 to vector<1x8x128xf32>
    %c0_126 = arith.constant 0 : index
    %c0_127 = arith.constant 0 : index
    %c0_128 = arith.constant 0 : index
    %305 = vector.load %arg13[%c0_126, %c0_127, %c0_128] : memref<1x8x128xf32, #tpu.memory_space<vmem>>, vector<1x8x128xf32>
    tpu.vector_store %arg13[%c0_126, %c0_127, %c0_128], %304 {strides = array<i32>} : memref<1x8x128xf32, #tpu.memory_space<vmem>>, vector<1x8x128xf32>,
    return
  }
  func.func @transform_0(%arg0: i32) -> (i32, i32) {
    %c0_i32 = arith.constant 0 : i32
    %c0_i32_0 = arith.constant 0 : i32
    return %arg0, %c0_i32 : i32, i32
  }
  func.func @transform_1(%arg0: i32) -> (i32, i32) {
    %c0_i32 = arith.constant 0 : i32
    %c0_i32_0 = arith.constant 0 : i32
    return %arg0, %c0_i32 : i32, i32
  }
  func.func @transform_2(%arg0: i32) -> (i32, i32, i32) {
    %c0_i32 = arith.constant 0 : i32
    %c0_i32_0 = arith.constant 0 : i32
    %c0_i32_1 = arith.constant 0 : i32
    return %c0_i32, %arg0, %c0_i32_0 : i32, i32, i32
  }
  func.func @transform_3(%arg0: i32) -> (i32, i32, i32) {
    %c0_i32 = arith.constant 0 : i32
    %c0_i32_0 = arith.constant 0 : i32
    %c0_i32_1 = arith.constant 0 : i32
    return %c0_i32, %arg0, %c0_i32_0 : i32, i32, i32
  }
  func.func @transform_4(%arg0: i32) -> (i32, i32, i32) {
    %c0_i32 = arith.constant 0 : i32
    %c0_i32_0 = arith.constant 0 : i32
    %c0_i32_1 = arith.constant 0 : i32
    %c0_i32_2 = arith.constant 0 : i32
    return %c0_i32, %c0_i32_0, %c0_i32_1 : i32, i32, i32
  }
  func.func @transform_5(%arg0: i32) -> (i32, i32, i32) {
    %c0_i32 = arith.constant 0 : i32
    %c0_i32_0 = arith.constant 0 : i32
    %c0_i32_1 = arith.constant 0 : i32
    %c0_i32_2 = arith.constant 0 : i32
    return %c0_i32, %c0_i32_0, %c0_i32_1 : i32, i32, i32
  }
  func.func @transform_6(%arg0: i32) -> (i32, i32, i32) {
    %c0_i32 = arith.constant 0 : i32
    %c0_i32_0 = arith.constant 0 : i32
    %c0_i32_1 = arith.constant 0 : i32
    %c0_i32_2 = arith.constant 0 : i32
    return %c0_i32, %c0_i32_0, %c0_i32_1 : i32, i32, i32
  }
  func.func @transform_7(%arg0: i32) -> (i32, i32, i32) {
    %c0_i32 = arith.constant 0 : i32
    %c0_i32_0 = arith.constant 0 : i32
    %c0_i32_1 = arith.constant 0 : i32
    %c0_i32_2 = arith.constant 0 : i32
    return %c0_i32, %c0_i32_0, %c0_i32_1 : i32, i32, i32
  }
  func.func @transform_8(%arg0: i32) -> (i32, i32, i32) {
    %c0_i32 = arith.constant 0 : i32
    %c0_i32_0 = arith.constant 0 : i32
    %c0_i32_1 = arith.constant 0 : i32
    %c0_i32_2 = arith.constant 0 : i32
    return %c0_i32, %c0_i32_0, %c0_i32_1 : i32, i32, i32
  }
  func.func @transform_9(%arg0: i32) -> (i32, i32, i32) {
    %c0_i32 = arith.constant 0 : i32
    %c0_i32_0 = arith.constant 0 : i32
    %c0_i32_1 = arith.constant 0 : i32
    %c0_i32_2 = arith.constant 0 : i32
    return %c0_i32, %c0_i32_0, %c0_i32_1 : i32, i32, i32
  }
  func.func @transform_10(%arg0: i32) -> (i32, i32) {
    %c0_i32 = arith.constant 0 : i32
    %c0_i32_0 = arith.constant 0 : i32
    return %arg0, %c0_i32 : i32, i32
  }
  func.func @transform_11(%arg0: i32) -> (i32, i32) {
    %c0_i32 = arith.constant 0 : i32
    %c0_i32_0 = arith.constant 0 : i32
    return %arg0, %c0_i32 : i32, i32
  }
  func.func @transform_12(%arg0: i32) -> (i32, i32, i32) {
    %c0_i32 = arith.constant 0 : i32
    %c0_i32_0 = arith.constant 0 : i32
    %c0_i32_1 = arith.constant 0 : i32
    return %arg0, %c0_i32, %c0_i32_0 : i32, i32, i32
  }
}

</mosaic_0001>

<bundles_post_ra>
// kernel: tpu_custom_call.1
= control target key start
LH: loop header
LB: loop body
LE: loop exit
PB: predicated region body
PF: predicated region fallthrough
CT: control target
= control target key end

     0   :  { %s8902_s0 = inlined_call_operand.hbm [shape: f32[128,128], index: 0, kind: input, shape index: {}]   ;;  %s8903_s1 = inlined_call_operand.hbm [shape: f32[128,128], index: 1, kind: input, shape index: {}]   ;;  %s8904_s2 = inlined_call_operand.hbm [shape: f32[2,128,128], index: 2, kind: input, shape index: {}]   ;;  %s8905_s3 = inlined_call_operand.hbm [shape: f32[2,128,128], index: 3, kind: input, shape index: {}]   ;;  %s8906_s4 = inlined_call_operand.hbm [shape: f32[2,128,128], index: 4, kind: input, shape index: {}]   ;;  %s8907_s5 = inlined_call_operand.vmem [shape: f32[2,1,128], index: 5, kind: input, shape index: {}]   ;;  %s8908_s6 = inlined_call_operand.hbm [shape: f32[2,256,128], index: 6, kind: input, shape index: {}]   ;;  %s8909_s7 = inlined_call_operand.vmem [shape: f32[2,1,128], index: 7, kind: input, shape index: {}]   ;;  %s8910_s8 = inlined_call_operand.hbm [shape: f32[2,128,128], index: 8, kind: input, shape index: {}]   ;;  %s8911_s9 = inlined_call_operand.vmem [shape: f32[2,1,128], index: 9, kind: input, shape index: {}]   ;;  %s8912_s10 = inlined_call_operand.hbm [shape: f32[128,128], index: 10, kind: output, shape index: {0}]   ;;  %s8913_s11 = inlined_call_operand.hbm [shape: f32[128,128], index: 11, kind: output, shape index: {1}]   ;;  %s8914_s12 = inlined_call_operand.hbm [shape: f32[2,8,128], index: 12, kind: output, shape index: {2}]  }
   0x1   :  { %8978 = sst [smem:[#allocation57_spill]] %s8902_s0 }
   0x2   :  { %8979 = sst [smem:[#allocation58_spill]] %s8906_s4 }
   0x3   :  { %8980 = sst [smem:[#allocation59_spill]] %s8908_s6 }
   0x4   :  { %8981 = sst [smem:[#allocation60_spill]] %s8910_s8 }
   0x5   :  { %8982 = sst [smem:[#allocation61_spill]] %s8914_s12 }
   0x6   :  { %18 = vsyncpa [#allocation3], 0 }
   0x7   :  { %20 = vsyncpa [#allocation3 + $0x1], 0 }
   0x8   :  { %21 = vsyncpa [#allocation6], 0 }
   0x9   :  { %23 = vsyncpa [#allocation6 + $0x1], 0 }
   0xa   :  { %24 = vsyncpa [#allocation9], 0 }
   0xb   :  { %26 = vsyncpa [#allocation9 + $0x1], 0 }
   0xc   :  { %27 = vsyncpa [#allocation12], 0 }
   0xd   :  { %28 = vsyncpa [#allocation4], 0 }
   0xe   :  { %30 = vsyncpa [#allocation4 + $0x1], 0 }
   0xf   :  { %31 = vsyncpa [#allocation16], 0 }
  0x10   :  { %33 = vsyncpa [#allocation16 + $0x1], 0  ;;  %s6519_s21 = smov 0   ;;  %s6521_s22 = smov 0  }
  0x11   :  { %s6523_s23 = smov 0   ;;  %s6525_s24 = smov 0  }
  0x12 LB: > { %8983 = sst [smem:[#allocation31_spill]] %s6416_s21  ;;  %s6540_s25 = sadd.s32 4294967295, %s6428_s24   ;;  %s6428_s24 = sphi %s6525_s24, %s9077_s24   ;;  %s6424_s23 = sphi %s6523_s23, %s9079_s23   ;;  %s6420_s22 = sphi %s6521_s22, %s9081_s22   ;;  %s6416_s21 = sphi %s6519_s21, %s9080_s21  }
  0x13   : > { %8984 = sst [smem:[#allocation32_spill]] %s6424_s23  ;;  %s8915_s26 = sadd.s32 4294967294, %s6428_s24  }
  0x14   : > { %s6544_s27 = sadd.s32 1, %s6428_s24   ;;  %s46_s28 = sadd.s32 1, %s6424_s23 }
  0x15   : > { %8985 = sst [smem:[#allocation33_spill]] %s6544_s27  ;;  %s43_s29 = ssub.s32 %s6428_s24, %s6544_s27 }
  0x16   : > { %p53_p0 = scmp.ne.s32.totalorder %s6424_s23, %s6420_s22  ;;  %p44_p1 = scmp.eq.s32.totalorder %s43_s29, 0 }
  0x17   : > { %p54_p2 = scmp.eq.s32.totalorder %s6428_s24, 0  ;;  %p59_p3 = scmp.ne.s32.totalorder %s6420_s22, %s6416_s21 }
  0x18   : > { %p8916_p4 = scmp.eq.s32.totalorder %s6540_s25, 0  ;;  %p287_p7 = scmp.eq.s32.totalorder %s6540_s25, 1 }
  0x19   : > { %s6556_s30 = scalar_select %p44_p1, %s6424_s23, %s46_s28  }
  0x1a   : > { %p6558_p5 = por %p54_p2, %p53_p0  ;;  %p6564_p6 = por %p8916_p4, %p59_p3 }
  0x1b   : > { %8986 = sst [smem:[#allocation34_spill]] %s6556_s30  ;;  %p293_p8 = scmp.eq.s32.totalorder %s8915_s26, 1 }
  0x1c   : > { %s8988_s14 = scalar_select %p6564_p6, 1, 0 }
  0x1d   : > { %p4480_p9 = scmp.ge.s32.totalorder %s6428_s24, 1  ;;  %p352_p10 = scmp.lt.s32.totalorder %s6428_s24, 3 }
  0x1e   : > { %p6573_p11 = por %p287_p7, %p53_p0  ;;  %p6577_p12 = por %p293_p8, %p59_p3 }
  0x1f   : > { %p6581_p13 = pnand %p4480_p9, %p352_p10  ;;  %s6430_s18 = smov [#allocation11]  }
  0x20   : > { %s8989_s15 = scalar_select %p6573_p11, 1, 0 }
  0x21   : > { %s8990_s16 = scalar_select %p6577_p12, 1, 0 }
  0x22   : > { %p5865_p1 = pneg %p6581_p13  ;;  %s380_s19 = sshll.u32 %s6430_s18, 4  ;;  %s381_s19 = int_to_ptr.vmem [resolvable:$true] %s380_s19 }
  0x23   : > { %8991 = sst [smem:[#allocation35_spill]] %s8990_s16  ;;  %s6431_s28 = smov [#allocation10]  }
  0x24   : > { %p6589_p2 = pnand %p5865_p1, %p8916_p4  ;;  %s364_s29 = sshll.u32 %s6431_s28, 4  ;;  %s365_s29 = int_to_ptr.vmem [resolvable:$true] %s364_s29 }
  0x25   : > { %s6173_s26 = scalar_lea.vmem %s381_s19, 8192  ;;  %p6181_p9 = scmp.lt.s32.totalorder %s381_s19, %s381_s19 }
  0x26   : > { %p6164_p0 = pneg %p6589_p2  ;;  %p6174_p3 = scmp.ne.s32.totalorder %s381_s19, %s6173_s26 }
  0x27   : > { %p6182_p10 = scmp.lt.s32.totalorder %s6173_s26, %s6173_s26 }
  0x28   : > { %p6176_p7 = pnand %p6174_p3, %p6164_p0 }
  0x29   : > { %p6183_p1 = por %p6182_p10, %p6181_p9 }
  0x2a   : > { %p6177_p8 = pneg %p6176_p7 }
  0x2c   : > { %p6184_p4 = pnand %p6183_p1, %p6177_p8 }
  0x2e   : > { %6187 = shalt.err (!%p6184_p4)
}
  0x2f   : > { %s6432_s18 = smov 128   ;;  %s6433_s30 = smov 8  }
  0x30   : > { %s8994_s6 = sld [smem:[#allocation59_spill]]  ;;  %s6199_s16 = scalar_lea.vmem %s365_s29, 4096 }
  0x31   : > { %p6200_p12 = scmp.ne.s32.totalorder %s365_s29, %s6199_s16  ;;  %p6207_p11 = scmp.lt.s32.totalorder %s365_s29, %s365_s29 }
  0x32   : > { %p6208_p6 = scmp.lt.s32.totalorder %s6199_s16, %s6199_s16 }
  0x33   : > { %p6202_p3 = pnand %p6200_p12, %p6164_p0 }
  0x34   : > { %p6209_p9 = por %p6208_p6, %p6207_p11 }
  0x35   : > { %p6203_p7 = pneg %p6202_p3 }
  0x36   : > { %5871 = dma.hbm_to_vmem [thread:$0]  (!%p6589_p2), %s8994_s6, 8192, %s381_s19, [#allocation12], %s6432_s18, %s6432_s18, %s6433_s30  }
  0x37   : > { %p6210_p8 = pnand %p6209_p9, %p6203_p7 }
  0x39   : > { %6213 = shalt.err (!%p6210_p8)
}
  0x3a   : > { %s8995_s4 = sld [smem:[#allocation58_spill]]  ;;  %s6434_s27 = smov [#allocation13]  }
  0x3b   : > { %s396_s19 = sshll.u32 %s6434_s27, 4  ;;  %s397_s19 = int_to_ptr.vmem [resolvable:$true] %s396_s19 }
  0x3c   : > { %s6225_s28 = scalar_lea.vmem %s397_s19, 4096  ;;  %p6233_p1 = scmp.lt.s32.totalorder %s397_s19, %s397_s19 }
  0x3d   : > { %p6226_p4 = scmp.ne.s32.totalorder %s397_s19, %s6225_s28  ;;  %p6234_p6 = scmp.lt.s32.totalorder %s6225_s28, %s6225_s28 }
  0x3f   : > { %p6228_p12 = pnand %p6226_p4, %p6164_p0  ;;  %p6235_p11 = por %p6234_p6, %p6233_p1 }
  0x40   : > { %5868 = dma.hbm_to_vmem [thread:$0]  (!%p6589_p2), %s8995_s4, 4096, %s365_s29, [#allocation9], %s6432_s18, %s6432_s18, %s6433_s30  }
  0x41   : > { %p6229_p10 = pneg %p6228_p12 }
  0x43   : > { %p6236_p3 = pnand %p6235_p11, %p6229_p10 }
  0x45   : > { %6239 = shalt.err (!%p6236_p3)
}
  0x46   : > { %s8996_s8 = sld [smem:[#allocation60_spill]]  ;;  %p8924_p7 = scmp.ge.s32.totalorder %s6428_s24, 2 }
  0x47   : > { %s6623_s29 = sand.u32 (!%p8924_p7), 1, %s6424_s23   ;;  %s6626_s26 = sshll.u32 (!%p8924_p7), %s6428_s24, 10 }
  0x48   : > { %409 = sbr.rel (%p8924_p7) target bundleno = 148 (0x94), region = 40  ;;  %s8923_s20 = sshll.u32 (!%p8924_p7), %s6623_s29, 6 }
  0x49   : > { %s8997_s0 = sld [smem:[#allocation57_spill]] (!%p8924_p7)  ;;  %s414_s16 = scalar_lea.sflag (!%p8924_p7), [#allocation3], %s6623_s29 }
  0x4c   : > { %5874 = dma.hbm_to_vmem [thread:$0]  (!%p6589_p2), %s8996_s8, 4096, %s397_s19, [#allocation12], %s6432_s18, %s6432_s18, %s6433_s30  }
  0x4d   : > { %s417_s18 = scalar_lea.vmem [#allocation2], %s8923_s20 }
  0x4e   : > { %s424_s19 = sshll.u32 %s417_s18, 4  ;;  %s6637_s19 = int_to_ptr.vmem [resolvable:$true] %s424_s19 }
  0x4f   : > { %s6633_s30 = scalar_lea.hbm %s8997_s0, %s6626_s26  ;;  %s6244_s27 = scalar_lea.hbm %s8997_s0, 2048 }
  0x50   : > { %s6240_s21 = scalar_lea.hbm %s6633_s30, 1024  ;;  %p6245_p8 = scmp.lt.s32.totalorder %s6633_s30, %s8997_s0 }
  0x51   : > { %p6241_p2 = scmp.ne.s32.totalorder %s6633_s30, %s6240_s21  ;;  %p6246_p4 = scmp.lt.s32.totalorder %s6244_s27, %s6240_s21 }
  0x53   : > { %p6242_p0 = pnand %p6241_p2, %p6558_p5  ;;  %p6247_p12 = por %p6246_p4, %p6245_p8 }
  0x55   : > { %p6243_p9 = pneg %p6242_p0 }
  0x57   : > { %p6248_p10 = pnand %p6247_p12, %p6243_p9 }
  0x59   : > { %6251 = shalt.err (!%p6248_p10)
}
  0x5a   : > { %s6252_s18 = scalar_lea.vmem %s6637_s19, 1024  ;;  %s6435_s20 = smov [#allocation2]  }
  0x5b   : > { %p6253_p1 = scmp.ne.s32.totalorder %s6637_s19, %s6252_s18  ;;  %s6256_s4 = sshll.u32 %s6435_s20, 4  ;;  %s6257_s4 = int_to_ptr.vmem [resolvable:$false] %s6256_s4 }
  0x5c   : > { %s6258_s6 = scalar_lea.vmem %s6257_s4, 2048  ;;  %p6259_p3 = scmp.lt.s32.totalorder %s6637_s19, %s6257_s4 }
  0x5d   : > { %p6254_p6 = pnand %p6253_p1, %p6558_p5  ;;  %p6260_p2 = scmp.lt.s32.totalorder %s6258_s6, %s6252_s18 }
  0x5f   : > { %p6255_p11 = pneg %p6254_p6  ;;  %p6261_p0 = por %p6260_p2, %p6259_p3 }
  0x61   : > { %p6262_p7 = pnand %p6261_p0, %p6255_p11 }
  0x63   : > { %6265 = shalt.err (!%p6262_p7)
}
  0x64   : > { %s6436_s8 = smov 128   ;;  %s6437_s21 = smov 8  }
  0x65   : > { %5831 = dma.hbm_to_vmem [thread:$0]  (%p6558_p5), %s6633_s30, 1024, %s6637_s19, %s414_s16, %s6436_s8, %s6436_s8, %s6437_s21  }
  0x66   : > { %s434_s20 = sand.u32 1, %s6428_s24   ;;  %s6670_s18 = scalar_lea.hbm %s8903_s1, %s6626_s26 }
  0x67   : > { %s8998_s4 = sshll.u32 %s6623_s29, 6  ;;  %s6678_s23 = scalar_lea.sflag [#allocation6], %s434_s20 }
  0x68   : > { %s438_s6 = scalar_lea.vmem [#allocation5], %s8998_s4  ;;  %s6266_s12 = scalar_lea.hbm %s6670_s18, 1024 }
  0x69   : > { %s445_s0 = sshll.u32 %s438_s6, 4  ;;  %p6267_p7 = scmp.ne.s32.totalorder %s6670_s18, %s6266_s12  ;;  %s6674_s0 = int_to_ptr.vmem [resolvable:$true] %s445_s0 }
  0x6a   : > { %s6270_s16 = scalar_lea.hbm %s8903_s1, 2048  ;;  %p6271_p4 = scmp.lt.s32.totalorder %s6670_s18, %s8903_s1 }
  0x6b   : > { %p6268_p9 = pnand %p6267_p7, %p6558_p5  ;;  %p6272_p12 = scmp.lt.s32.totalorder %s6270_s16, %s6266_s12 }
  0x6d   : > { %p6269_p8 = pneg %p6268_p9  ;;  %p6273_p10 = por %p6272_p12, %p6271_p4 }
  0x6f   : > { %p6274_p1 = pnand %p6273_p10, %p6269_p8 }
  0x71   : > { %6277 = shalt.err (!%p6274_p1)
}
  0x72   : > { %s6278_s4 = scalar_lea.vmem %s6674_s0, 1024  ;;  %s6438_s6 = smov [#allocation5]  }
  0x73   : > { %p6279_p6 = scmp.ne.s32.totalorder %s6674_s0, %s6278_s4  ;;  %s6282_s30 = sshll.u32 %s6438_s6, 4  ;;  %s6283_s30 = int_to_ptr.vmem [resolvable:$false] %s6282_s30 }
  0x74   : > { %s6284_s19 = scalar_lea.vmem %s6283_s30, 2048  ;;  %p6285_p2 = scmp.lt.s32.totalorder %s6674_s0, %s6283_s30 }
  0x75   : > { %p6280_p11 = pnand %p6279_p6, %p6558_p5  ;;  %p6286_p0 = scmp.lt.s32.totalorder %s6284_s19, %s6278_s4 }
  0x77   : > { %p6281_p3 = pneg %p6280_p11  ;;  %p6287_p7 = por %p6286_p0, %p6285_p2 }
  0x79   : > { %p6288_p9 = pnand %p6287_p7, %p6281_p3 }
  0x7b   : > { %6291 = shalt.err (!%p6288_p9)
}
  0x7c   : > { %5832 = dma.hbm_to_vmem [thread:$0]  (%p6558_p5), %s6670_s18, 1024, %s6674_s0, %s6678_s23, %s6436_s8, %s6436_s8, %s6437_s21  }
  0x7d   : > { %s4491_s12 = sshll.u32 %s6623_s29, 7  ;;  %s6439_s27 = smov 2048  }
  0x7e   : > { %s5833_s16 = scalar_select %p6558_p5, [#allocation0], [#allocation22] }
  0x7f   : > { %5834 = sst [smem:[#allocation19]] (%p6558_p5), %s6439_s27  ;;  %s459_s4 = scalar_lea.vmem [#allocation7], %s4491_s12 }
  0x80   : > { %s470_s28 = sld [smem:[%s5833_s16]]   ;;  %s478_s0 = sshll.u32 %s459_s4, 4  ;;  %s479_s0 = int_to_ptr.vmem [resolvable:$true] %s478_s0 }
  0x81   : > { %s6440_s8 = smov 1024   ;;  %s465_s6 = scalar_lea.hbm %s8904_s2, %s6626_s26 }
  0x82   : > { %5835 = sst [smem:[#allocation19 + $0x1]] (%p6558_p5), %s6440_s8  ;;  %s6441_s30 = smov 8  }
  0x83   : > { %5836 = sst [smem:[#allocation19 + $0x2]] (%p6558_p5), %s6441_s30  ;;  %s6442_s29 = smov 128  }
  0x84   : > { %5837 = sst [smem:[#allocation19 + $0x3]] (%p6558_p5), %s6442_s29  ;;  %s6443_s27 = smov 131072  }
  0x85   : > { %5838 = sst [smem:[#allocation19 + $0x4]] (%p6558_p5), %s6442_s29 }
  0x86   : > { %s4494_s19 = sshll.u32 %s470_s28, 26  ;;  %5839 = sst [smem:[#allocation19 + $0x5]] (%p6558_p5), %s6441_s30 }
  0x87   : > { %s4495_s16 = sadd.s32 134217728, %s4494_s19 }
  0x88   : > { %5840 = dma.general (%p6558_p5), %s465_s6, 2048, %s479_s0, %s6678_s23, %s6443_s27, [#allocation19], %s4495_s16, 0  }
  0x89   : > { %s5841_s4 = scalar_select %p6558_p5, [#allocation0], [#allocation23] }
  0x8a   : > { %s505_s8 = scalar_lea.vmem [#allocation8], %s4491_s12  ;;  %s6444_s18 = smov 2048  }
  0x8b   : > { %s524_s21 = sshll.u32 %s505_s8, 4  ;;  %s516_s28 = sld [smem:[%s5841_s4]]   ;;  %s525_s21 = int_to_ptr.vmem [resolvable:$true] %s524_s21 }
  0x8c   : > { %5842 = sst [smem:[#allocation21]] (%p6558_p5), %s6444_s18  ;;  %s6445_s30 = smov 1024  }
  0x8d   : > { %5843 = sst [smem:[#allocation21 + $0x1]] (%p6558_p5), %s6445_s30  ;;  %s511_s6 = scalar_lea.hbm %s8905_s3, %s6626_s26 }
  0x8e   : > { %s6446_s29 = smov 8   ;;  %s6447_s19 = smov 128  }
  0x8f   : > { %5844 = sst [smem:[#allocation21 + $0x2]] (%p6558_p5), %s6446_s29  ;;  %s502_s27 = scalar_lea.sflag [#allocation9], %s434_s20 }
  0x90   : > { %5845 = sst [smem:[#allocation21 + $0x3]] (%p6558_p5), %s6447_s19  ;;  %s6448_s4 = smov 131072  }
  0x91   : > { %5846 = sst [smem:[#allocation21 + $0x4]] (%p6558_p5), %s6447_s19  ;;  %s4499_s12 = sshll.u32 %s516_s28, 26 }
  0x92   : > { %5847 = sst [smem:[#allocation21 + $0x5]] (%p6558_p5), %s6446_s29  ;;  %s4500_s16 = sadd.s32 134217728, %s4499_s12 }
  0x93   : > { %5848 = dma.general (%p6558_p5), %s511_s6, 2048, %s525_s21, %s502_s27, %s6448_s4, [#allocation21], %s4500_s16, 0  }
  0x94 PF: > { %549 = sbr.rel (%p6581_p13) target bundleno = 1878 (0x756), region = 60 }
  0x99   : > { %s6751_s26 = sand.u32 1, %s6420_s22   ;;  %p8999_p8 = scmp.ne.s32.totalorder %s8988_s14, 0 }
  0x9a   : > { %s6754_s8 = sshll.u32 %s6751_s26, 6  ;;  %s552_s28 = scalar_lea.sflag [#allocation3], %s6751_s26 }
  0x9b   : > { %s6758_s18 = scalar_lea.vmem [#allocation2], %s6754_s8 }
  0x9c   : > { %6387 = dma.done.wait (%p8999_p8), %s552_s28, 1024  }
  0x9d   : > { %6389 = vsyncadd (%p8999_p8), %s552_s28, 4294966272  ;;  %s6765_s13 = sand.u32 1, %s6540_s25   ;;  %s6769_s20 = scalar_lea.vmem [#allocation5], %s6754_s8 }
  0x9e   : > { %s561_s17 = scalar_lea.sflag [#allocation6], %s6765_s13 }
  0x9f   : > { %6391 = dma.done.wait (%p8999_p8), %s561_s17, 3072  }
  0xa0   : > { %6393 = vsyncadd (%p8999_p8), %s561_s17, 4294964224  ;;  %s4504_s21 = sshll.u32 %s6751_s26, 7  ;;  %s579_s23 = scalar_lea.sflag [#allocation9], %s6765_s13 }
  0xa1   : > { %s6776_s30 = scalar_lea.vmem [#allocation7], %s4504_s21  ;;  %s6779_s0 = scalar_lea.vmem [#allocation8], %s4504_s21 }
  0xa2   : > { %6395 = dma.done.wait (%p8999_p8), %s579_s23, 2048  }
  0xa3   : > { %6397 = vsyncadd (%p8999_p8), %s579_s23, 4294965248  ;;  %p9000_p5 = scmp.eq.s32.totalorder %s6540_s25, 0 }
  0xa5   : > { %6399 = dma.done.wait (%p9000_p5), [#allocation9], 4096   ;;  %p9001_p13 = pmov %p9000_p5 }
  0xa6   : > { %p9002_p4 = pmov %p9000_p5 }
  0xa7   : > { %6401 = vsyncadd (%p9001_p13), [#allocation9], 4294963200 }
  0xa8   : > { %6403 = dma.done.wait (%p9002_p4), [#allocation12], 12288   ;;  %p9003_p12 = pmov %p9002_p4 }
  0xa9   : > { %v697_v0 = vld [vmem:[#allocation10 + $0x78] sm:$0xff]  ;;  %v696_v1 = vld [vmem:[#allocation10 + $0x70] sm:$0xff]  ;;  %v695_v2 = vld [vmem:[#allocation10 + $0x68] sm:$0xff]  ;;  %s8742_s14 = scalar_lea.vmem [#allocation14], %s6754_s8  ;;  %s8769_s6 = scalar_lea.vmem [#allocation15], %s6754_s8 }
  0xaa   : > { %6405 = vsyncadd (%p9003_p12), [#allocation12], 4294955008  ;;  %5289 = vmatprep.subr.mxu0 %v697_v0  ;;  %5333 = vmatprep.subr.mxu1 %v697_v0  ;;  %v694_v3 = vld [vmem:[#allocation10 + $0x60] sm:$0xff]  ;;  %v693_v4 = vld [vmem:[#allocation10 + $0x58] sm:$0xff]  ;;  %s4238_s8 = sshll.u32 %s8769_s6, 4  ;;  %s4222_s29 = sshll.u32 %s8742_s14, 4  ;;  %s8795_s8 = int_to_ptr.vmem [resolvable:$true] %s4238_s8  ;;  %s8797_s29 = int_to_ptr.vmem [resolvable:$true] %s4222_s29 }
  0xab   : > { %5290 = vmatpush3.msra.mxu0 %v697_v0  ;;  %5334 = vmatpush3.msra.mxu1 %v697_v0  ;;  %v692_v5 = vld [vmem:[#allocation10 + $0x50] sm:$0xff]  ;;  %v691_v6 = vld [vmem:[#allocation10 + $0x48] sm:$0xff]  ;;  %v690_v7 = vld [vmem:[#allocation10 + $0x40] sm:$0xff]  ;;  %s4551_s19 = sshll.u32 %s6540_s25, 10  ;;  %s4204_s4 = scalar_lea.sflag [#allocation16], %s6765_s13 }
  0xac   : > { %5291 = vmatprep.subr.mxu0 %v696_v1  ;;  %5335 = vmatprep.subr.mxu1 %v696_v1  ;;  %v689_v8 = vld [vmem:[#allocation10 + $0x38] sm:$0xff]  ;;  %v688_v9 = vld [vmem:[#allocation10 + $0x30] sm:$0xff]  ;;  %v687_v10 = vld [vmem:[#allocation10 + $0x28] sm:$0xff]  ;;  %s8804_s27 = scalar_lea.hbm %s8913_s11, %s4551_s19  ;;  %s6292_s28 = scalar_lea.vmem %s8795_s8, 1024 }
  0xad   : > { %5292 = vmatpush3.msra.mxu0 %v696_v1  ;;  %5336 = vmatpush3.msra.mxu1 %v696_v1  ;;  %v686_v11 = vld [vmem:[#allocation10 + $0x20] sm:$0xff]  ;;  %v685_v12 = vld [vmem:[#allocation10 + $0x18] sm:$0xff]  ;;  %v684_v13 = vld [vmem:[#allocation10 + $0x10] sm:$0xff]  ;;  %p6293_p10 = scmp.ne.s32.totalorder %s8795_s8, %s6292_s28  ;;  %p9070_p1 = scmp.ne.s32.totalorder %s8989_s15, 0 }
  0xae   : > { %5293 = vmatprep.subr.mxu0 %v695_v2  ;;  %5337 = vmatprep.subr.mxu1 %v695_v2  ;;  %v683_v14 = vld [vmem:[#allocation10 + $0x8] sm:$0xff]  ;;  %v6794_v15 = vld [vmem:[%s6758_s18] sm:$0xff]  ;;  %v6804_v19 = vld [vmem:[%s6758_s18 + $0x10] sm:$0xff] }
  0xaf   : > { %5294 = vmatpush3.msra.mxu0 %v695_v2  ;;  %5338 = vmatpush3.msra.mxu1 %v695_v2  ;;  %v682_v16 = vld [vmem:[#allocation10] sm:$0xff]  ;;  %v6798_v17 = vld [vmem:[%s6758_s18 + $0x8] sm:$0xff]  ;;  %v6811_v21 = vld [vmem:[%s6769_s20 + $0x10] sm:$0xff]  ;;  %p6294_p6 = pnand %p6293_p10, %p9070_p1 }
  0xb0   : > { %5295 = vmatprep.subr.mxu0 %v694_v3  ;;  %5339 = vmatprep.subr.mxu1 %v694_v3  ;;  %v6801_v18 = vld [vmem:[%s6769_s20] sm:$0xff]  ;;  %v6807_v20 = vld [vmem:[%s6769_s20 + $0x8] sm:$0xff]  ;;  %9006 = vst [vmem:[#allocation38_spill] sm:$0xff] %v6811_v21  ;;  %v6816_v22 = vld [vmem:[%s6758_s18 + $0x18] sm:$0xff] }
  0xb1   : > { %5296 = vmatpush3.msra.mxu0 %v694_v3  ;;  %5340 = vmatpush3.msra.mxu1 %v694_v3  ;;  %9004 = vst [vmem:[#allocation36_spill] sm:$0xff] %v6801_v18  ;;  %9005 = vst [vmem:[#allocation37_spill] sm:$0xff] %v6807_v20  ;;  %v6820_v23 = vld [vmem:[%s6758_s18 + $0x20] sm:$0xff]  ;;  %v6824_v24 = vld [vmem:[%s6769_s20 + $0x18] sm:$0xff]  ;;  %p6295_p11 = pneg %p6294_p6 }
  0xb2   : > { %5297 = vmatprep.subr.mxu0 %v693_v4  ;;  %5341 = vmatprep.subr.mxu1 %v693_v4  ;;  %9007 = vst [vmem:[#allocation39_spill] sm:$0xff] %v6824_v24  ;;  %v6828_v25 = vld [vmem:[%s6769_s20 + $0x20] sm:$0xff]  ;;  %v6832_v26 = vld [vmem:[%s6758_s18 + $0x28] sm:$0xff]  ;;  %v6836_v27 = vld [vmem:[%s6758_s18 + $0x30] sm:$0xff] }
  0xb3   : > { %5298 = vmatpush3.msra.mxu0 %v693_v4  ;;  %5342 = vmatpush3.msra.mxu1 %v693_v4  ;;  %9008 = vst [vmem:[#allocation40_spill] sm:$0xff] %v6828_v25  ;;  %v6840_v28 = vld [vmem:[%s6769_s20 + $0x28] sm:$0xff]  ;;  %v6844_v29 = vld [vmem:[%s6769_s20 + $0x30] sm:$0xff]  ;;  %v6848_v30 = vld [vmem:[%s6758_s18 + $0x38] sm:$0xff]  ;;  %s6449_s18 = smov [#allocation15]  }
  0xb4   : > { %5299 = vmatprep.subr.mxu0 %v692_v5  ;;  %5343 = vmatprep.subr.mxu1 %v692_v5  ;;  %9009 = vst [vmem:[#allocation41_spill] sm:$0xff] %v6840_v28  ;;  %9010 = vst [vmem:[#allocation42_spill] sm:$0xff] %v6844_v29  ;;  %v6853_v31 = vld [vmem:[%s6769_s20 + $0x38] sm:$0xff]  ;;  %v6863_v34 = vld [vmem:[#allocation11 + $0xf0] sm:$0xff]  ;;  %s6296_s17 = sshll.u32 %s6449_s18, 4  ;;  %s6297_s17 = int_to_ptr.vmem [resolvable:$false] %s6296_s17 }
  0xb5   : > { %5300 = vmatpush3.msra.mxu0 %v692_v5  ;;  %5344 = vmatpush3.msra.mxu1 %v692_v5  ;;  %9011 = vst [vmem:[#allocation43_spill] sm:$0xff] %v6853_v31  ;;  %v6857_v32 = vld [vmem:[#allocation11 + $0xf8] sm:$0xff]  ;;  %v6866_v35 = vld [vmem:[#allocation11 + $0x70] sm:$0xff]  ;;  %v6869_v36 = vld [vmem:[#allocation11 + $0xe8] sm:$0xff]  ;;  %s6298_s20 = scalar_lea.vmem %s6297_s17, 2048  ;;  %p6299_p3 = scmp.lt.s32.totalorder %s8795_s8, %s6297_s17 }
  0xb6   : > { %5301 = vmatprep.subr.mxu0 %v691_v6  ;;  %5345 = vmatprep.subr.mxu1 %v691_v6  ;;  %9012 = vst [vmem:[#allocation44_spill] sm:$0xff] %v6857_v32  ;;  %v6860_v33 = vld [vmem:[#allocation11 + $0x78] sm:$0xff]  ;;  %v6872_v37 = vld [vmem:[#allocation11 + $0x68] sm:$0xff]  ;;  %v6875_v38 = vld [vmem:[#allocation11 + $0xe0] sm:$0xff]  ;;  %p6300_p2 = scmp.lt.s32.totalorder %s6298_s20, %s6292_s28 }
  0xb7   : > { %5302 = vmatpush3.msra.mxu0 %v691_v6  ;;  %5346 = vmatpush3.msra.mxu1 %v691_v6  ;;  %v6878_v39 = vld [vmem:[#allocation11 + $0x60] sm:$0xff]  ;;  %v6881_v40 = vld [vmem:[#allocation11 + $0xd8] sm:$0xff]  ;;  %v6887_v42 = vld [vmem:[#allocation11 + $0xd0] sm:$0xff] }
  0xb8   : > { %5303 = vmatprep.subr.mxu0 %v690_v7  ;;  %5347 = vmatprep.subr.mxu1 %v690_v7  ;;  %v6884_v41 = vld [vmem:[#allocation11 + $0x58] sm:$0xff]  ;;  %v6890_v43 = vld [vmem:[#allocation11 + $0x50] sm:$0xff]  ;;  %v6893_v44 = vld [vmem:[#allocation11 + $0xc8] sm:$0xff]  ;;  %p6301_p0 = por %p6300_p2, %p6299_p3 }
  0xb9   : > { %5304 = vmatpush3.msra.mxu0 %v690_v7  ;;  %5348 = vmatpush3.msra.mxu1 %v690_v7  ;;  %v6896_v45 = vld [vmem:[#allocation11 + $0x48] sm:$0xff]  ;;  %v6899_v46 = vld [vmem:[#allocation11 + $0xc0] sm:$0xff]  ;;  %v6905_v48 = vld [vmem:[#allocation11 + $0xb8] sm:$0xff] }
  0xba   : > { %5305 = vmatprep.subr.mxu0 %v689_v8  ;;  %5349 = vmatprep.subr.mxu1 %v689_v8  ;;  %v6902_v47 = vld [vmem:[#allocation11 + $0x40] sm:$0xff]  ;;  %v6908_v49 = vld [vmem:[#allocation11 + $0x38] sm:$0xff]  ;;  %v6911_v50 = vld [vmem:[#allocation11 + $0xb0] sm:$0xff]  ;;  %p6302_p7 = pnand %p6301_p0, %p6295_p11 }
  0xbb   : > { %5306 = vmatpush3.msra.mxu0 %v689_v8  ;;  %5350 = vmatpush3.msra.mxu1 %v689_v8  ;;  %v6914_v51 = vld [vmem:[#allocation11 + $0x30] sm:$0xff]  ;;  %v6917_v52 = vld [vmem:[#allocation11 + $0xa8] sm:$0xff]  ;;  %v6923_v54 = vld [vmem:[#allocation11 + $0xa0] sm:$0xff] }
  0xbc   : > { %5307 = vmatprep.subr.mxu0 %v688_v9  ;;  %5351 = vmatprep.subr.mxu1 %v688_v9  ;;  %v6920_v53 = vld [vmem:[#allocation11 + $0x28] sm:$0xff]  ;;  %9014 = vst [vmem:[#allocation46_spill] sm:$0xff] %v6923_v54  ;;  %v6926_v55 = vld [vmem:[#allocation11 + $0x20] sm:$0xff]  ;;  %v6929_v56 = vld [vmem:[#allocation11 + $0x98] sm:$0xff] }
  0xbd   : > { %5308 = vmatpush3.msra.mxu0 %v688_v9  ;;  %5352 = vmatpush3.msra.mxu1 %v688_v9  ;;  %9013 = vst [vmem:[#allocation45_spill] sm:$0xff] %v6920_v53  ;;  %9015 = vst [vmem:[#allocation47_spill] sm:$0xff] %v6926_v55  ;;  %v6932_v57 = vld [vmem:[#allocation11 + $0x18] sm:$0xff]  ;;  %v6935_v58 = vld [vmem:[#allocation11 + $0x90] sm:$0xff] }
  0xbe   : > { %5309 = vmatprep.subr.mxu0 %v687_v10  ;;  %5353 = vmatprep.subr.mxu1 %v687_v10  ;;  %9016 = vst [vmem:[#allocation48_spill] sm:$0xff] %v6929_v56  ;;  %9017 = vst [vmem:[#allocation49_spill] sm:$0xff] %v6932_v57  ;;  %v6938_v59 = vld [vmem:[#allocation11 + $0x10] sm:$0xff]  ;;  %v6941_v60 = vld [vmem:[#allocation11 + $0x88] sm:$0xff] }
  0xbf   : > { %5310 = vmatpush3.msra.mxu0 %v687_v10  ;;  %5354 = vmatpush3.msra.mxu1 %v687_v10  ;;  %9018 = vst [vmem:[#allocation50_spill] sm:$0xff] %v6935_v58  ;;  %9019 = vst [vmem:[#allocation51_spill] sm:$0xff] %v6938_v59  ;;  %v6944_v61 = vld [vmem:[#allocation11 + $0x8] sm:$0xff]  ;;  %v6947_v62 = vld [vmem:[#allocation11 + $0x80] sm:$0xff] }
  0xc0   : > { %5311 = vmatprep.subr.mxu0 %v686_v11  ;;  %5355 = vmatprep.subr.mxu1 %v686_v11  ;;  %9020 = vst [vmem:[#allocation52_spill] sm:$0xff] %v6941_v60  ;;  %9021 = vst [vmem:[#allocation53_spill] sm:$0xff] %v6944_v61  ;;  %v6950_v63 = vld [vmem:[#allocation11] sm:$0xff] }
  0xc1   : > { %5312 = vmatpush3.msra.mxu0 %v686_v11  ;;  %5356 = vmatpush3.msra.mxu1 %v686_v11  ;;  %9022 = vst [vmem:[#allocation54_spill] sm:$0xff] %v6947_v62  ;;  %9023 = vst [vmem:[#allocation55_spill] sm:$0xff] %v6950_v63  ;;  %v6957_v0 = vld [vmem:[%s8907_s5] ss:$0 sm:$0xff] }
  0xc2   : > { %5313 = vmatprep.subr.mxu0 %v685_v12  ;;  %5357 = vmatprep.subr.mxu1 %v685_v12 }
  0xc3   : > { %5314 = vmatpush3.msra.mxu0 %v685_v12  ;;  %5358 = vmatpush3.msra.mxu1 %v685_v12 }
  0xc4   : > { %5315 = vmatprep.subr.mxu0 %v684_v13  ;;  %5359 = vmatprep.subr.mxu1 %v684_v13 }
  0xc5   : > { %5316 = vmatpush3.msra.mxu0 %v684_v13  ;;  %5360 = vmatpush3.msra.mxu1 %v684_v13 }
  0xc6   : > { %5317 = vmatprep.subr.mxu0 %v683_v14  ;;  %5361 = vmatprep.subr.mxu1 %v683_v14 }
  0xc7   : > { %5318 = vmatpush3.msra.mxu0 %v683_v14  ;;  %5321 = vmatprep.mubr.f32.mxu0 %v6794_v15 }
  0xc8   : > { %5319 = vmatprep.subr.mxu0 %v682_v16  ;;  %5362 = vmatpush3.msra.mxu1 %v683_v14 }
  0xc9   : > { %5320 = vmatpush3.msra.mxu0 %v682_v16  ;;  %5363 = vmatprep.subr.mxu1 %v682_v16 }
  0xca   : > { %5322 = vmatmul.mubr.f32.vlgmr.msra.gmra.mxu0 %v6798_v17  ;;  %5364 = vmatpush3.msra.mxu1 %v682_v16 }
  0xcb   : > { %5365 = vmatprep.mubr.f32.mxu1 %v6801_v18  ;;  %5324 = vmatprep.mubr.f32.mxu0 %v6804_v19 }
  0xcc   : > { %5366 = vmatmul.mubr.f32.vlgmr.msra.gmra.mxu1 %v6807_v20  ;;  %4601 = vmatprep.subr.mxu0 %v6857_v32 }
  0xcd   : > { %5368 = vmatprep.mubr.f32.mxu1 %v6811_v21  ;;  %4602 = vmatpush3.msra.mxu0 %v6860_v33 }
  0xce   : > { %5325 = vmatmul.mubr.f32.gmra.mxu0 %v6816_v22  ;;  %4603 = vmatprep.subr.mxu0 %v6863_v34 }
  0xcf   : > { %5327 = vmatprep.mubr.f32.mxu0 %v6820_v23  ;;  %4604 = vmatpush3.msra.mxu0 %v6866_v35 }
  0xd0   : > { %5369 = vmatmul.mubr.f32.gmra.mxu1 %v6824_v24  ;;  %4605 = vmatprep.subr.mxu0 %v6869_v36 }
  0xd1   : > { %5371 = vmatprep.mubr.f32.mxu1 %v6828_v25  ;;  %4606 = vmatpush3.msra.mxu0 %v6872_v37 }
  0xd2   : > { %5328 = vmatmul.mubr.f32.gmra.mxu0 %v6832_v26  ;;  %4607 = vmatprep.subr.mxu0 %v6875_v38 }
  0xd3   : > { %5330 = vmatprep.mubr.f32.mxu0 %v6836_v27  ;;  %4608 = vmatpush3.msra.mxu0 %v6878_v39 }
  0xd4   : > { %5372 = vmatmul.mubr.f32.gmra.mxu1 %v6840_v28  ;;  %4609 = vmatprep.subr.mxu0 %v6881_v40 }
  0xd5   : > { %5374 = vmatprep.mubr.f32.mxu1 %v6844_v29  ;;  %4610 = vmatpush3.msra.mxu0 %v6884_v41 }
  0xd6   : > { %5331 = vmatmul.mubr.f32.gmra.mxu0 %v6848_v30  ;;  %4611 = vmatprep.subr.mxu0 %v6887_v42 }
  0xd7   : > { %4612 = vmatpush3.msra.mxu0 %v6890_v43 }
  0xd8   : > { %5375 = vmatmul.mubr.f32.gmra.mxu1 %v6853_v31  ;;  %4613 = vmatprep.subr.mxu0 %v6893_v44 }
  0xd9   : > { %4614 = vmatpush3.msra.mxu0 %v6896_v45 }
  0xda   : > { %4615 = vmatprep.subr.mxu0 %v6899_v46 }
  0xdb   : > { %4616 = vmatpush3.msra.mxu0 %v6902_v47 }
  0xdc   : > { %4617 = vmatprep.subr.mxu0 %v6905_v48 }
  0xdd   : > { %4618 = vmatpush3.msra.mxu0 %v6908_v49 }
  0xde   : > { %4619 = vmatprep.subr.mxu0 %v6911_v50 }
  0xdf   : > { %4620 = vmatpush3.msra.mxu0 %v6914_v51 }
  0xe0   : > { %4621 = vmatprep.subr.mxu0 %v6917_v52 }
  0xe1   : > { %4622 = vmatpush3.msra.mxu0 %v6920_v53 }
  0xe2   : > { %4623 = vmatprep.subr.mxu0 %v6923_v54 }
  0xe3   : > { %4624 = vmatpush3.msra.mxu0 %v6926_v55 }
  0xe4   : > { %4625 = vmatprep.subr.mxu0 %v6929_v56 }
  0xe5   : > { %4626 = vmatpush3.msra.mxu0 %v6932_v57 }
  0xe6   : > { %4627 = vmatprep.subr.mxu0 %v6935_v58 }
  0xe7   : > { %4628 = vmatpush3.msra.mxu0 %v6938_v59 }
  0xe8   : > { %4629 = vmatprep.subr.mxu0 %v6941_v60 }
  0xe9   : > { %4630 = vmatpush3.msra.mxu0 %v6944_v61 }
  0xea   : > { %4631 = vmatprep.subr.mxu0 %v6947_v62 }
  0xeb   : > { %4632 = vmatpush3.msra.mxu0 %v6950_v63 }
  0xec   : > { %4681 = vmatprep.subr.mxu0 %v6857_v32 }
 0x18a   : > { %v5323_v1 = vpop.f32.mrf.mxu0 }
 0x18b   : > { %v6960_v2 = vadd.f32 %v5323_v1, %v6957_v0 }
 0x18c   : > { %v821_v3 = vpop.f32.mrf.mxu0  ;;  %v5367_v6 = vpop.f32.mrf.mxu1 }
 0x18d   : > { %v861_v4 = vmul.f32 %v6960_v2, %v6960_v2  ;;  %v6965_v5 = vadd.f32 %v6957_v0, %v821_v3  ;;  %v6991_v32 = vadd.f32 %v5367_v6, %v6957_v0 }
 0x18e   : > { %v5326_v7 = vpop.f32.mrf.mxu0  ;;  %v1006_v16 = vpop.f32.mrf.mxu1 }
 0x18f   : > { %v869_v8 = vmul.f32 %v861_v4, %v6960_v2  ;;  %v860_v9 = vmul.f32 %v6965_v5, %v6965_v5  ;;  %v6971_v10 = vadd.f32 %v5326_v7, %v6957_v0  ;;  %9024 = vst [vmem:[#allocation56_spill] sm:$0xff] %v6991_v32 }
 0x190   : > { %v831_v11 = vpop.f32.mrf.mxu0 }
 0x191   : > { %v877_v12 = vmul.f32 0.044715, %v869_v8  ;;  %v868_v13 = vmul.f32 %v860_v9, %v6965_v5  ;;  %v863_v14 = vmul.f32 %v6971_v10, %v6971_v10  ;;  %v6977_v1 = vadd.f32 %v6957_v0, %v831_v11 }
 0x192   : > { %v5329_v3 = vpop.f32.mrf.mxu0  ;;  %v6988_v11 = vadd.f32 %v6957_v0, %v1006_v16 }
 0x193   : > { %v885_v4 = vadd.f32 %v877_v12, %v6960_v2  ;;  %v876_v31 = vmul.f32 0.044715, %v868_v13  ;;  %v871_v29 = vmul.f32 %v863_v14, %v6971_v10  ;;  %v862_v7 = vmul.f32 %v6977_v1, %v6977_v1 }
 0x194   : > { %v6984_v8 = vadd.f32 %v5329_v3, %v6957_v0  ;;  %v841_v9 = vpop.f32.mrf.mxu0  ;;  %v1045_v21 = vmul.f32 %v6988_v11, %v6988_v11 }
 0x195   : > { %v893_v28 = vmul.f32 0.7978846, %v885_v4  ;;  %v884_v25 = vadd.f32 %v876_v31, %v6965_v5  ;;  %v879_v24 = vmul.f32 0.044715, %v871_v29  ;;  %v870_v12 = vmul.f32 %v862_v7, %v6977_v1  ;;  %v5370_v29 = vpop.f32.mrf.mxu1 }
 0x196   : > { %v865_v13 = vmul.f32 %v6984_v8, %v6984_v8  ;;  %v6997_v14 = vadd.f32 %v6957_v0, %v841_v9  ;;  %v5332_v3 = vpop.f32.mrf.mxu0 }
 0x197   : > { %5943 = vtanh.f32 %v893_v28  ;;  %v892_v4 = vmul.f32 0.7978846, %v884_v25  ;;  %v887_v31 = vadd.f32 %v879_v24, %v6971_v10  ;;  %v878_v63 = vmul.f32 0.044715, %v870_v12 }
 0x198   : > { %v873_v16 = vmul.f32 %v865_v13, %v6984_v8  ;;  %v864_v6 = vmul.f32 %v6997_v14, %v6997_v14  ;;  %v7006_v9 = vadd.f32 %v5332_v3, %v6957_v0  ;;  %v1046_v25 = vmul.f32 %v6991_v32, %v6991_v32  ;;  %v851_v12 = vpop.f32.mrf.mxu0 }
 0x199   : > { %5945 = vtanh.f32 %v892_v4  ;;  %v895_v7 = vmul.f32 0.7978846, %v887_v31  ;;  %v886_v24 = vadd.f32 %v878_v63, %v6977_v1  ;;  %v1016_v31 = vpop.f32.mrf.mxu1  ;;  %v1053_v3 = vmul.f32 %v1045_v21, %v6988_v11 }
 0x19a   : > { %v881_v28 = vmul.f32 0.044715, %v873_v16  ;;  %v872_v13 = vmul.f32 %v864_v6, %v6997_v14  ;;  %v867_v4 = vmul.f32 %v7006_v9, %v7006_v9  ;;  %v7018_v20 = vadd.f32 %v6957_v0, %v851_v12 }
 0x19b   : > { %5947 = vtanh.f32 %v895_v7  ;;  %v894_v62 = vmul.f32 0.7978846, %v886_v24  ;;  %v1054_v63 = vmul.f32 %v1046_v25, %v6991_v32  ;;  %v7022_v6 = vadd.f32 %v6957_v0, %v1016_v31  ;;  %v5373_v7 = vpop.f32.mrf.mxu1 }
 0x19c   : > { %v889_v61 = vadd.f32 %v881_v28, %v6984_v8  ;;  %v880_v60 = vmul.f32 0.044715, %v872_v13  ;;  %v875_v59 = vmul.f32 %v867_v4, %v7006_v9  ;;  %v7026_v28 = vadd.f32 %v5370_v29, %v6957_v0 }
 0x19d   : > { %5949 = vtanh.f32 %v894_v62  ;;  %v866_v13 = vmul.f32 %v7018_v20, %v7018_v20  ;;  %v1061_v4 = vmul.f32 0.044715, %v1053_v3  ;;  %v1062_v62 = vmul.f32 0.044715, %v1054_v63  ;;  %v1026_v58 = vpop.f32.mrf.mxu1 }
 0x19e   : > { %v897_v16 = vmul.f32 0.7978846, %v889_v61  ;;  %v888_v24 = vadd.f32 %v880_v60, %v6997_v14  ;;  %v883_v21 = vmul.f32 0.044715, %v875_v59  ;;  %v1047_v31 = vmul.f32 %v7022_v6, %v7022_v6 }
 0x19f   : > { %v874_v25 = vmul.f32 %v866_v13, %v7018_v20  ;;  %v1048_v60 = vmul.f32 %v7026_v28, %v7026_v28  ;;  %v1069_v3 = vadd.f32 %v1061_v4, %v6988_v11  ;;  %v7045_v4 = vadd.f32 %v5373_v7, %v6957_v0 }
 0x1a0   : > { %5951 = vtanh.f32 %v897_v16  ;;  %v896_v12 = vmul.f32 0.7978846, %v888_v24  ;;  %v891_v61 = vadd.f32 %v883_v21, %v7006_v9  ;;  %v7039_v24 = vadd.f32 %v6957_v0, %v1026_v58 }
 0x1a1   : > { %v882_v59 = vmul.f32 0.044715, %v874_v25  ;;  %v1070_v21 = vadd.f32 %v1062_v62, %v6991_v32  ;;  %v1055_v56 = vmul.f32 %v1047_v31, %v7022_v6  ;;  %v1056_v25 = vmul.f32 %v1048_v60, %v7026_v28 }
 0x1a2   : > { %5953 = vtanh.f32 %v896_v12  ;;  %v899_v13 = vmul.f32 0.7978846, %v891_v61  ;;  %v5376_v12 = vpop.f32.mrf.mxu1  ;;  %v1077_v53 = vmul.f32 0.7978846, %v1069_v3  ;;  %v1049_v58 = vmul.f32 %v7039_v24, %v7039_v24 }
 0x1a3   : > { %v890_v16 = vadd.f32 %v882_v59, %v7018_v20  ;;  %v1064_v7 = vmul.f32 0.044715, %v1056_v25 }
 0x1a4   : > { %v5944_v29 = vpop.eup %5943  ;;  %v1036_v31 = vpop.f32.mrf.mxu1 }
 0x1a5   : > { %v909_v57 = vadd.f32 1.0, %v5944_v29  ;;  %v898_v54 = vmul.f32 0.7978846, %v890_v16  ;;  %v1078_v16 = vmul.f32 0.7978846, %v1070_v21 }
 0x1a6   : > { %v5946_v63 = vpop.eup %5945 }
 0x1a7   : > { %v917_v55 = vmul.f32 0.5, %v909_v57  ;;  %v908_v18 = vadd.f32 1.0, %v5946_v63  ;;  %5955 = vtanh.f32 %v898_v54  ;;  %v1063_v57 = vmul.f32 0.044715, %v1055_v56  ;;  %v1125_v56 = vld [vmem:[%s6776_s30] sm:$0xff] }
 0x1a8   : > { %v5948_v29 = vpop.eup %5947  ;;  %5957 = vtanh.f32 %v899_v13 }
 0x1a9   : > { %v916_v59 = vmul.f32 0.5, %v908_v18  ;;  %v925_v62 = vmul.f32 %v917_v55, %v6960_v2  ;;  %v911_v61 = vadd.f32 1.0, %v5948_v29  ;;  %v1050_v18 = vmul.f32 %v7045_v4, %v7045_v4 }
 0x1aa   : > { %v5950_v63 = vpop.eup %5949  ;;  %5959 = vtanh.f32 %v1077_v53  ;;  %v1057_v55 = vmul.f32 %v1049_v58, %v7039_v24  ;;  %v7058_v2 = vadd.f32 %v6957_v0, %v1036_v31  ;;  %v1071_v25 = vadd.f32 %v1063_v57, %v7022_v6 }
 0x1ab   : > { %v924_v60 = vmul.f32 %v916_v59, %v6965_v5  ;;  %v910_v32 = vadd.f32 1.0, %v5950_v63  ;;  %v7062_v5 = vadd.f32 %v925_v62, %v6798_v17  ;;  %v919_v21 = vmul.f32 0.5, %v911_v61 }
 0x1ac   : > { %5961 = vtanh.f32 %v1078_v16  ;;  %v1072_v29 = vadd.f32 %v1064_v7, %v7026_v28  ;;  %v1058_v58 = vmul.f32 %v1050_v18, %v7045_v4  ;;  %v7070_v31 = vadd.f32 %v5376_v12, %v6957_v0  ;;  %v1127_v0 = vld [vmem:[%s6776_s30 + $0x10] sm:$0xff] }
 0x1ad   : > { %v7054_v54 = vadd.f32 %v924_v60, %v6794_v15  ;;  %v5952_v3 = vpop.eup %5951  ;;  %v918_v13 = vmul.f32 0.5, %v910_v32  ;;  %v1126_v15 = vld [vmem:[%s6776_s30 + $0x8] sm:$0xff]  ;;  %v1065_v32 = vmul.f32 0.044715, %v1057_v55  ;;  %v1051_v57 = vmul.f32 %v7058_v2, %v7058_v2 }
 0x1ae   : > { %v913_v62 = vadd.f32 1.0, %v5952_v3  ;;  %v927_v63 = vmul.f32 %v919_v21, %v6971_v10  ;;  %v1079_v16 = vmul.f32 0.7978846, %v1071_v25  ;;  %v1080_v12 = vmul.f32 0.7978846, %v1072_v29 }
 0x1af   : > { %v5954_v59 = vpop.eup %5953  ;;  %v926_v53 = vmul.f32 %v918_v13, %v6977_v1  ;;  %v1133_v17 = vmul.f32 %v1125_v56, %v7054_v54  ;;  %v1134_v1 = vmul.f32 %v1126_v15, %v7062_v5  ;;  %v1066_v18 = vmul.f32 0.044715, %v1058_v58 }
 0x1b0   : > { %v912_v61 = vadd.f32 1.0, %v5954_v59  ;;  %v921_v55 = vmul.f32 0.5, %v913_v62  ;;  %v1073_v10 = vadd.f32 %v1065_v32, %v7039_v24  ;;  %v1059_v56 = vmul.f32 %v1051_v57, %v7058_v2  ;;  %v1128_v59 = vld [vmem:[%s6776_s30 + $0x18] sm:$0xff] }
 0x1b1   : > { %v7077_v60 = vadd.f32 %v926_v53, %v6804_v19  ;;  %1211 = vmatprep.mubr.f32.mxu0 %v1133_v17  ;;  %v1052_v19 = vmul.f32 %v7070_v31, %v7070_v31  ;;  %v7089_v21 = vadd.f32 %v927_v63, %v6816_v22  ;;  %5963 = vtanh.f32 %v1079_v16 }
 0x1b2   : > { %v920_v7 = vmul.f32 0.5, %v912_v61  ;;  %1212 = vmatmul.mubr.f32.vlgmr.msra.gmra.mxu0 %v7054_v54  ;;  %5965 = vtanh.f32 %v1080_v12  ;;  %v1074_v53 = vadd.f32 %v1066_v18, %v7045_v4  ;;  %v929_v22 = vmul.f32 %v921_v55, %v6984_v8  ;;  %v1129_v8 = vld [vmem:[%s6776_s30 + $0x20] sm:$0xff] }
 0x1b3   : > { %4682 = vmatpush3.msra.mxu0 %v6860_v33  ;;  %1216 = vmatprep.mubr.f32.mxu0 %v1134_v1  ;;  %v1135_v25 = vmul.f32 %v1127_v0, %v7077_v60  ;;  %v1060_v58 = vmul.f32 %v1052_v19, %v7070_v31  ;;  %v1067_v17 = vmul.f32 0.044715, %v1059_v56  ;;  %v1136_v63 = vmul.f32 %v1128_v59, %v7089_v21  ;;  %v1130_v19 = vld [vmem:[%s6776_s30 + $0x28] sm:$0xff]  ;;  %v1131_v59 = vld [vmem:[%s6776_s30 + $0x30] sm:$0xff] }
 0x1b4   : > { %4683 = vmatprep.subr.mxu0 %v6863_v34  ;;  %v5956_v3 = vpop.eup %5955  ;;  %v928_v13 = vmul.f32 %v920_v7, %v6997_v14  ;;  %v1081_v14 = vmul.f32 0.7978846, %v1073_v10  ;;  %v1082_v1 = vmul.f32 0.7978846, %v1074_v53  ;;  %v7114_v12 = vadd.f32 %v929_v22, %v6832_v26 }
 0x1b5   : > { %4684 = vmatpush3.msra.mxu0 %v6866_v35  ;;  %v5958_v29 = vpop.eup %5957  ;;  %v914_v15 = vadd.f32 1.0, %v5956_v3  ;;  %v1075_v0 = vadd.f32 %v1067_v17, %v7058_v2 }
 0x1b6   : > { %4685 = vmatprep.subr.mxu0 %v6869_v36  ;;  %1217 = vmatmul.mubr.f32.gmra.mxu0 %v7062_v5  ;;  %v7103_v61 = vadd.f32 %v928_v13, %v6820_v23  ;;  %v915_v32 = vadd.f32 1.0, %v5958_v29  ;;  %5967 = vtanh.f32 %v1081_v14  ;;  %v1068_v23 = vmul.f32 0.044715, %v1060_v58 }
 0x1b7   : > { %4686 = vmatpush3.msra.mxu0 %v6872_v37  ;;  %1221 = vmatprep.mubr.f32.mxu0 %v1135_v25  ;;  %v5960_v62 = vpop.eup %5959  ;;  %v922_v57 = vmul.f32 0.5, %v914_v15  ;;  %5969 = vtanh.f32 %v1082_v1  ;;  %v1083_v25 = vmul.f32 0.7978846, %v1075_v0  ;;  %v1138_v29 = vmul.f32 %v1130_v19, %v7114_v12 }
 0x1b8   : > { %4687 = vmatprep.subr.mxu0 %v6875_v38  ;;  %v1093_v7 = vadd.f32 1.0, %v5960_v62  ;;  %v923_v18 = vmul.f32 0.5, %v915_v32  ;;  %v1137_v10 = vmul.f32 %v1129_v8, %v7103_v61  ;;  %v1076_v26 = vadd.f32 %v1068_v23, %v7070_v31  ;;  %v1132_v62 = vld [vmem:[%s6776_s30 + $0x38] sm:$0xff]  ;;  %v9029_v23 = vld [vmem:[#allocation47_spill] sm:$0xff] }
 0x1b9   : > { %4688 = vmatpush3.msra.mxu0 %v6878_v39  ;;  %v5962_v16 = vpop.eup %5961  ;;  %v930_v55 = vmul.f32 %v922_v57, %v7018_v20  ;;  %5971 = vtanh.f32 %v1083_v25  ;;  %v9025_v32 = vld [vmem:[#allocation45_spill] sm:$0xff] }
 0x1ba   : > { %4689 = vmatprep.subr.mxu0 %v6881_v40  ;;  %1222 = vmatmul.mubr.f32.gmra.mxu0 %v7077_v60  ;;  %v1094_v56 = vadd.f32 1.0, %v5962_v16  ;;  %v1101_v3 = vmul.f32 0.5, %v1093_v7  ;;  %v931_v20 = vmul.f32 %v923_v18, %v7006_v9  ;;  %v1084_v22 = vmul.f32 0.7978846, %v1076_v26  ;;  %v9028_v16 = vld [vmem:[#allocation36_spill] sm:$0xff]  ;;  %v9033_v26 = vld [vmem:[#allocation37_spill] sm:$0xff] }
 0x1bb   : > { %4690 = vmatpush3.msra.mxu0 %v6884_v41  ;;  %1226 = vmatprep.mubr.f32.mxu0 %v1136_v63  ;;  %v7127_v13 = vadd.f32 %v930_v55, %v6836_v27  ;;  %v9030_v18 = vld [vmem:[#allocation48_spill] sm:$0xff]  ;;  %v1459_v55 = vld [vmem:[%s6779_s0] sm:$0xff] }
 0x1bc   : > { %4691 = vmatprep.subr.mxu0 %v6887_v42  ;;  %v1102_v9 = vmul.f32 0.5, %v1094_v56  ;;  %v1109_v27 = vmul.f32 %v1101_v3, %v6988_v11  ;;  %v7138_v14 = vadd.f32 %v931_v20, %v6848_v30  ;;  %v9026_v11 = vld [vmem:[#allocation56_spill] sm:$0xff]  ;;  %v9027_v30 = vld [vmem:[#allocation46_spill] sm:$0xff]  ;;  %5973 = vtanh.f32 %v1084_v22 }
 0x1bd   : > { %4692 = vmatpush3.msra.mxu0 %v6890_v43  ;;  %v1139_v17 = vmul.f32 %v1131_v59, %v7127_v13  ;;  %v9032_v56 = vld [vmem:[#allocation50_spill] sm:$0xff] }
 0x1be   : > { %4693 = vmatprep.subr.mxu0 %v6893_v44  ;;  %1227 = vmatmul.mubr.f32.gmra.mxu0 %v7089_v21  ;;  %v5964_v15 = vpop.eup %5963  ;;  %v1110_v57 = vmul.f32 %v1102_v9, %v9026_v11  ;;  %v7149_v1 = vadd.f32 %v1109_v27, %v9028_v16  ;;  %v1140_v0 = vmul.f32 %v1132_v62, %v7138_v14  ;;  %v1460_v9 = vld [vmem:[%s6779_s0 + $0x8] sm:$0xff]  ;;  %v9036_v27 = vld [vmem:[#allocation53_spill] sm:$0xff]  ;;  %v9040_v16 = vld [vmem:[#allocation44_spill] sm:$0xff] }
 0x1bf   : > { %4694 = vmatpush3.msra.mxu0 %v6896_v45  ;;  %1231 = vmatprep.mubr.f32.mxu0 %v1137_v10  ;;  %v5966_v53 = vpop.eup %5965  ;;  %v1095_v58 = vadd.f32 1.0, %v5964_v15  ;;  %v9031_v10 = vld [vmem:[#allocation49_spill] sm:$0xff]  ;;  %v9034_v15 = vld [vmem:[#allocation51_spill] sm:$0xff] }
 0x1c0   : > { %4695 = vmatprep.subr.mxu0 %v6899_v46  ;;  %v1096_v63 = vadd.f32 1.0, %v5966_v53  ;;  %v7159_v20 = vadd.f32 %v1110_v57, %v9033_v26  ;;  %v1467_v59 = vmul.f32 %v1459_v55, %v7149_v1  ;;  %v9035_v53 = vld [vmem:[#allocation52_spill] sm:$0xff]  ;;  %v9039_v57 = vld [vmem:[#allocation55_spill] sm:$0xff] }
 0x1c1   : > { %4696 = vmatpush3.msra.mxu0 %v6902_v47  ;;  %v1103_v7 = vmul.f32 0.5, %v1095_v58  ;;  %v9037_v58 = vld [vmem:[#allocation54_spill] sm:$0xff] }
 0x1c2   : > { %4697 = vmatprep.subr.mxu0 %v6905_v48  ;;  %1232 = vmatmul.mubr.f32.gmra.mxu0 %v7103_v61  ;;  %v1104_v19 = vmul.f32 0.5, %v1096_v63  ;;  %v1468_v63 = vmul.f32 %v1460_v9, %v7159_v20  ;;  %v9042_v9 = vld [vmem:[#allocation40_spill] sm:$0xff] }
 0x1c3   : > { %4698 = vmatpush3.msra.mxu0 %v6908_v49  ;;  %1236 = vmatprep.mubr.f32.mxu0 %v1138_v29  ;;  %v5968_v8 = vpop.eup %5967  ;;  %v1111_v25 = vmul.f32 %v1103_v7, %v7022_v6  ;;  %v1461_v7 = vld [vmem:[%s6779_s0 + $0x10] sm:$0xff] }
 0x1c4   : > { %4699 = vmatprep.subr.mxu0 %v6911_v50  ;;  %v5970_v3 = vpop.eup %5969  ;;  %v1097_v29 = vadd.f32 1.0, %v5968_v8  ;;  %v1112_v22 = vmul.f32 %v1104_v19, %v7026_v28  ;;  %v9041_v28 = vld [vmem:[#allocation39_spill] sm:$0xff] }
 0x1c5   : > { %4700 = vmatpush3.msra.mxu0 %v6914_v51  ;;  %v1098_v62 = vadd.f32 1.0, %v5970_v3 }
 0x1c6   : > { %4701 = vmatprep.subr.mxu0 %v6917_v52  ;;  %1237 = vmatmul.mubr.f32.gmra.mxu0 %v7114_v12  ;;  %v1105_v11 = vmul.f32 0.5, %v1097_v29  ;;  %v5972_v8 = vpop.eup %5971 }
 0x1c7   : > { %4702 = vmatpush3.msra.mxu0 %v9025_v32  ;;  %1241 = vmatprep.mubr.f32.mxu0 %v1139_v17  ;;  %v9038_v17 = vld [vmem:[#allocation38_spill] sm:$0xff]  ;;  %v1106_v55 = vmul.f32 0.5, %v1098_v62  ;;  %v1099_v3 = vadd.f32 1.0, %v5972_v8 }
 0x1c8   : > { %4703 = vmatprep.subr.mxu0 %v9027_v30  ;;  %v7171_v6 = vadd.f32 %v1111_v25, %v9038_v17  ;;  %v1113_v19 = vmul.f32 %v1105_v11, %v7039_v24  ;;  %v1462_v25 = vld [vmem:[%s6779_s0 + $0x18] sm:$0xff]  ;;  %v1463_v11 = vld [vmem:[%s6779_s0 + $0x20] sm:$0xff] }
 0x1c9   : > { %4704 = vmatpush3.msra.mxu0 %v9029_v23  ;;  %v5974_v29 = vpop.eup %5973  ;;  %v1114_v24 = vmul.f32 %v1106_v55, %v7045_v4  ;;  %v1107_v62 = vmul.f32 0.5, %v1099_v3  ;;  %v1464_v55 = vld [vmem:[%s6779_s0 + $0x28] sm:$0xff]  ;;  %v9044_v3 = vld [vmem:[#allocation42_spill] sm:$0xff] }
 0x1ca   : > { %4705 = vmatprep.subr.mxu0 %v9030_v18  ;;  %1242 = vmatmul.mubr.f32.gmra.mxu0 %v7127_v13  ;;  %v1469_v26 = vmul.f32 %v1461_v7, %v7171_v6  ;;  %v1100_v17 = vadd.f32 1.0, %v5974_v29  ;;  %v9045_v29 = vld [vmem:[#allocation43_spill] sm:$0xff] }
 0x1cb   : > { %4706 = vmatpush3.msra.mxu0 %v9031_v10  ;;  %1246 = vmatprep.mubr.f32.mxu0 %v1140_v0  ;;  %v7180_v0 = vadd.f32 %v1112_v22, %v9041_v28  ;;  %v7194_v22 = vadd.f32 %v1113_v19, %v9042_v9  ;;  %v1115_v7 = vmul.f32 %v1107_v62, %v7058_v2 }
 0x1cc   : > { %4707 = vmatprep.subr.mxu0 %v9032_v56  ;;  %v1108_v8 = vmul.f32 0.5, %v1100_v17 }
 0x1cd   : > { %4708 = vmatpush3.msra.mxu0 %v9034_v15  ;;  %v1471_v28 = vmul.f32 %v1463_v11, %v7194_v22 }
 0x1ce   : > { %4709 = vmatprep.subr.mxu0 %v9035_v53  ;;  %1247 = vmatmul.mubr.f32.gmra.mxu0 %v7138_v14  ;;  %v1116_v19 = vmul.f32 %v1108_v8, %v7070_v31 }
 0x1cf   : > { %4710 = vmatpush3.msra.mxu0 %v9036_v27  ;;  %1539 = vmatprep.mubr.f32.mxu0 %v1467_v59  ;;  %v1470_v59 = vmul.f32 %v1462_v25, %v7180_v0  ;;  %v1465_v25 = vld [vmem:[%s6779_s0 + $0x30] sm:$0xff] }
 0x1d0   : > { %4711 = vmatprep.subr.mxu0 %v9037_v58 }
 0x1d1   : > { %4712 = vmatpush3.msra.mxu0 %v9039_v57 }
 0x1d2   : > { %4761 = vmatprep.subr.mxu0 %v9040_v16  ;;  %1540 = vmatmul.mubr.f32.vlgmr.msra.gmra.mxu0 %v7149_v1 }
 0x1d3   : > { %4762 = vmatpush3.msra.mxu0 %v6860_v33  ;;  %1544 = vmatprep.mubr.f32.mxu0 %v1468_v63  ;;  %v9043_v63 = vld [vmem:[#allocation41_spill] sm:$0xff] }
 0x1d4   : > { %4763 = vmatprep.subr.mxu0 %v6863_v34  ;;  %v7203_v4 = vadd.f32 %v1114_v24, %v9043_v63  ;;  %v1466_v24 = vld [vmem:[%s6779_s0 + $0x38] sm:$0xff] }
 0x1d5   : > { %4764 = vmatpush3.msra.mxu0 %v6866_v35 }
 0x1d6   : > { %4765 = vmatprep.subr.mxu0 %v6869_v36  ;;  %1545 = vmatmul.mubr.f32.gmra.mxu0 %v7159_v20  ;;  %v1472_v2 = vmul.f32 %v1464_v55, %v7203_v4 }
 0x1d7   : > { %4766 = vmatpush3.msra.mxu0 %v6872_v37  ;;  %1549 = vmatprep.mubr.f32.mxu0 %v1469_v26  ;;  %v7215_v26 = vadd.f32 %v1115_v7, %v9044_v3 }
 0x1d8   : > { %4767 = vmatprep.subr.mxu0 %v6875_v38 }
 0x1d9   : > { %4768 = vmatpush3.msra.mxu0 %v6878_v39  ;;  %v1473_v31 = vmul.f32 %v1465_v25, %v7215_v26 }
 0x1da   : > { %4769 = vmatprep.subr.mxu0 %v6881_v40  ;;  %1550 = vmatmul.mubr.f32.gmra.mxu0 %v7171_v6 }
 0x1db   : > { %4770 = vmatpush3.msra.mxu0 %v6884_v41  ;;  %1554 = vmatprep.mubr.f32.mxu0 %v1470_v59  ;;  %v7225_v59 = vadd.f32 %v1116_v19, %v9045_v29 }
 0x1dc   : > { %4771 = vmatprep.subr.mxu0 %v6887_v42 }
 0x1dd   : > { %4772 = vmatpush3.msra.mxu0 %v6890_v43  ;;  %v1474_v9 = vmul.f32 %v1466_v24, %v7225_v59 }
 0x1de   : > { %4773 = vmatprep.subr.mxu0 %v6893_v44  ;;  %1555 = vmatmul.mubr.f32.gmra.mxu0 %v7180_v0 }
 0x1df   : > { %4774 = vmatpush3.msra.mxu0 %v6896_v45  ;;  %1559 = vmatprep.mubr.f32.mxu0 %v1471_v28 }
 0x1e0   : > { %4775 = vmatprep.subr.mxu0 %v6899_v46 }
 0x1e1   : > { %4776 = vmatpush3.msra.mxu0 %v6902_v47 }
 0x1e2   : > { %4777 = vmatprep.subr.mxu0 %v6905_v48  ;;  %1560 = vmatmul.mubr.f32.gmra.mxu0 %v7194_v22 }
 0x1e3   : > { %4778 = vmatpush3.msra.mxu0 %v6908_v49  ;;  %1564 = vmatprep.mubr.f32.mxu0 %v1472_v2 }
 0x1e4   : > { %4779 = vmatprep.subr.mxu0 %v6911_v50 }
 0x1e5   : > { %4780 = vmatpush3.msra.mxu0 %v6914_v51 }
 0x1e6   : > { %4781 = vmatprep.subr.mxu0 %v6917_v52  ;;  %1565 = vmatmul.mubr.f32.gmra.mxu0 %v7203_v4 }
 0x1e7   : > { %4782 = vmatpush3.msra.mxu0 %v9025_v32  ;;  %1569 = vmatprep.mubr.f32.mxu0 %v1473_v31 }
 0x1e8   : > { %4783 = vmatprep.subr.mxu0 %v9027_v30 }
 0x1e9   : > { %4784 = vmatpush3.msra.mxu0 %v9029_v23 }
 0x1ea   : > { %4785 = vmatprep.subr.mxu0 %v9030_v18  ;;  %1570 = vmatmul.mubr.f32.gmra.mxu0 %v7215_v26 }
 0x1eb   : > { %4786 = vmatpush3.msra.mxu0 %v9031_v10  ;;  %1574 = vmatprep.mubr.f32.mxu0 %v1474_v9 }
 0x1ec   : > { %4787 = vmatprep.subr.mxu0 %v9032_v56 }
 0x1ed   : > { %4788 = vmatpush3.msra.mxu0 %v9034_v15 }
 0x1ee   : > { %4789 = vmatprep.subr.mxu0 %v9035_v53  ;;  %1575 = vmatmul.mubr.f32.gmra.mxu0 %v7225_v59 }
 0x1ef   : > { %4790 = vmatpush3.msra.mxu0 %v9036_v27  ;;  %1895 = vmatprep.mubr.f32.mxu0 %v7149_v1 }
 0x1f0   : > { %4791 = vmatprep.subr.mxu0 %v9037_v58 }
 0x1f1   : > { %4792 = vmatpush3.msra.mxu0 %v9039_v57 }
 0x1f2   : > { %4841 = vmatprep.subr.mxu0 %v9040_v16  ;;  %1896 = vmatmul.mubr.f32.vlgmr.msra.gmra.mxu0 %v7054_v54 }
 0x1f3   : > { %4842 = vmatpush3.msra.mxu0 %v6860_v33  ;;  %1900 = vmatprep.mubr.f32.mxu0 %v7159_v20  ;;  %v7267_v33 = vld [vmem:[#allocation13 + $0x78] sm:$0xff] }
 0x1f4   : > { %4843 = vmatprep.subr.mxu0 %v6863_v34  ;;  %5377 = vmatprep.subr.mxu1 %v7267_v33  ;;  %v7275_v34 = vld [vmem:[#allocation13 + $0x70] sm:$0xff] }
 0x1f5   : > { %4844 = vmatpush3.msra.mxu0 %v6866_v35  ;;  %5378 = vmatpush3.msra.mxu1 %v7267_v33  ;;  %v7285_v35 = vld [vmem:[#allocation13 + $0x68] sm:$0xff] }
 0x1f6   : > { %4845 = vmatprep.subr.mxu0 %v6869_v36  ;;  %1901 = vmatmul.mubr.f32.gmra.mxu0 %v7062_v5  ;;  %v7295_v36 = vld [vmem:[#allocation13 + $0x60] sm:$0xff] }
 0x1f7   : > { %4846 = vmatpush3.msra.mxu0 %v6872_v37  ;;  %1905 = vmatprep.mubr.f32.mxu0 %v7171_v6  ;;  %v7305_v37 = vld [vmem:[#allocation13 + $0x58] sm:$0xff] }
 0x1f8   : > { %4847 = vmatprep.subr.mxu0 %v6875_v38  ;;  %5379 = vmatprep.subr.mxu1 %v7275_v34  ;;  %v7311_v38 = vld [vmem:[#allocation13 + $0x50] sm:$0xff] }
 0x1f9   : > { %4848 = vmatpush3.msra.mxu0 %v6878_v39  ;;  %5380 = vmatpush3.msra.mxu1 %v7275_v34  ;;  %v7317_v39 = vld [vmem:[#allocation13 + $0x48] sm:$0xff] }
 0x1fa   : > { %4849 = vmatprep.subr.mxu0 %v6881_v40  ;;  %1906 = vmatmul.mubr.f32.gmra.mxu0 %v7077_v60  ;;  %v7323_v40 = vld [vmem:[#allocation13 + $0x40] sm:$0xff] }
 0x1fb   : > { %4850 = vmatpush3.msra.mxu0 %v6884_v41  ;;  %1910 = vmatprep.mubr.f32.mxu0 %v7180_v0  ;;  %v7327_v41 = vld [vmem:[#allocation13 + $0x38] sm:$0xff] }
 0x1fc   : > { %4851 = vmatprep.subr.mxu0 %v6887_v42  ;;  %5381 = vmatprep.subr.mxu1 %v7285_v35  ;;  %v7333_v42 = vld [vmem:[#allocation13 + $0x30] sm:$0xff] }
 0x1fd   : > { %4852 = vmatpush3.msra.mxu0 %v6890_v43  ;;  %5382 = vmatpush3.msra.mxu1 %v7285_v35  ;;  %v7337_v43 = vld [vmem:[#allocation13 + $0x28] sm:$0xff] }
 0x1fe   : > { %4853 = vmatprep.subr.mxu0 %v6893_v44  ;;  %1911 = vmatmul.mubr.f32.gmra.mxu0 %v7089_v21  ;;  %v7343_v44 = vld [vmem:[#allocation13 + $0x20] sm:$0xff] }
 0x1ff   : > { %4854 = vmatpush3.msra.mxu0 %v6896_v45  ;;  %1915 = vmatprep.mubr.f32.mxu0 %v7194_v22  ;;  %v7347_v45 = vld [vmem:[#allocation13 + $0x18] sm:$0xff] }
 0x200   : > { %4855 = vmatprep.subr.mxu0 %v6899_v46  ;;  %5383 = vmatprep.subr.mxu1 %v7295_v36  ;;  %v7353_v46 = vld [vmem:[#allocation13 + $0x10] sm:$0xff] }
 0x201   : > { %4856 = vmatpush3.msra.mxu0 %v6902_v47  ;;  %5384 = vmatpush3.msra.mxu1 %v7295_v36  ;;  %v7357_v47 = vld [vmem:[#allocation13 + $0x8] sm:$0xff] }
 0x202   : > { %4857 = vmatprep.subr.mxu0 %v6905_v48  ;;  %1916 = vmatmul.mubr.f32.gmra.mxu0 %v7103_v61  ;;  %v7363_v48 = vld [vmem:[#allocation13] sm:$0xff] }
 0x203   : > { %4858 = vmatpush3.msra.mxu0 %v6908_v49  ;;  %1920 = vmatprep.mubr.f32.mxu0 %v7203_v4 }
 0x204   : > { %4859 = vmatprep.subr.mxu0 %v6911_v50  ;;  %5385 = vmatprep.subr.mxu1 %v7305_v37  ;;  %v7378_v50 = vld [vmem:[%s8909_s7] ss:$0 sm:$0xff] }
 0x205   : > { %4860 = vmatpush3.msra.mxu0 %v6914_v51  ;;  %5386 = vmatpush3.msra.mxu1 %v7305_v37 }
 0x206   : > { %4861 = vmatprep.subr.mxu0 %v6917_v52  ;;  %1921 = vmatmul.mubr.f32.gmra.mxu0 %v7114_v12 }
 0x207   : > { %4862 = vmatpush3.msra.mxu0 %v9025_v32  ;;  %1925 = vmatprep.mubr.f32.mxu0 %v7215_v26 }
 0x208   : > { %4863 = vmatprep.subr.mxu0 %v9027_v30  ;;  %5387 = vmatprep.subr.mxu1 %v7311_v38 }
 0x209   : > { %4864 = vmatpush3.msra.mxu0 %v9029_v23  ;;  %5388 = vmatpush3.msra.mxu1 %v7311_v38 }
 0x20a   : > { %4865 = vmatprep.subr.mxu0 %v9030_v18  ;;  %1926 = vmatmul.mubr.f32.gmra.mxu0 %v7127_v13 }
 0x20b   : > { %4866 = vmatpush3.msra.mxu0 %v9031_v10  ;;  %1930 = vmatprep.mubr.f32.mxu0 %v7225_v59 }
 0x20c   : > { %4867 = vmatprep.subr.mxu0 %v9032_v56  ;;  %5389 = vmatprep.subr.mxu1 %v7317_v39 }
 0x20d   : > { %4868 = vmatpush3.msra.mxu0 %v9034_v15  ;;  %5390 = vmatpush3.msra.mxu1 %v7317_v39 }
 0x20e   : > { %4869 = vmatprep.subr.mxu0 %v9035_v53  ;;  %1931 = vmatmul.mubr.f32.gmra.mxu0 %v7138_v14 }
 0x20f   : > { %4870 = vmatpush3.msra.mxu0 %v9036_v27  ;;  %2193 = vmatprep.mubr.f32.mxu0 %v7054_v54 }
 0x210   : > { %4871 = vmatprep.subr.mxu0 %v9037_v58  ;;  %5391 = vmatprep.subr.mxu1 %v7323_v40 }
 0x211   : > { %4872 = vmatpush3.msra.mxu0 %v9039_v57  ;;  %5392 = vmatpush3.msra.mxu1 %v7323_v40 }
 0x212   : > { %2194 = vmatmul.mubr.f32.vlgmr.msra.gmra.mxu0 %v7149_v1  ;;  %5393 = vmatprep.subr.mxu1 %v7327_v41 }
 0x213   : > { %2198 = vmatprep.mubr.f32.mxu0 %v7062_v5  ;;  %5394 = vmatpush3.msra.mxu1 %v7327_v41 }
 0x214   : > { %5395 = vmatprep.subr.mxu1 %v7333_v42 }
 0x215   : > { %5396 = vmatpush3.msra.mxu1 %v7333_v42 }
 0x216   : > { %2199 = vmatmul.mubr.f32.gmra.mxu0 %v7159_v20  ;;  %5397 = vmatprep.subr.mxu1 %v7337_v43 }
 0x217   : > { %2203 = vmatprep.mubr.f32.mxu0 %v7077_v60  ;;  %5398 = vmatpush3.msra.mxu1 %v7337_v43 }
 0x218   : > { %5399 = vmatprep.subr.mxu1 %v7343_v44 }
 0x219   : > { %5400 = vmatpush3.msra.mxu1 %v7343_v44 }
 0x21a   : > { %2204 = vmatmul.mubr.f32.gmra.mxu0 %v7171_v6  ;;  %5401 = vmatprep.subr.mxu1 %v7347_v45 }
 0x21b   : > { %2208 = vmatprep.mubr.f32.mxu0 %v7089_v21  ;;  %5402 = vmatpush3.msra.mxu1 %v7347_v45 }
 0x21c   : > { %5403 = vmatprep.subr.mxu1 %v7353_v46 }
 0x21d   : > { %5404 = vmatpush3.msra.mxu1 %v7353_v46 }
 0x21e   : > { %2209 = vmatmul.mubr.f32.gmra.mxu0 %v7180_v0  ;;  %5405 = vmatprep.subr.mxu1 %v7357_v47 }
 0x21f   : > { %2213 = vmatprep.mubr.f32.mxu0 %v7103_v61  ;;  %5406 = vmatpush3.msra.mxu1 %v7357_v47 }
 0x220   : > { %5407 = vmatprep.subr.mxu1 %v7363_v48 }
 0x221   : > { %5408 = vmatpush3.msra.mxu1 %v7363_v48 }
 0x222   : > { %2214 = vmatmul.mubr.f32.gmra.mxu0 %v7194_v22  ;;  %5421 = vmatprep.subr.mxu1 %v7267_v33 }
 0x223   : > { %2218 = vmatprep.mubr.f32.mxu0 %v7114_v12 }
 0x226   : > { %2219 = vmatmul.mubr.f32.gmra.mxu0 %v7203_v4 }
 0x227   : > { %2223 = vmatprep.mubr.f32.mxu0 %v7127_v13 }
 0x22a   : > { %2224 = vmatmul.mubr.f32.gmra.mxu0 %v7215_v26 }
 0x22b   : > { %2228 = vmatprep.mubr.f32.mxu0 %v7138_v14 }
 0x22e   : > { %2229 = vmatmul.mubr.f32.gmra.mxu0 %v7225_v59 }
 0x272   : > { %v4633_v49 = vpop.f32.mrf.mxu0 }
 0x274   : > { %v4634_v51 = vpop.f32.mrf.mxu0 }
 0x275   : > { %v4635_v52 = vadd.f32 %v4634_v51, %v4633_v49 }
 0x276   : > { %v4636_v32 = vpop.f32.mrf.mxu0 }
 0x277   : > { %v7381_v30 = vadd.f32 %v4635_v52, %v7378_v50 }
 0x278   : > { %v4637_v23 = vpop.f32.mrf.mxu0 }
 0x279   : > { %v1252_v18 = vmul.f32 %v7381_v30, %v7381_v30  ;;  %v4638_v10 = vadd.f32 %v4637_v23, %v4636_v32 }
 0x27a   : > { %v4639_v56 = vpop.f32.mrf.mxu0 }
 0x27b   : > { %v1260_v15 = vmul.f32 %v1252_v18, %v7381_v30  ;;  %v7387_v53 = vadd.f32 %v4638_v10, %v7378_v50 }
 0x27c   : > { %v4640_v27 = vpop.f32.mrf.mxu0 }
 0x27d   : > { %v1268_v58 = vmul.f32 0.044715, %v1260_v15  ;;  %v1253_v57 = vmul.f32 %v7387_v53, %v7387_v53  ;;  %v4641_v16 = vadd.f32 %v4640_v27, %v4639_v56 }
 0x27e   : > { %v4642_v17 = vpop.f32.mrf.mxu0 }
 0x27f   : > { %v1261_v62 = vmul.f32 %v1253_v57, %v7387_v53  ;;  %v7393_v11 = vadd.f32 %v4641_v16, %v7378_v50  ;;  %v1276_v63 = vadd.f32 %v1268_v58, %v7381_v30 }
 0x280   : > { %v4643_v8 = vpop.f32.mrf.mxu0 }
 0x281   : > { %v1269_v7 = vmul.f32 0.044715, %v1261_v62  ;;  %v1254_v28 = vmul.f32 %v7393_v11, %v7393_v11  ;;  %v4644_v55 = vadd.f32 %v4643_v8, %v4642_v17  ;;  %v1284_v19 = vmul.f32 0.7978846, %v1276_v63 }
 0x282   : > { %v4645_v3 = vpop.f32.mrf.mxu0 }
 0x283   : > { %v1277_v2 = vadd.f32 %v1269_v7, %v7387_v53  ;;  %v1262_v25 = vmul.f32 %v1254_v28, %v7393_v11  ;;  %v7401_v29 = vadd.f32 %v4644_v55, %v7378_v50  ;;  %5975 = vtanh.f32 %v1284_v19 }
 0x284   : > { %v4646_v31 = vpop.f32.mrf.mxu0 }
 0x285   : > { %v1285_v24 = vmul.f32 0.7978846, %v1277_v2  ;;  %v1270_v9 = vmul.f32 0.044715, %v1262_v25  ;;  %v1255_v49 = vmul.f32 %v7401_v29, %v7401_v29  ;;  %v4647_v51 = vadd.f32 %v4646_v31, %v4645_v3 }
 0x286   : > { %v4648_v52 = vpop.f32.mrf.mxu0 }
 0x287   : > { %5977 = vtanh.f32 %v1285_v24  ;;  %v1263_v32 = vmul.f32 %v1255_v49, %v7401_v29  ;;  %v7407_v23 = vadd.f32 %v4647_v51, %v7378_v50  ;;  %v1278_v18 = vadd.f32 %v1270_v9, %v7393_v11 }
 0x288   : > { %v4649_v10 = vpop.f32.mrf.mxu0 }
 0x289   : > { %v1271_v56 = vmul.f32 0.044715, %v1263_v32  ;;  %v1256_v15 = vmul.f32 %v7407_v23, %v7407_v23  ;;  %v4650_v27 = vadd.f32 %v4649_v10, %v4648_v52  ;;  %v1286_v58 = vmul.f32 0.7978846, %v1278_v18 }
 0x28a   : > { %v4651_v57 = vpop.f32.mrf.mxu0 }
 0x28b   : > { %v1264_v16 = vmul.f32 %v1256_v15, %v7407_v23  ;;  %v7414_v17 = vadd.f32 %v4650_v27, %v7378_v50  ;;  %5979 = vtanh.f32 %v1286_v58  ;;  %v1279_v62 = vadd.f32 %v1271_v56, %v7401_v29 }
 0x28c   : > { %v4652_v63 = vpop.f32.mrf.mxu0 }
 0x28d   : > { %v1272_v8 = vmul.f32 0.044715, %v1264_v16  ;;  %v1257_v7 = vmul.f32 %v7414_v17, %v7414_v17  ;;  %v4653_v28 = vadd.f32 %v4652_v63, %v4651_v57  ;;  %v1287_v55 = vmul.f32 0.7978846, %v1279_v62 }
 0x28e   : > { %v4654_v19 = vpop.f32.mrf.mxu0 }
 0x28f   : > { %v1265_v3 = vmul.f32 %v1257_v7, %v7414_v17  ;;  %v7421_v2 = vadd.f32 %v4653_v28, %v7378_v50  ;;  %5981 = vtanh.f32 %v1287_v55  ;;  %v1280_v25 = vadd.f32 %v1272_v8, %v7407_v23 }
 0x290   : > { %v5976_v31 = vpop.eup %5975  ;;  %v4655_v24 = vpop.f32.mrf.mxu0 }
 0x291   : > { %v1273_v9 = vmul.f32 0.044715, %v1265_v3  ;;  %v1258_v49 = vmul.f32 %v7421_v2, %v7421_v2  ;;  %v4656_v51 = vadd.f32 %v4655_v24, %v4654_v19  ;;  %v1300_v52 = vadd.f32 1.0, %v5976_v31 }
 0x292   : > { %v4713_v32 = vpop.f32.mrf.mxu0  ;;  %v1288_v18 = vmul.f32 0.7978846, %v1280_v25 }
 0x293   : > { %v1266_v10 = vmul.f32 %v1258_v49, %v7421_v2  ;;  %v7428_v56 = vadd.f32 %v4656_v51, %v7378_v50  ;;  %v1308_v15 = vmul.f32 0.5, %v1300_v52  ;;  %v1281_v27 = vadd.f32 %v1273_v9, %v7414_v17 }
 0x294   : > { %v5978_v58 = vpop.eup %5977  ;;  %v4714_v57 = vpop.f32.mrf.mxu0  ;;  %5983 = vtanh.f32 %v1288_v18 }
 0x295   : > { %v1301_v16 = vadd.f32 1.0, %v5978_v58  ;;  %v1274_v62 = vmul.f32 0.044715, %v1266_v10  ;;  %v1259_v63 = vmul.f32 %v7428_v56, %v7428_v56  ;;  %v4715_v8 = vadd.f32 %v4714_v57, %v4713_v32 }
 0x296   : > { %v4716_v7 = vpop.f32.mrf.mxu0  ;;  %v1316_v28 = vmul.f32 %v1308_v15, %v7381_v30  ;;  %v1289_v55 = vmul.f32 0.7978846, %v1281_v27 }
 0x297   : > { %v1309_v19 = vmul.f32 0.5, %v1301_v16  ;;  %v1267_v3 = vmul.f32 %v1259_v63, %v7428_v56  ;;  %v7436_v25 = vadd.f32 %v4715_v8, %v7378_v50  ;;  %v1282_v31 = vadd.f32 %v1274_v62, %v7421_v2 }
 0x298   : > { %v5980_v24 = vpop.eup %5979  ;;  %5409 = vmatprep.mubr.f32.mxu1 %v1316_v28  ;;  %v4717_v9 = vpop.f32.mrf.mxu0  ;;  %5985 = vtanh.f32 %v1289_v55 }
 0x299   : > { %v1317_v49 = vmul.f32 %v1309_v19, %v7387_v53  ;;  %v1275_v51 = vmul.f32 0.044715, %v1267_v3  ;;  %v1580_v52 = vmul.f32 %v7436_v25, %v7436_v25  ;;  %v4718_v30 = vadd.f32 %v4717_v9, %v4716_v7 }
 0x29a   : > { %v4719_v32 = vpop.f32.mrf.mxu0  ;;  %v1302_v18 = vadd.f32 1.0, %v5980_v24  ;;  %v1290_v10 = vmul.f32 0.7978846, %v1282_v31 }
 0x29b   : > { %v1588_v15 = vmul.f32 %v1580_v52, %v7436_v25  ;;  %v7444_v27 = vadd.f32 %v4718_v30, %v7378_v50  ;;  %5410 = vmatmul.mubr.f32.vlgmr.msra.gmra.mxu1 %v1317_v49  ;;  %v1283_v58 = vadd.f32 %v1275_v51, %v7428_v56 }
 0x29c   : > { %v5982_v57 = vpop.eup %5981  ;;  %v4720_v16 = vpop.f32.mrf.mxu0  ;;  %5422 = vmatpush3.msra.mxu1 %v7267_v33  ;;  %v1310_v53 = vmul.f32 0.5, %v1302_v18  ;;  %5987 = vtanh.f32 %v1290_v10 }
 0x29d   : > { %v1596_v62 = vmul.f32 0.044715, %v1588_v15  ;;  %v1581_v63 = vmul.f32 %v7444_v27, %v7444_v27  ;;  %v4721_v8 = vadd.f32 %v4720_v16, %v4719_v32  ;;  %5423 = vmatprep.subr.mxu1 %v7275_v34  ;;  %v1303_v7 = vadd.f32 1.0, %v5982_v57 }
 0x29e   : > { %v4722_v28 = vpop.f32.mrf.mxu0  ;;  %5424 = vmatpush3.msra.mxu1 %v7275_v34  ;;  %v1318_v55 = vmul.f32 %v1310_v53, %v7393_v11  ;;  %v1291_v19 = vmul.f32 0.7978846, %v1283_v58 }
 0x29f   : > { %v1589_v3 = vmul.f32 %v1581_v63, %v7444_v27  ;;  %v7455_v31 = vadd.f32 %v4721_v8, %v7378_v50  ;;  %5425 = vmatprep.subr.mxu1 %v7285_v35  ;;  %v1311_v24 = vmul.f32 0.5, %v1303_v7  ;;  %v1604_v9 = vadd.f32 %v1596_v62, %v7436_v25 }
 0x2a0   : > { %5412 = vmatprep.mubr.f32.mxu1 %v1318_v55  ;;  %v4723_v49 = vpop.f32.mrf.mxu0  ;;  %5426 = vmatpush3.msra.mxu1 %v7285_v35  ;;  %5989 = vtanh.f32 %v1291_v19 }
 0x2a1   : > { %v5984_v51 = vpop.eup %5983  ;;  %v1597_v52 = vmul.f32 0.044715, %v1589_v3  ;;  %v1582_v11 = vmul.f32 %v7455_v31, %v7455_v31  ;;  %v4724_v30 = vadd.f32 %v4723_v49, %v4722_v28  ;;  %5427 = vmatprep.subr.mxu1 %v7295_v36  ;;  %v1319_v32 = vmul.f32 %v1311_v24, %v7401_v29 }
 0x2a2   : > { %v4725_v18 = vpop.f32.mrf.mxu0  ;;  %5428 = vmatpush3.msra.mxu1 %v7295_v36  ;;  %v1304_v10 = vadd.f32 1.0, %v5984_v51  ;;  %v1612_v15 = vmul.f32 0.7978846, %v1604_v9 }
 0x2a3   : > { %v1605_v58 = vadd.f32 %v1597_v52, %v7444_v27  ;;  %v1590_v57 = vmul.f32 %v1582_v11, %v7455_v31  ;;  %v7468_v16 = vadd.f32 %v4724_v30, %v7378_v50  ;;  %5413 = vmatmul.mubr.f32.gmra.mxu1 %v1319_v32  ;;  %5429 = vmatprep.subr.mxu1 %v7305_v37 }
 0x2a4   : > { %v4726_v53 = vpop.f32.mrf.mxu0  ;;  %5430 = vmatpush3.msra.mxu1 %v7305_v37  ;;  %v1312_v62 = vmul.f32 0.5, %v1304_v10  ;;  %5991 = vtanh.f32 %v1612_v15 }
 0x2a5   : > { %v5986_v29 = vpop.eup %5985  ;;  %v1613_v63 = vmul.f32 0.7978846, %v1605_v58  ;;  %v1598_v8 = vmul.f32 0.044715, %v1590_v57  ;;  %v1583_v7 = vmul.f32 %v7468_v16, %v7468_v16  ;;  %v4727_v28 = vadd.f32 %v4726_v53, %v4725_v18  ;;  %5431 = vmatprep.subr.mxu1 %v7311_v38 }
 0x2a6   : > { %v4728_v55 = vpop.f32.mrf.mxu0  ;;  %5432 = vmatpush3.msra.mxu1 %v7311_v38  ;;  %v1320_v19 = vmul.f32 %v1312_v62, %v7407_v23  ;;  %v1305_v3 = vadd.f32 1.0, %v5986_v29 }
 0x2a7   : > { %5993 = vtanh.f32 %v1613_v63  ;;  %v1591_v24 = vmul.f32 %v1583_v7, %v7468_v16  ;;  %v7479_v9 = vadd.f32 %v4727_v28, %v7378_v50  ;;  %5433 = vmatprep.subr.mxu1 %v7317_v39  ;;  %v1606_v49 = vadd.f32 %v1598_v8, %v7455_v31 }
 0x2a8   : > { %5415 = vmatprep.mubr.f32.mxu1 %v1320_v19  ;;  %v4729_v51 = vpop.f32.mrf.mxu0  ;;  %5434 = vmatpush3.msra.mxu1 %v7317_v39  ;;  %v1313_v52 = vmul.f32 0.5, %v1305_v3 }
 0x2a9   : > { %v5988_v11 = vpop.eup %5987  ;;  %v1599_v30 = vmul.f32 0.044715, %v1591_v24  ;;  %v1584_v23 = vmul.f32 %v7479_v9, %v7479_v9  ;;  %v4730_v32 = vadd.f32 %v4729_v51, %v4728_v55  ;;  %5435 = vmatprep.subr.mxu1 %v7323_v40  ;;  %v1614_v18 = vmul.f32 0.7978846, %v1606_v49 }
 0x2aa   : > { %v4731_v10 = vpop.f32.mrf.mxu0  ;;  %5436 = vmatpush3.msra.mxu1 %v7323_v40  ;;  %v1321_v15 = vmul.f32 %v1313_v52, %v7414_v17  ;;  %v1306_v58 = vadd.f32 1.0, %v5988_v11 }
 0x2ab   : > { %v1592_v57 = vmul.f32 %v1584_v23, %v7479_v9  ;;  %v7491_v53 = vadd.f32 %v4730_v32, %v7378_v50  ;;  %5437 = vmatprep.subr.mxu1 %v7327_v41  ;;  %5995 = vtanh.f32 %v1614_v18  ;;  %v1607_v62 = vadd.f32 %v1599_v30, %v7468_v16 }
 0x2ac   : > { %5416 = vmatmul.mubr.f32.gmra.mxu1 %v1321_v15  ;;  %v4732_v29 = vpop.f32.mrf.mxu0  ;;  %v1314_v63 = vmul.f32 0.5, %v1306_v58 }
 0x2ad   : > { %v5990_v8 = vpop.eup %5989  ;;  %v1600_v7 = vmul.f32 0.044715, %v1592_v57  ;;  %v1585_v28 = vmul.f32 %v7491_v53, %v7491_v53  ;;  %v4733_v17 = vadd.f32 %v4732_v29, %v4731_v10  ;;  %5438 = vmatpush3.msra.mxu1 %v7327_v41  ;;  %v1615_v55 = vmul.f32 0.7978846, %v1607_v62 }
 0x2ae   : > { %5439 = vmatprep.subr.mxu1 %v7333_v42  ;;  %v4734_v19 = vpop.f32.mrf.mxu0  ;;  %v1322_v3 = vmul.f32 %v1314_v63, %v7421_v2  ;;  %v1307_v24 = vadd.f32 1.0, %v5990_v8 }
 0x2af   : > { %v1608_v49 = vadd.f32 %v1600_v7, %v7479_v9  ;;  %v1593_v51 = vmul.f32 %v1585_v28, %v7491_v53  ;;  %v7503_v52 = vadd.f32 %v4733_v17, %v7378_v50  ;;  %5440 = vmatpush3.msra.mxu1 %v7333_v42  ;;  %5997 = vtanh.f32 %v1615_v55 }
 0x2b0   : > { %5418 = vmatprep.mubr.f32.mxu1 %v1322_v3  ;;  %5441 = vmatprep.subr.mxu1 %v7337_v43  ;;  %v4735_v11 = vpop.f32.mrf.mxu0  ;;  %v1315_v30 = vmul.f32 0.5, %v1307_v24 }
 0x2b1   : > { %v5992_v23 = vpop.eup %5991  ;;  %v1601_v32 = vmul.f32 0.044715, %v1593_v51  ;;  %v1586_v2 = vmul.f32 %v7503_v52, %v7503_v52  ;;  %v4736_v18 = vadd.f32 %v4735_v11, %v4734_v19  ;;  %5442 = vmatpush3.msra.mxu1 %v7337_v43  ;;  %v1616_v10 = vmul.f32 0.7978846, %v1608_v49 }
 0x2b2   : > { %5443 = vmatprep.subr.mxu1 %v7343_v44  ;;  %v4793_v15 = vpop.f32.mrf.mxu0  ;;  %v1323_v58 = vmul.f32 %v1315_v30, %v7428_v56  ;;  %v1628_v57 = vadd.f32 1.0, %v5992_v23 }
 0x2b3   : > { %v1609_v62 = vadd.f32 %v1601_v32, %v7491_v53  ;;  %v1594_v29 = vmul.f32 %v1586_v2, %v7503_v52  ;;  %v7515_v63 = vadd.f32 %v4736_v18, %v7378_v50  ;;  %5444 = vmatpush3.msra.mxu1 %v7343_v44  ;;  %5999 = vtanh.f32 %v1616_v10 }
 0x2b4   : > { %v5994_v8 = vpop.eup %5993  ;;  %5419 = vmatmul.mubr.f32.gmra.mxu1 %v1323_v58  ;;  %5445 = vmatprep.subr.mxu1 %v7347_v45  ;;  %v4794_v7 = vpop.f32.mrf.mxu0  ;;  %v1636_v28 = vmul.f32 0.5, %v1628_v57 }
 0x2b5   : > { %v1629_v17 = vadd.f32 1.0, %v5994_v8  ;;  %v1602_v55 = vmul.f32 0.044715, %v1594_v29  ;;  %v1587_v56 = vmul.f32 %v7515_v63, %v7515_v63  ;;  %5446 = vmatpush3.msra.mxu1 %v7347_v45  ;;  %v4795_v19 = vadd.f32 %v4794_v7, %v4793_v15 }
 0x2b6   : > { %5447 = vmatprep.subr.mxu1 %v7353_v46  ;;  %v4796_v3 = vpop.f32.mrf.mxu0  ;;  %v1644_v24 = vmul.f32 %v1636_v28, %v7436_v25  ;;  %v1617_v49 = vmul.f32 0.7978846, %v1609_v62 }
 0x2b7   : > { %v1637_v51 = vmul.f32 0.5, %v1629_v17  ;;  %v1610_v11 = vadd.f32 %v1602_v55, %v7503_v52  ;;  %v1595_v30 = vmul.f32 %v1587_v56, %v7515_v63  ;;  %v7527_v23 = vadd.f32 %v4795_v19, %v7378_v50  ;;  %5448 = vmatpush3.msra.mxu1 %v7353_v46 }
 0x2b8   : > { %v5996_v32 = vpop.eup %5995  ;;  %5449 = vmatprep.subr.mxu1 %v7357_v47  ;;  %5453 = vmatprep.mubr.f32.mxu1 %v1644_v24  ;;  %v4797_v2 = vpop.f32.mrf.mxu0  ;;  %6001 = vtanh.f32 %v1617_v49 }
 0x2b9   : > { %v1645_v18 = vmul.f32 %v1637_v51, %v7444_v27  ;;  %v1603_v25 = vmul.f32 0.044715, %v1595_v30  ;;  %v1936_v10 = vmul.f32 %v7527_v23, %v7527_v23  ;;  %5450 = vmatpush3.msra.mxu1 %v7357_v47  ;;  %v4798_v15 = vadd.f32 %v4797_v2, %v4796_v3 }
 0x2ba   : > { %5451 = vmatprep.subr.mxu1 %v7363_v48  ;;  %v4799_v58 = vpop.f32.mrf.mxu0  ;;  %v1630_v57 = vadd.f32 1.0, %v5996_v32  ;;  %v1618_v62 = vmul.f32 0.7978846, %v1610_v11 }
 0x2bb   : > { %v1611_v29 = vadd.f32 %v1603_v25, %v7515_v63  ;;  %v1944_v8 = vmul.f32 %v1936_v10, %v7527_v23  ;;  %v7539_v7 = vadd.f32 %v4798_v15, %v7378_v50  ;;  %5452 = vmatpush3.msra.mxu1 %v7363_v48 }
 0x2bc   : > { %v5998_v27 = vpop.eup %5997  ;;  %5454 = vmatmul.mubr.f32.vlgmr.msra.gmra.mxu1 %v1645_v18  ;;  %5465 = vmatprep.subr.mxu1 %v7267_v33  ;;  %v4800_v28 = vpop.f32.mrf.mxu0  ;;  %v1638_v17 = vmul.f32 0.5, %v1630_v57  ;;  %6003 = vtanh.f32 %v1618_v62 }
 0x2bd   : > { %v1952_v55 = vmul.f32 0.044715, %v1944_v8  ;;  %v1937_v56 = vmul.f32 %v7539_v7, %v7539_v7  ;;  %v4801_v19 = vadd.f32 %v4800_v28, %v4799_v58  ;;  %5466 = vmatpush3.msra.mxu1 %v7267_v33  ;;  %v1631_v3 = vadd.f32 1.0, %v5998_v27 }
 0x2be   : > { %5467 = vmatprep.subr.mxu1 %v7275_v34  ;;  %v4802_v24 = vpop.f32.mrf.mxu0  ;;  %v1646_v49 = vmul.f32 %v1638_v17, %v7455_v31  ;;  %v1619_v51 = vmul.f32 0.7978846, %v1611_v29 }
 0x2bf   : > { %v1960_v11 = vadd.f32 %v1952_v55, %v7527_v23  ;;  %v1945_v30 = vmul.f32 %v1937_v56, %v7539_v7  ;;  %v7551_v32 = vadd.f32 %v4801_v19, %v7378_v50  ;;  %5468 = vmatpush3.msra.mxu1 %v7275_v34  ;;  %v1639_v2 = vmul.f32 0.5, %v1631_v3 }
 0x2c0   : > { %v6000_v18 = vpop.eup %5999  ;;  %5456 = vmatprep.mubr.f32.mxu1 %v1646_v49  ;;  %5469 = vmatprep.subr.mxu1 %v7285_v35  ;;  %v4803_v25 = vpop.f32.mrf.mxu0  ;;  %6005 = vtanh.f32 %v1619_v51 }
 0x2c1   : > { %v1953_v10 = vmul.f32 0.044715, %v1945_v30  ;;  %v1938_v31 = vmul.f32 %v7551_v32, %v7551_v32  ;;  %v4804_v15 = vadd.f32 %v4803_v25, %v4802_v24  ;;  %5470 = vmatpush3.msra.mxu1 %v7285_v35  ;;  %v1647_v58 = vmul.f32 %v1639_v2, %v7468_v16 }
 0x2c2   : > { %5471 = vmatprep.subr.mxu1 %v7295_v36  ;;  %v4805_v57 = vpop.f32.mrf.mxu0  ;;  %v1632_v62 = vadd.f32 1.0, %v6000_v18  ;;  %v1968_v29 = vmul.f32 0.7978846, %v1960_v11 }
 0x2c3   : > { %v1961_v8 = vadd.f32 %v1953_v10, %v7539_v7  ;;  %v1946_v27 = vmul.f32 %v1938_v31, %v7551_v32  ;;  %v7563_v28 = vadd.f32 %v4804_v15, %v7378_v50  ;;  %5472 = vmatpush3.msra.mxu1 %v7295_v36 }
 0x2c4   : > { %5457 = vmatmul.mubr.f32.gmra.mxu1 %v1647_v58  ;;  %5473 = vmatprep.subr.mxu1 %v7305_v37  ;;  %v4806_v17 = vpop.f32.mrf.mxu0  ;;  %v1640_v55 = vmul.f32 0.5, %v1632_v62  ;;  %6007 = vtanh.f32 %v1968_v29 }
 0x2c5   : > { %v6002_v16 = vpop.eup %6001  ;;  %v1969_v56 = vmul.f32 0.7978846, %v1961_v8  ;;  %v1954_v19 = vmul.f32 0.044715, %v1946_v27  ;;  %v1939_v3 = vmul.f32 %v7563_v28, %v7563_v28  ;;  %v4807_v24 = vadd.f32 %v4806_v17, %v4805_v57  ;;  %5474 = vmatpush3.msra.mxu1 %v7305_v37 }
 0x2c6   : > { %5475 = vmatprep.subr.mxu1 %v7311_v38  ;;  %v4808_v49 = vpop.f32.mrf.mxu0  ;;  %v1648_v51 = vmul.f32 %v1640_v55, %v7479_v9  ;;  %v1633_v11 = vadd.f32 1.0, %v6002_v16 }
 0x2c7   : > { %6009 = vtanh.f32 %v1969_v56  ;;  %v1962_v30 = vadd.f32 %v1954_v19, %v7551_v32  ;;  %v1947_v2 = vmul.f32 %v1939_v3, %v7563_v28  ;;  %v7575_v18 = vadd.f32 %v4807_v24, %v7378_v50  ;;  %5476 = vmatpush3.msra.mxu1 %v7311_v38 }
 0x2c8   : > { %5459 = vmatprep.mubr.f32.mxu1 %v1648_v51  ;;  %5477 = vmatprep.subr.mxu1 %v7317_v39  ;;  %v4809_v25 = vpop.f32.mrf.mxu0  ;;  %v1641_v10 = vmul.f32 0.5, %v1633_v11 }
 0x2c9   : > { %v6004_v31 = vpop.eup %6003  ;;  %v1955_v15 = vmul.f32 0.044715, %v1947_v2  ;;  %v1940_v9 = vmul.f32 %v7575_v18, %v7575_v18  ;;  %v4810_v58 = vadd.f32 %v4809_v25, %v4808_v49  ;;  %5478 = vmatpush3.msra.mxu1 %v7317_v39  ;;  %v1970_v57 = vmul.f32 0.7978846, %v1962_v30 }
 0x2ca   : > { %5479 = vmatprep.subr.mxu1 %v7323_v40  ;;  %v4811_v62 = vpop.f32.mrf.mxu0  ;;  %v1649_v29 = vmul.f32 %v1641_v10, %v7491_v53  ;;  %v1634_v8 = vadd.f32 1.0, %v6004_v31 }
 0x2cb   : > { %v1963_v27 = vadd.f32 %v1955_v15, %v7563_v28  ;;  %v1948_v17 = vmul.f32 %v1940_v9, %v7575_v18  ;;  %v7587_v55 = vadd.f32 %v4810_v58, %v7378_v50  ;;  %5480 = vmatpush3.msra.mxu1 %v7323_v40  ;;  %6011 = vtanh.f32 %v1970_v57 }
 0x2cc   : > { %5460 = vmatmul.mubr.f32.gmra.mxu1 %v1649_v29  ;;  %5481 = vmatprep.subr.mxu1 %v7327_v41  ;;  %v4812_v16 = vpop.f32.mrf.mxu0  ;;  %v1642_v56 = vmul.f32 0.5, %v1634_v8 }
 0x2cd   : > { %v6006_v19 = vpop.eup %6005  ;;  %v1956_v3 = vmul.f32 0.044715, %v1948_v17  ;;  %v1941_v53 = vmul.f32 %v7587_v55, %v7587_v55  ;;  %v4813_v24 = vadd.f32 %v4812_v16, %v4811_v62  ;;  %5482 = vmatpush3.msra.mxu1 %v7327_v41  ;;  %v1971_v49 = vmul.f32 0.7978846, %v1963_v27 }
 0x2ce   : > { %5483 = vmatprep.subr.mxu1 %v7333_v42  ;;  %v4814_v51 = vpop.f32.mrf.mxu0  ;;  %v1650_v40 = vmul.f32 %v1642_v56, %v7503_v52  ;;  %v1635_v11 = vadd.f32 1.0, %v6006_v19 }
 0x2cf   : > { %v1964_v30 = vadd.f32 %v1956_v3, %v7575_v18  ;;  %v1949_v2 = vmul.f32 %v1941_v53, %v7587_v55  ;;  %v7599_v25 = vadd.f32 %v4813_v24, %v7378_v50  ;;  %5484 = vmatpush3.msra.mxu1 %v7333_v42  ;;  %6013 = vtanh.f32 %v1971_v49 }
 0x2d0   : > { %5462 = vmatprep.mubr.f32.mxu1 %v1650_v40  ;;  %5485 = vmatprep.subr.mxu1 %v7337_v43  ;;  %v4815_v41 = vpop.f32.mrf.mxu0  ;;  %v1643_v10 = vmul.f32 0.5, %v1635_v11 }
 0x2d1   : > { %v6008_v31 = vpop.eup %6007  ;;  %v1957_v15 = vmul.f32 0.044715, %v1949_v2  ;;  %v1942_v52 = vmul.f32 %v7599_v25, %v7599_v25  ;;  %v4816_v9 = vadd.f32 %v4815_v41, %v4814_v51  ;;  %5486 = vmatpush3.msra.mxu1 %v7337_v43  ;;  %v1972_v58 = vmul.f32 0.7978846, %v1964_v30 }
 0x2d2   : > { %5487 = vmatprep.subr.mxu1 %v7343_v44  ;;  %v4873_v57 = vpop.f32.mrf.mxu0  ;;  %v1651_v42 = vmul.f32 %v1643_v10, %v7515_v63  ;;  %v1984_v62 = vadd.f32 1.0, %v6008_v31 }
 0x2d3   : > { %v1965_v29 = vadd.f32 %v1957_v15, %v7587_v55  ;;  %v1950_v8 = vmul.f32 %v1942_v52, %v7599_v25  ;;  %v7611_v27 = vadd.f32 %v4816_v9, %v7378_v50  ;;  %5488 = vmatpush3.msra.mxu1 %v7343_v44  ;;  %6015 = vtanh.f32 %v1972_v58 }
 0x2d4   : > { %v6010_v17 = vpop.eup %6009  ;;  %5463 = vmatmul.mubr.f32.gmra.mxu1 %v1651_v42  ;;  %5489 = vmatprep.subr.mxu1 %v7347_v45  ;;  %v4874_v43 = vpop.f32.mrf.mxu0  ;;  %v1992_v16 = vmul.f32 0.5, %v1984_v62 }
 0x2d5   : > { %v1985_v56 = vadd.f32 1.0, %v6010_v17  ;;  %v1958_v19 = vmul.f32 0.044715, %v1950_v8  ;;  %v1943_v63 = vmul.f32 %v7611_v27, %v7611_v27  ;;  %5490 = vmatpush3.msra.mxu1 %v7347_v45  ;;  %v4875_v3 = vadd.f32 %v4874_v43, %v4873_v57 }
 0x2d6   : > { %5491 = vmatprep.subr.mxu1 %v7353_v46  ;;  %v4876_v53 = vpop.f32.mrf.mxu0  ;;  %v2000_v44 = vmul.f32 %v1992_v16, %v7527_v23  ;;  %v1973_v24 = vmul.f32 0.7978846, %v1965_v29 }
 0x2d7   : > { %v1993_v49 = vmul.f32 0.5, %v1985_v56  ;;  %v1966_v51 = vadd.f32 %v1958_v19, %v7599_v25  ;;  %v1951_v40 = vmul.f32 %v1943_v63, %v7611_v27  ;;  %v7623_v11 = vadd.f32 %v4875_v3, %v7378_v50  ;;  %5492 = vmatpush3.msra.mxu1 %v7353_v46 }
 0x2d8   : > { %v6012_v30 = vpop.eup %6011  ;;  %5493 = vmatprep.subr.mxu1 %v7357_v47  ;;  %5497 = vmatprep.mubr.f32.mxu1 %v2000_v44  ;;  %v4877_v45 = vpop.f32.mrf.mxu0  ;;  %6017 = vtanh.f32 %v1973_v24 }
 0x2d9   : > { %v2001_v2 = vmul.f32 %v1993_v49, %v7539_v7  ;;  %v1959_v23 = vmul.f32 0.044715, %v1951_v40  ;;  %v2234_v41 = vmul.f32 %v7623_v11, %v7623_v11  ;;  %5494 = vmatpush3.msra.mxu1 %v7357_v47  ;;  %v4878_v10 = vadd.f32 %v4877_v45, %v4876_v53 }
 0x2da   : > { %5495 = vmatprep.subr.mxu1 %v7363_v48  ;;  %v4879_v31 = vpop.f32.mrf.mxu0  ;;  %v1986_v15 = vadd.f32 1.0, %v6012_v30  ;;  %v1974_v46 = vmul.f32 0.7978846, %v1966_v51 }
 0x2db   : > { %v1967_v52 = vadd.f32 %v1959_v23, %v7611_v27  ;;  %v2242_v9 = vmul.f32 %v2234_v41, %v7623_v11  ;;  %v7635_v58 = vadd.f32 %v4878_v10, %v7378_v50  ;;  %5496 = vmatpush3.msra.mxu1 %v7363_v48 }
 0x2dc   : > { %v6014_v7 = vpop.eup %6013  ;;  %5498 = vmatmul.mubr.f32.vlgmr.msra.gmra.mxu1 %v2001_v2  ;;  %5509 = vmatprep.subr.mxu1 %v7267_v33  ;;  %v4880_v47 = vpop.f32.mrf.mxu0  ;;  %v1994_v57 = vmul.f32 0.5, %v1986_v15  ;;  %6019 = vtanh.f32 %v1974_v46 }
 0x2dd   : > { %v2250_v42 = vmul.f32 0.044715, %v2242_v9  ;;  %v2235_v62 = vmul.f32 %v7635_v58, %v7635_v58  ;;  %v4881_v29 = vadd.f32 %v4880_v47, %v4879_v31  ;;  %5510 = vmatpush3.msra.mxu1 %v7267_v33  ;;  %v1987_v8 = vadd.f32 1.0, %v6014_v7  ;;  %v6135_v47 = vld [vmem:[#allocation13 + $0x50] sm:$0xff] }
 0x2de   : > { %5511 = vmatprep.subr.mxu1 %v7275_v34  ;;  %v4882_v17 = vpop.f32.mrf.mxu0  ;;  %v2002_v48 = vmul.f32 %v1994_v57, %v7551_v32  ;;  %v1975_v43 = vmul.f32 0.7978846, %v1967_v52 }
 0x2df   : > { %v2258_v16 = vadd.f32 %v2250_v42, %v7623_v11  ;;  %v2243_v56 = vmul.f32 %v2235_v62, %v7635_v58  ;;  %v7647_v19 = vadd.f32 %v4881_v29, %v7378_v50  ;;  %5512 = vmatpush3.msra.mxu1 %v7275_v34  ;;  %v1995_v63 = vmul.f32 0.5, %v1987_v8  ;;  %v6136_v29 = vld [vmem:[#allocation13 + $0x48] sm:$0xff] }
 0x2e0   : > { %v6016_v3 = vpop.eup %6015  ;;  %5500 = vmatprep.mubr.f32.mxu1 %v2002_v48  ;;  %5513 = vmatprep.subr.mxu1 %v7285_v35  ;;  %v4883_v33 = vpop.f32.mrf.mxu0  ;;  %6021 = vtanh.f32 %v1975_v43 }
 0x2e1   : > { %v2251_v53 = vmul.f32 0.044715, %v2243_v56  ;;  %v2236_v32 = vmul.f32 %v7647_v19, %v7647_v19  ;;  %v4884_v44 = vadd.f32 %v4883_v33, %v4882_v17  ;;  %5514 = vmatpush3.msra.mxu1 %v7285_v35  ;;  %v2003_v24 = vmul.f32 %v1995_v63, %v7563_v28  ;;  %v6137_v17 = vld [vmem:[#allocation13 + $0x40] sm:$0xff] }
 0x2e2   : > { %5515 = vmatprep.subr.mxu1 %v7295_v36  ;;  %v4885_v49 = vpop.f32.mrf.mxu0  ;;  %v1988_v34 = vadd.f32 1.0, %v6016_v3  ;;  %v2266_v51 = vmul.f32 0.7978846, %v2258_v16  ;;  %v6138_v3 = vld [vmem:[#allocation13 + $0x38] sm:$0xff] }
 0x2e3   : > { %v2259_v40 = vadd.f32 %v2251_v53, %v7635_v58  ;;  %v2244_v30 = vmul.f32 %v2236_v32, %v7647_v19  ;;  %v7659_v45 = vadd.f32 %v4884_v44, %v7378_v50  ;;  %5516 = vmatpush3.msra.mxu1 %v7295_v36 }
 0x2e4   : > { %5501 = vmatmul.mubr.f32.gmra.mxu1 %v2003_v24  ;;  %5517 = vmatprep.subr.mxu1 %v7305_v37  ;;  %v4886_v35 = vpop.f32.mrf.mxu0  ;;  %v1996_v2 = vmul.f32 0.5, %v1988_v34  ;;  %6023 = vtanh.f32 %v2266_v51  ;;  %v6139_v34 = vld [vmem:[#allocation13 + $0x30] sm:$0xff] }
 0x2e5   : > { %v6018_v28 = vpop.eup %6017  ;;  %v2267_v23 = vmul.f32 0.7978846, %v2259_v40  ;;  %v2252_v41 = vmul.f32 0.044715, %v2244_v30  ;;  %v2237_v10 = vmul.f32 %v7659_v45, %v7659_v45  ;;  %v4887_v31 = vadd.f32 %v4886_v35, %v4885_v49  ;;  %5518 = vmatpush3.msra.mxu1 %v7305_v37 }
 0x2e6   : > { %5519 = vmatprep.subr.mxu1 %v7311_v38  ;;  %v4888_v15 = vpop.f32.mrf.mxu0  ;;  %v2004_v36 = vmul.f32 %v1996_v2, %v7575_v18  ;;  %v1989_v46 = vadd.f32 1.0, %v6018_v28 }
 0x2e7   : > { %6025 = vtanh.f32 %v2267_v23  ;;  %v2260_v52 = vadd.f32 %v2252_v41, %v7647_v19  ;;  %v2245_v9 = vmul.f32 %v2237_v10, %v7659_v45  ;;  %v7671_v7 = vadd.f32 %v4887_v31, %v7378_v50  ;;  %5520 = vmatpush3.msra.mxu1 %v6135_v47  ;;  %v6140_v23 = vld [vmem:[#allocation13 + $0x28] sm:$0xff] }
 0x2e8   : > { %5503 = vmatprep.mubr.f32.mxu1 %v2004_v36  ;;  %5521 = vmatprep.subr.mxu1 %v7317_v39  ;;  %v4889_v37 = vpop.f32.mrf.mxu0  ;;  %v1997_v57 = vmul.f32 0.5, %v1989_v46 }
 0x2e9   : > { %v6020_v38 = vpop.eup %6019  ;;  %v2253_v42 = vmul.f32 0.044715, %v2245_v9  ;;  %v2238_v18 = vmul.f32 %v7671_v7, %v7671_v7  ;;  %v4890_v62 = vadd.f32 %v4889_v37, %v4888_v15  ;;  %5522 = vmatpush3.msra.mxu1 %v6136_v29  ;;  %v2268_v8 = vmul.f32 0.7978846, %v2260_v52  ;;  %v6141_v52 = vld [vmem:[#allocation13 + $0x20] sm:$0xff] }
 0x2ea   : > { %5523 = vmatprep.subr.mxu1 %v6137_v17  ;;  %v4891_v48 = vpop.f32.mrf.mxu0  ;;  %v2005_v43 = vmul.f32 %v1997_v57, %v7587_v55  ;;  %v1990_v16 = vadd.f32 1.0, %v6020_v38  ;;  %v6142_v57 = vld [vmem:[%s8909_s7] ss:$0 sm:$0xff] }
 0x2eb   : > { %v2261_v56 = vadd.f32 %v2253_v42, %v7659_v45  ;;  %v2246_v39 = vmul.f32 %v2238_v18, %v7671_v7  ;;  %v7680_v63 = vadd.f32 %v4890_v62, %v7378_v50  ;;  %5524 = vmatpush3.msra.mxu1 %v6137_v17  ;;  %6027 = vtanh.f32 %v2268_v8  ;;  %v6143_v18 = vld [vmem:[#allocation13 + $0x18] sm:$0xff] }
 0x2ec   : > { %5504 = vmatmul.mubr.f32.gmra.mxu1 %v2005_v43  ;;  %5525 = vmatprep.subr.mxu1 %v6138_v3  ;;  %v4892_v33 = vpop.f32.mrf.mxu0  ;;  %v1998_v53 = vmul.f32 0.5, %v1990_v16 }
 0x2ed   : > { %v6022_v32 = vpop.eup %6021  ;;  %v2254_v44 = vmul.f32 0.044715, %v2246_v39  ;;  %v2239_v55 = vmul.f32 %v7680_v63, %v7680_v63  ;;  %v4893_v24 = vadd.f32 %v4892_v33, %v4891_v48  ;;  %5526 = vmatpush3.msra.mxu1 %v6138_v3  ;;  %v2269_v49 = vmul.f32 0.7978846, %v2261_v56  ;;  %v6144_v48 = vld [vmem:[#allocation13 + $0x10] sm:$0xff]  ;;  %v6145_v33 = vld [vmem:[#allocation13 + $0x8] sm:$0xff] }
 0x2ee   : > { %5527 = vmatprep.subr.mxu1 %v6139_v34  ;;  %v4894_v51 = vpop.f32.mrf.mxu0  ;;  %v2006_v40 = vmul.f32 %v1998_v53, %v7599_v25  ;;  %v1991_v30 = vadd.f32 1.0, %v6022_v32 }
 0x2ef   : > { %v2262_v35 = vadd.f32 %v2254_v44, %v7671_v7  ;;  %v2247_v2 = vmul.f32 %v2239_v55, %v7680_v63  ;;  %v7688_v28 = vadd.f32 %v4893_v24, %v7378_v50  ;;  %5528 = vmatpush3.msra.mxu1 %v6139_v34  ;;  %6029 = vtanh.f32 %v2269_v49  ;;  %v6146_v24 = vld [vmem:[#allocation13] sm:$0xff] }
 0x2f0   : > { %5506 = vmatprep.mubr.f32.mxu1 %v2006_v40  ;;  %5529 = vmatprep.subr.mxu1 %v6140_v23  ;;  %v4895_v41 = vpop.f32.mrf.mxu0  ;;  %v1999_v10 = vmul.f32 0.5, %v1991_v30 }
 0x2f1   : > { %v6024_v31 = vpop.eup %6023  ;;  %v2255_v15 = vmul.f32 0.044715, %v2247_v2  ;;  %v2240_v25 = vmul.f32 %v7688_v28, %v7688_v28  ;;  %v4896_v36 = vadd.f32 %v4895_v41, %v4894_v51  ;;  %5530 = vmatpush3.msra.mxu1 %v6140_v23  ;;  %v2270_v46 = vmul.f32 0.7978846, %v2262_v35 }
 0x2f2   : > { %5531 = vmatprep.subr.mxu1 %v6141_v52  ;;  %v2007_v50 = vmul.f32 %v1999_v10, %v7611_v27  ;;  %v2282_v9 = vadd.f32 1.0, %v6024_v31 }
 0x2f3   : > { %v2263_v47 = vadd.f32 %v2255_v15, %v7680_v63  ;;  %v2248_v37 = vmul.f32 %v2240_v25, %v7688_v28  ;;  %v7698_v38 = vadd.f32 %v6142_v57, %v4896_v36  ;;  %5532 = vmatpush3.msra.mxu1 %v6141_v52  ;;  %6031 = vtanh.f32 %v2270_v46  ;;  %v2443_v25 = vld [vmem:[#allocation10 + $0xf8] sm:$0xff]  ;;  %v2442_v46 = vld [vmem:[#allocation10 + $0xf0] sm:$0xff] }
 0x2f4   : > { %v6026_v42 = vpop.eup %6025  ;;  %5507 = vmatmul.mubr.f32.gmra.mxu1 %v2007_v50  ;;  %5533 = vmatprep.subr.mxu1 %v6143_v18  ;;  %v2290_v62 = vmul.f32 0.5, %v2282_v9 }
 0x2f5   : > { %v2283_v29 = vadd.f32 1.0, %v6026_v42  ;;  %v2256_v27 = vmul.f32 0.044715, %v2248_v37  ;;  %v2241_v8 = vmul.f32 %v7698_v38, %v7698_v38  ;;  %5534 = vmatpush3.msra.mxu1 %v6143_v18  ;;  %v2271_v17 = vmul.f32 0.7978846, %v2263_v47  ;;  %5553 = vmatprep.subr.mxu0 %v2443_v25  ;;  %v2440_v47 = vld [vmem:[#allocation10 + $0xe0] sm:$0xff] }
 0x2f6   : > { %5535 = vmatprep.subr.mxu1 %v6144_v48  ;;  %v2298_v43 = vmul.f32 %v2290_v62, %v7623_v11  ;;  %5554 = vmatpush3.msra.mxu0 %v2443_v25  ;;  %v2438_v18 = vld [vmem:[#allocation10 + $0xd0] sm:$0xff] }
 0x2f7   : > { %v2291_v16 = vmul.f32 0.5, %v2283_v29  ;;  %v2264_v56 = vadd.f32 %v2256_v27, %v7688_v28  ;;  %v2249_v39 = vmul.f32 %v2241_v8, %v7698_v38  ;;  %5536 = vmatpush3.msra.mxu1 %v6144_v48  ;;  %6033 = vtanh.f32 %v2271_v17  ;;  %5555 = vmatprep.subr.mxu0 %v2442_v46  ;;  %v2437_v29 = vld [vmem:[#allocation10 + $0xc8] sm:$0xff]  ;;  %v2435_v27 = vld [vmem:[#allocation10 + $0xb8] sm:$0xff]  ;;  %v2434_v8 = vld [vmem:[#allocation10 + $0xb0] sm:$0xff] }
 0x2f8   : > { %v6028_v3 = vpop.eup %6027  ;;  %5537 = vmatprep.subr.mxu1 %v6145_v33  ;;  %5541 = vmatprep.mubr.f32.mxu1 %v2298_v43  ;;  %v2432_v17 = vld [vmem:[#allocation10 + $0xa0] sm:$0xff]  ;;  %v2431_v48 = vld [vmem:[#allocation10 + $0x98] sm:$0xff]  ;;  %v2430_v43 = vld [vmem:[#allocation10 + $0x90] sm:$0xff] }
 0x2f9   : > { %v2299_v53 = vmul.f32 %v2291_v16, %v7635_v58  ;;  %v2257_v32 = vmul.f32 0.044715, %v2249_v39  ;;  %5538 = vmatpush3.msra.mxu1 %v6145_v33  ;;  %v2284_v44 = vadd.f32 1.0, %v6028_v3  ;;  %v2272_v55 = vmul.f32 0.7978846, %v2264_v56  ;;  %5556 = vmatpush3.msra.mxu0 %v2442_v46  ;;  %v2429_v16 = vld [vmem:[#allocation10 + $0x88] sm:$0xff] }
 0x2fa   : > { %5539 = vmatprep.subr.mxu1 %v6146_v24  ;;  %v2428_v56 = vld [vmem:[#allocation10 + $0x80] sm:$0xff] }
 0x2fb   : > { %v2265_v11 = vadd.f32 %v2257_v32, %v7698_v38  ;;  %5540 = vmatpush3.msra.mxu1 %v6146_v24  ;;  %v2292_v49 = vmul.f32 0.5, %v2284_v44  ;;  %6035 = vtanh.f32 %v2272_v55  ;;  %v7718_v44 = vld [vmem:[%s8911_s9] ss:$0 sm:$0xff] }
 0x2fc   : > { %v6030_v34 = vpop.eup %6029  ;;  %5542 = vmatmul.mubr.f32.vlgmr.msra.gmra.mxu1 %v2299_v53  ;;  %5597 = vmatprep.subr.mxu1 %v2443_v25 }
 0x2fd   : > { %v2300_v51 = vmul.f32 %v2292_v49, %v7647_v19  ;;  %v2285_v40 = vadd.f32 1.0, %v6030_v34  ;;  %v2273_v30 = vmul.f32 0.7978846, %v2265_v11  ;;  %5598 = vmatpush3.msra.mxu1 %v2443_v25 }
 0x2fe   : > { %5599 = vmatprep.subr.mxu1 %v2442_v46 }
 0x2ff   : > { %5544 = vmatprep.mubr.f32.mxu1 %v2300_v51  ;;  %v2293_v35 = vmul.f32 0.5, %v2285_v40  ;;  %6037 = vtanh.f32 %v2273_v30  ;;  %5600 = vmatpush3.msra.mxu1 %v2442_v46 }
 0x300   : > { %v6032_v58 = vpop.eup %6031 }
 0x301   : > { %v2301_v2 = vmul.f32 %v2293_v35, %v7659_v45  ;;  %v2286_v23 = vadd.f32 1.0, %v6032_v58  ;;  %v2441_v45 = vld [vmem:[#allocation10 + $0xe8] sm:$0xff] }
 0x302   : > { %5557 = vmatprep.subr.mxu0 %v2441_v45  ;;  %5601 = vmatprep.subr.mxu1 %v2441_v45 }
 0x303   : > { %5545 = vmatmul.mubr.f32.gmra.mxu1 %v2301_v2  ;;  %v2294_v41 = vmul.f32 0.5, %v2286_v23  ;;  %5558 = vmatpush3.msra.mxu0 %v2441_v45 }
 0x304   : > { %v6034_v10 = vpop.eup %6033  ;;  %5559 = vmatprep.subr.mxu0 %v2440_v47  ;;  %5602 = vmatpush3.msra.mxu1 %v2441_v45 }
 0x305   : > { %v2302_v31 = vmul.f32 %v2294_v41, %v7671_v7  ;;  %v2287_v15 = vadd.f32 1.0, %v6034_v10  ;;  %5560 = vmatpush3.msra.mxu0 %v2440_v47  ;;  %5603 = vmatprep.subr.mxu1 %v2440_v47 }
 0x306   : > { %5604 = vmatpush3.msra.mxu1 %v2440_v47 }
 0x307   : > { %5547 = vmatprep.mubr.f32.mxu1 %v2302_v31  ;;  %v2295_v36 = vmul.f32 0.5, %v2287_v15 }
 0x308   : > { %v6036_v19 = vpop.eup %6035 }
 0x309   : > { %v2303_v52 = vmul.f32 %v2295_v36, %v7680_v63  ;;  %v2288_v50 = vadd.f32 1.0, %v6036_v19  ;;  %v2439_v63 = vld [vmem:[#allocation10 + $0xd8] sm:$0xff] }
 0x30a   : > { %5561 = vmatprep.subr.mxu0 %v2439_v63  ;;  %5605 = vmatprep.subr.mxu1 %v2439_v63 }
 0x30b   : > { %5548 = vmatmul.mubr.f32.gmra.mxu1 %v2303_v52  ;;  %v2296_v9 = vmul.f32 0.5, %v2288_v50  ;;  %5562 = vmatpush3.msra.mxu0 %v2439_v63 }
 0x30c   : > { %v6038_v7 = vpop.eup %6037  ;;  %5563 = vmatprep.subr.mxu0 %v2438_v18  ;;  %5606 = vmatpush3.msra.mxu1 %v2439_v63 }
 0x30d   : > { %v2304_v37 = vmul.f32 %v2296_v9, %v7688_v28  ;;  %v2289_v57 = vadd.f32 1.0, %v6038_v7  ;;  %5564 = vmatpush3.msra.mxu0 %v2438_v18  ;;  %v2436_v28 = vld [vmem:[#allocation10 + $0xc0] sm:$0xff]  ;;  %5607 = vmatprep.subr.mxu1 %v2438_v18 }
 0x30e   : > { %5565 = vmatprep.subr.mxu0 %v2437_v29  ;;  %5608 = vmatpush3.msra.mxu1 %v2438_v18 }
 0x30f   : > { %5550 = vmatprep.mubr.f32.mxu1 %v2304_v37  ;;  %v2297_v42 = vmul.f32 0.5, %v2289_v57  ;;  %5566 = vmatpush3.msra.mxu0 %v2437_v29 }
 0x310   : > { %5567 = vmatprep.subr.mxu0 %v2436_v28  ;;  %5609 = vmatprep.subr.mxu1 %v2437_v29 }
 0x311   : > { %v2305_v62 = vmul.f32 %v2297_v42, %v7698_v38  ;;  %5568 = vmatpush3.msra.mxu0 %v2436_v28  ;;  %5610 = vmatpush3.msra.mxu1 %v2437_v29  ;;  %v2433_v38 = vld [vmem:[#allocation10 + $0xa8] sm:$0xff] }
 0x312   : > { %5569 = vmatprep.subr.mxu0 %v2435_v27  ;;  %5611 = vmatprep.subr.mxu1 %v2436_v28 }
 0x313   : > { %5551 = vmatmul.mubr.f32.gmra.mxu1 %v2305_v62  ;;  %5570 = vmatpush3.msra.mxu0 %v2435_v27 }
 0x314   : > { %5571 = vmatprep.subr.mxu0 %v2434_v8  ;;  %5612 = vmatpush3.msra.mxu1 %v2436_v28 }
 0x315   : > { %5572 = vmatpush3.msra.mxu0 %v2434_v8  ;;  %5613 = vmatprep.subr.mxu1 %v2435_v27 }
 0x316   : > { %5573 = vmatprep.subr.mxu0 %v2433_v38  ;;  %5614 = vmatpush3.msra.mxu1 %v2435_v27 }
 0x317   : > { %5574 = vmatpush3.msra.mxu0 %v2433_v38  ;;  %5615 = vmatprep.subr.mxu1 %v2434_v8 }
 0x318   : > { %5575 = vmatprep.subr.mxu0 %v2432_v17  ;;  %5616 = vmatpush3.msra.mxu1 %v2434_v8 }
 0x319   : > { %5576 = vmatpush3.msra.mxu0 %v2432_v17  ;;  %5617 = vmatprep.subr.mxu1 %v2433_v38 }
 0x31a   : > { %5577 = vmatprep.subr.mxu0 %v2431_v48  ;;  %5618 = vmatpush3.msra.mxu1 %v2433_v38 }
 0x31b   : > { %5578 = vmatpush3.msra.mxu0 %v2431_v48  ;;  %5619 = vmatprep.subr.mxu1 %v2432_v17 }
 0x31c   : > { %5579 = vmatprep.subr.mxu0 %v2430_v43  ;;  %5620 = vmatpush3.msra.mxu1 %v2432_v17 }
 0x31d   : > { %5580 = vmatpush3.msra.mxu0 %v2430_v43  ;;  %5621 = vmatprep.subr.mxu1 %v2431_v48 }
 0x31e   : > { %5581 = vmatprep.subr.mxu0 %v2429_v16  ;;  %5622 = vmatpush3.msra.mxu1 %v2431_v48 }
 0x31f   : > { %5582 = vmatpush3.msra.mxu0 %v2429_v16  ;;  %5623 = vmatprep.subr.mxu1 %v2430_v43 }
 0x320   : > { %5583 = vmatprep.subr.mxu0 %v2428_v56  ;;  %5624 = vmatpush3.msra.mxu1 %v2430_v43 }
 0x321   : > { %5584 = vmatpush3.msra.mxu0 %v2428_v56  ;;  %5625 = vmatprep.subr.mxu1 %v2429_v16 }
 0x322   : > { %5626 = vmatpush3.msra.mxu1 %v2429_v16 }
 0x323   : > { %5627 = vmatprep.subr.mxu1 %v2428_v56 }
 0x324   : > { %5628 = vmatpush3.msra.mxu1 %v2428_v56 }
 0x35b   : > { %v5411_v39 = vpop.f32.mrf.mxu1 }
 0x35c   : > { %v1430_v53 = vadd.f32 %v5411_v39, %v7062_v5 }
 0x35d   : > { %v1390_v3 = vpop.f32.mrf.mxu1 }
 0x35e   : > { %v1429_v33 = vadd.f32 %v1390_v3, %v7054_v54  ;;  %v1444_v49 = vadd.f32 %v7718_v44, %v1430_v53 }
 0x360   : > { %v1443_v55 = vadd.f32 %v7718_v44, %v1429_v33  ;;  %v1452_v30 = vsub.f32 %v1444_v49, %v7062_v5 }
 0x362   : > { %v1451_v51 = vsub.f32 %v1443_v55, %v7054_v54  ;;  %v1782_v10 = vmul.f32 %v1452_v30, %v1452_v30 }
 0x363   : > { %v5414_v32 = vpop.f32.mrf.mxu1 }
 0x364   : > { %v1432_v40 = vadd.f32 %v5414_v32, %v7089_v21  ;;  %v1781_v2 = vmul.f32 %v1451_v51, %v1451_v51 }
 0x365   : > { %v1400_v24 = vpop.f32.mrf.mxu1 }
 0x366   : > { %v1431_v11 = vadd.f32 %v1400_v24, %v7077_v60  ;;  %v1446_v23 = vadd.f32 %v7718_v44, %v1432_v40  ;;  %v1789_v36 = vadd.f32 %v1782_v10, %v1781_v2 }
 0x368   : > { %v1445_v34 = vadd.f32 %v7718_v44, %v1431_v11  ;;  %v1454_v19 = vsub.f32 %v1446_v23, %v7089_v21 }
 0x36a   : > { %v1453_v35 = vsub.f32 %v1445_v34, %v7077_v60  ;;  %v1784_v7 = vmul.f32 %v1454_v19, %v1454_v19 }
 0x36c   : > { %v5417_v58 = vpop.f32.mrf.mxu1  ;;  %v1783_v31 = vmul.f32 %v1453_v35, %v1453_v35 }
 0x36d   : > { %v1434_v15 = vadd.f32 %v5417_v58, %v7114_v12 }
 0x36e   : > { %v1410_v41 = vpop.f32.mrf.mxu1  ;;  %v1790_v52 = vadd.f32 %v1789_v36, %v1783_v31 }
 0x36f   : > { %v1433_v25 = vadd.f32 %v1410_v41, %v7103_v61  ;;  %v1448_v50 = vadd.f32 %v7718_v44, %v1434_v15 }
 0x370   : > { %v1791_v62 = vadd.f32 %v1790_v52, %v1784_v7 }
 0x371   : > { %v1447_v46 = vadd.f32 %v7718_v44, %v1433_v25  ;;  %v1456_v63 = vsub.f32 %v1448_v50, %v7114_v12 }
 0x373   : > { %v1455_v45 = vsub.f32 %v1447_v46, %v7103_v61  ;;  %v1786_v27 = vmul.f32 %v1456_v63, %v1456_v63 }
 0x374   : > { %v5420_v9 = vpop.f32.mrf.mxu1 }
 0x375   : > { %v1785_v47 = vmul.f32 %v1455_v45, %v1455_v45  ;;  %v1436_v37 = vadd.f32 %v5420_v9, %v7138_v14 }
 0x376   : > { %v1420_v57 = vpop.f32.mrf.mxu1 }
 0x377   : > { %v1450_v42 = vadd.f32 %v7718_v44, %v1436_v37  ;;  %v1435_v18 = vadd.f32 %v1420_v57, %v7127_v13  ;;  %v1792_v28 = vadd.f32 %v1791_v62, %v1785_v47 }
 0x379   : > { %v1449_v29 = vadd.f32 %v7718_v44, %v1435_v18  ;;  %v1458_v38 = vsub.f32 %v1450_v42, %v7138_v14  ;;  %v1793_v43 = vadd.f32 %v1792_v28, %v1786_v27 }
 0x37b   : > { %v1457_v8 = vsub.f32 %v1449_v29, %v7127_v13  ;;  %v1788_v56 = vmul.f32 %v1458_v38, %v1458_v38 }
 0x37c   : > { %v5455_v17 = vpop.f32.mrf.mxu1 }
 0x37d   : > { %v1787_v48 = vmul.f32 %v1457_v8, %v1457_v8  ;;  %v1758_v53 = vadd.f32 %v5455_v17, %v7159_v20 }
 0x37e   : > { %v1718_v16 = vpop.f32.mrf.mxu1 }
 0x37f   : > { %v1794_v39 = vadd.f32 %v1793_v43, %v1787_v48  ;;  %v1757_v3 = vadd.f32 %v1718_v16, %v7149_v1  ;;  %v1766_v11 = vadd.f32 %v7718_v44, %v1758_v53 }
 0x381   : > { %v1795_v33 = vadd.f32 %v1794_v39, %v1788_v56  ;;  %v1765_v55 = vadd.f32 %v7718_v44, %v1757_v3  ;;  %v1774_v30 = vsub.f32 %v1766_v11, %v7159_v20 }
 0x383   : > { %1796 = vadd.xlane.f32.xlu0 %v1795_v33  ;;  %v1773_v34 = vsub.f32 %v1765_v55, %v7149_v1  ;;  %v1807_v10 = vmul.f32 %v1774_v30, %v1774_v30 }
 0x384   : > { %v5458_v32 = vpop.f32.mrf.mxu1 }
 0x385   : > { %v1760_v51 = vadd.f32 %v5458_v32, %v7180_v0  ;;  %v1806_v2 = vmul.f32 %v1773_v34, %v1773_v34 }
 0x386   : > { %v1728_v24 = vpop.f32.mrf.mxu1 }
 0x387   : > { %v1759_v49 = vadd.f32 %v1728_v24, %v7171_v6  ;;  %v1768_v23 = vadd.f32 %v7718_v44, %v1760_v51  ;;  %v1814_v36 = vadd.f32 %v1807_v10, %v1806_v2 }
 0x389   : > { %v1767_v40 = vadd.f32 %v7718_v44, %v1759_v49  ;;  %v1776_v19 = vsub.f32 %v1768_v23, %v7180_v0 }
 0x38b   : > { %v1775_v35 = vsub.f32 %v1767_v40, %v7171_v6  ;;  %v1809_v7 = vmul.f32 %v1776_v19, %v1776_v19 }
 0x38c   : > { %v5461_v58 = vpop.f32.mrf.mxu1 }
 0x38d   : > { %v1808_v31 = vmul.f32 %v1775_v35, %v1775_v35  ;;  %v1762_v15 = vadd.f32 %v5461_v58, %v7203_v4 }
 0x38e   : > { %v1738_v41 = vpop.f32.mrf.mxu1 }
 0x38f   : > { %v1761_v25 = vadd.f32 %v1738_v41, %v7194_v22  ;;  %v1815_v52 = vadd.f32 %v1814_v36, %v1808_v31  ;;  %v1770_v50 = vadd.f32 %v7718_v44, %v1762_v15 }
 0x391   : > { %v1769_v46 = vadd.f32 %v7718_v44, %v1761_v25  ;;  %v1778_v63 = vsub.f32 %v1770_v50, %v7203_v4  ;;  %v1816_v42 = vadd.f32 %v1815_v52, %v1809_v7 }
 0x393   : > { %v1777_v45 = vsub.f32 %v1769_v46, %v7194_v22  ;;  %v1811_v27 = vmul.f32 %v1778_v63, %v1778_v63 }
 0x394   : > { %v5464_v9 = vpop.f32.mrf.mxu1 }
 0x395   : > { %v1810_v47 = vmul.f32 %v1777_v45, %v1777_v45  ;;  %v1764_v37 = vadd.f32 %v5464_v9, %v7225_v59 }
 0x396   : > { %v1748_v57 = vpop.f32.mrf.mxu1 }
 0x397   : > { %v1772_v18 = vadd.f32 %v7718_v44, %v1764_v37  ;;  %v1763_v62 = vadd.f32 %v1748_v57, %v7215_v26  ;;  %v1817_v29 = vadd.f32 %v1816_v42, %v1810_v47  ;;  %v7846_v42 = vld [vmem:[#allocation11 + $0x1f8] sm:$0xff] }
 0x398   : > { %9052 = vst [vmem:[#allocation49_spill] sm:$0xff] %v7846_v42  ;;  %4969 = vmatprep.subr.mxu0 %v7846_v42 }
 0x399   : > { %v1771_v28 = vadd.f32 %v7718_v44, %v1763_v62  ;;  %v1780_v38 = vsub.f32 %v1772_v18, %v7225_v59  ;;  %v1818_v43 = vadd.f32 %v1817_v29, %v1811_v27  ;;  %v7849_v18 = vld [vmem:[#allocation11 + $0x178] sm:$0xff]  ;;  %v7861_v62 = vld [vmem:[#allocation11 + $0x168] sm:$0xff]  ;;  %v7864_v29 = vld [vmem:[#allocation11 + $0x1e0] sm:$0xff] }
 0x39a   : > { %v7870_v27 = vld [vmem:[#allocation11 + $0x1d8] sm:$0xff] }
 0x39b   : > { %v1779_v8 = vsub.f32 %v1771_v28, %v7215_v26  ;;  %v1813_v3 = vmul.f32 %v1780_v38, %v1780_v38  ;;  %v7867_v28 = vld [vmem:[#allocation11 + $0x160] sm:$0xff]  ;;  %v7876_v38 = vld [vmem:[#allocation11 + $0x1d0] sm:$0xff] }
 0x39c   : > { %v5499_v17 = vpop.f32.mrf.mxu1 }
 0x39d   : > { %v1812_v48 = vmul.f32 %v1779_v8, %v1779_v8  ;;  %v2114_v16 = vadd.f32 %v5499_v17, %v7062_v5  ;;  %v7873_v8 = vld [vmem:[#allocation11 + $0x158] sm:$0xff]  ;;  %v7879_v17 = vld [vmem:[#allocation11 + $0x150] sm:$0xff] }
 0x39e   : > { %v2074_v56 = vpop.f32.mrf.mxu1 }
 0x39f   : > { %v2113_v39 = vadd.f32 %v2074_v56, %v7054_v54  ;;  %v1819_v33 = vadd.f32 %v1818_v43, %v1812_v48  ;;  %v7772_v55 = vadd.f32 %v7718_v44, %v2114_v16  ;;  %v7882_v48 = vld [vmem:[#allocation11 + $0x1c8] sm:$0xff]  ;;  %v7888_v16 = vld [vmem:[#allocation11 + $0x1c0] sm:$0xff] }
 0x3a0   : > { %v7885_v43 = vld [vmem:[#allocation11 + $0x148] sm:$0xff]  ;;  %v7891_v56 = vld [vmem:[#allocation11 + $0x140] sm:$0xff] }
 0x3a1   : > { %v7769_v53 = vadd.f32 %v7718_v44, %v2113_v39  ;;  %v1820_v32 = vadd.f32 %v1819_v33, %v1813_v3  ;;  %v7894_v39 = vld [vmem:[#allocation11 + $0x1b8] sm:$0xff]  ;;  %v7900_v33 = vld [vmem:[#allocation11 + $0x1b0] sm:$0xff] }
 0x3a2   : > { %v7897_v3 = vld [vmem:[#allocation11 + $0x138] sm:$0xff] }
 0x3a3   : > { %5585 = vmatprep.mubr.f32.mxu0 %v7769_v53  ;;  %1821 = vadd.xlane.f32.xlu0 %v1820_v32  ;;  %v7903_v32 = vld [vmem:[#allocation11 + $0x130] sm:$0xff] }
 0x3a4   : > { %v5502_v24 = vpop.f32.mrf.mxu1  ;;  %5586 = vmatmul.mubr.f32.vlgmr.msra.gmra.mxu0 %v7772_v55 }
 0x3a5   : > { %v2116_v5 = vadd.f32 %v5502_v24, %v7089_v21  ;;  %4970 = vmatpush3.msra.mxu0 %v7849_v18  ;;  %v7906_v24 = vld [vmem:[#allocation11 + $0x1a8] sm:$0xff] }
 0x3a6   : > { %v2084_v11 = vpop.f32.mrf.mxu1 }
 0x3a7   : > { %v2115_v54 = vadd.f32 %v2084_v11, %v7077_v60  ;;  %v7782_v34 = vadd.f32 %v7718_v44, %v2116_v5  ;;  %v7909_v5 = vld [vmem:[#allocation11 + $0x128] sm:$0xff]  ;;  %v7912_v11 = vld [vmem:[#allocation11 + $0x1a0] sm:$0xff] }
 0x3a9   : > { %v7779_v49 = vadd.f32 %v7718_v44, %v2115_v54  ;;  %v7915_v54 = vld [vmem:[#allocation11 + $0x120] sm:$0xff] }
 0x3ab   : > { %5588 = vmatprep.mubr.f32.mxu0 %v7779_v49 }
 0x3ac   : > { %v5505_v51 = vpop.f32.mrf.mxu1  ;;  %5589 = vmatmul.mubr.f32.gmra.mxu0 %v7782_v34 }
 0x3ad   : > { %v2118_v40 = vadd.f32 %v5505_v51, %v7114_v12  ;;  %v7918_v51 = vld [vmem:[#allocation11 + $0x198] sm:$0xff] }
 0x3ae   : > { %v2094_v30 = vpop.f32.mrf.mxu1 }
 0x3af   : > { %v2117_v35 = vadd.f32 %v2094_v30, %v7103_v61  ;;  %v7792_v60 = vadd.f32 %v7718_v44, %v2118_v40  ;;  %v7921_v40 = vld [vmem:[#allocation11 + $0x118] sm:$0xff]  ;;  %v7924_v30 = vld [vmem:[#allocation11 + $0x190] sm:$0xff] }
 0x3b1   : > { %v7789_v21 = vadd.f32 %v7718_v44, %v2117_v35  ;;  %v7927_v35 = vld [vmem:[#allocation11 + $0x110] sm:$0xff] }
 0x3b2   : > { %9053 = vst [vmem:[#allocation50_spill] sm:$0xff] %v7927_v35 }
 0x3b3   : > { %5591 = vmatprep.mubr.f32.mxu0 %v7789_v21 }
 0x3b4   : > { %v5508_v58 = vpop.f32.mrf.mxu1  ;;  %5592 = vmatmul.mubr.f32.gmra.mxu0 %v7792_v60 }
 0x3b5   : > { %v2120_v2 = vadd.f32 %v5508_v58, %v7138_v14  ;;  %v7930_v58 = vld [vmem:[#allocation11 + $0x188] sm:$0xff] }
 0x3b6   : > { %v2104_v23 = vpop.f32.mrf.mxu1  ;;  %9054 = vst [vmem:[#allocation37_spill] sm:$0xff] %v7930_v58 }
 0x3b7   : > { %v2119_v41 = vadd.f32 %v2104_v23, %v7127_v13  ;;  %v7802_v61 = vadd.f32 %v7718_v44, %v2120_v2  ;;  %v7933_v2 = vld [vmem:[#allocation11 + $0x108] sm:$0xff] }
 0x3b8   : > { %9055 = vst [vmem:[#allocation51_spill] sm:$0xff] %v7933_v2 }
 0x3b9   : > { %v7799_v12 = vadd.f32 %v7718_v44, %v2119_v41  ;;  %v7936_v41 = vld [vmem:[#allocation11 + $0x180] sm:$0xff] }
 0x3ba   : > { %9056 = vst [vmem:[#allocation52_spill] sm:$0xff] %v7936_v41 }
 0x3bb   : > { %5594 = vmatprep.mubr.f32.mxu0 %v7799_v12 }
 0x3bc   : > { %v5543_v10 = vpop.f32.mrf.mxu1  ;;  %5595 = vmatmul.mubr.f32.gmra.mxu0 %v7802_v61 }
 0x3bd   : > { %v2412_v31 = vadd.f32 %v5543_v10, %v7159_v20 }
 0x3be   : > { %v2372_v15 = vpop.f32.mrf.mxu1 }
 0x3bf   : > { %v2411_v25 = vadd.f32 %v2372_v15, %v7149_v1  ;;  %v7812_v13 = vadd.f32 %v7718_v44, %v2412_v31  ;;  %v7939_v31 = vld [vmem:[#allocation11 + $0x100] sm:$0xff] }
 0x3c0   : > { %9057 = vst [vmem:[#allocation53_spill] sm:$0xff] %v7939_v31 }
 0x3c1   : > { %v7809_v14 = vadd.f32 %v7718_v44, %v2411_v25 }
 0x3c3   : > { %5629 = vmatprep.mubr.f32.mxu1 %v7809_v14  ;;  %v5546_v36 = vpop.f32.mrf.mxu1 }
 0x3c4   : > { %5630 = vmatmul.mubr.f32.vlgmr.msra.gmra.mxu1 %v7812_v13  ;;  %v2414_v19 = vadd.f32 %v5546_v36, %v7180_v0 }
 0x3c5   : > { %v2382_v46 = vpop.f32.mrf.mxu1 }
 0x3c6   : > { %v2413_v52 = vadd.f32 %v2382_v46, %v7171_v6  ;;  %v7822_v1 = vadd.f32 %v7718_v44, %v2414_v19 }
 0x3c8   : > { %v7819_v20 = vadd.f32 %v7718_v44, %v2413_v52  ;;  %9047 = vst [vmem:[#allocation56_spill] sm:$0xff] %v7822_v1 }
 0x3ca   : > { %9046 = vst [vmem:[#allocation45_spill] sm:$0xff] %v7819_v20  ;;  %5632 = vmatprep.mubr.f32.mxu1 %v7819_v20 }
 0x3cb   : > { %v5549_v50 = vpop.f32.mrf.mxu1  ;;  %5633 = vmatmul.mubr.f32.gmra.mxu1 %v7822_v1 }
 0x3cc   : > { %v2416_v45 = vadd.f32 %v5549_v50, %v7203_v4 }
 0x3cd   : > { %v2392_v9 = vpop.f32.mrf.mxu1 }
 0x3ce   : > { %v2415_v7 = vadd.f32 %v2392_v9, %v7194_v22  ;;  %v7832_v6 = vadd.f32 %v7718_v44, %v2416_v45 }
 0x3d0   : > { %v7829_v0 = vadd.f32 %v7718_v44, %v2415_v7  ;;  %9049 = vst [vmem:[#allocation36_spill] sm:$0xff] %v7832_v6 }
 0x3d2   : > { %9048 = vst [vmem:[#allocation46_spill] sm:$0xff] %v7829_v0  ;;  %5635 = vmatprep.mubr.f32.mxu1 %v7829_v0 }
 0x3d3   : > { %v5552_v47 = vpop.f32.mrf.mxu1  ;;  %5636 = vmatmul.mubr.f32.gmra.mxu1 %v7832_v6 }
 0x3d4   : > { %v2418_v37 = vadd.f32 %v5552_v47, %v7225_v59  ;;  %v7852_v59 = vld [vmem:[#allocation11 + $0x1f0] sm:$0xff] }
 0x3d5   : > { %v2402_v57 = vpop.f32.mrf.mxu1  ;;  %4971 = vmatprep.subr.mxu0 %v7852_v59 }
 0x3d6   : > { %v2417_v63 = vadd.f32 %v2402_v57, %v7215_v26  ;;  %v7842_v22 = vadd.f32 %v7718_v44, %v2418_v37  ;;  %v7855_v26 = vld [vmem:[#allocation11 + $0x170] sm:$0xff]  ;;  %v7946_v57 = vld [vmem:[%s8907_s5 + $0x1] ss:$0 sm:$0xff] }
 0x3d7   : > { %4972 = vmatpush3.msra.mxu0 %v7855_v26 }
 0x3d8   : > { %v7839_v4 = vadd.f32 %v7718_v44, %v2417_v63  ;;  %9051 = vst [vmem:[#allocation48_spill] sm:$0xff] %v7842_v22  ;;  %v7858_v44 = vld [vmem:[#allocation11 + $0x1e8] sm:$0xff] }
 0x3d9   : > { %4973 = vmatprep.subr.mxu0 %v7858_v44 }
 0x3da   : > { %9050 = vst [vmem:[#allocation47_spill] sm:$0xff] %v7839_v4  ;;  %5638 = vmatprep.mubr.f32.mxu1 %v7839_v4  ;;  %4974 = vmatpush3.msra.mxu0 %v7861_v62 }
 0x3db   : > { %5639 = vmatmul.mubr.f32.gmra.mxu1 %v7842_v22  ;;  %4975 = vmatprep.subr.mxu0 %v7864_v29 }
 0x3dc   : > { %4976 = vmatpush3.msra.mxu0 %v7867_v28 }
 0x3dd   : > { %4977 = vmatprep.subr.mxu0 %v7870_v27 }
 0x3de   : > { %4978 = vmatpush3.msra.mxu0 %v7873_v8 }
 0x3df   : > { %4979 = vmatprep.subr.mxu0 %v7876_v38 }
 0x3e0   : > { %4980 = vmatpush3.msra.mxu0 %v7879_v17 }
 0x3e1   : > { %4981 = vmatprep.subr.mxu0 %v7882_v48 }
 0x3e2   : > { %4982 = vmatpush3.msra.mxu0 %v7885_v43 }
 0x3e3   : > { %4983 = vmatprep.subr.mxu0 %v7888_v16 }
 0x3e4   : > { %4984 = vmatpush3.msra.mxu0 %v7891_v56 }
 0x3e5   : > { %4985 = vmatprep.subr.mxu0 %v7894_v39 }
 0x3e6   : > { %4986 = vmatpush3.msra.mxu0 %v7897_v3 }
 0x3e7   : > { %4987 = vmatprep.subr.mxu0 %v7900_v33 }
 0x3e8   : > { %4988 = vmatpush3.msra.mxu0 %v7903_v32 }
 0x3e9   : > { %4989 = vmatprep.subr.mxu0 %v7906_v24 }
 0x3ea   : > { %4990 = vmatpush3.msra.mxu0 %v7909_v5 }
 0x3eb   : > { %4991 = vmatprep.subr.mxu0 %v7912_v11 }
 0x3ec   : > { %4992 = vmatpush3.msra.mxu0 %v7915_v54 }
 0x3ed   : > { %4993 = vmatprep.subr.mxu0 %v7918_v51 }
 0x3ee   : > { %4994 = vmatpush3.msra.mxu0 %v7921_v40 }
 0x3ef   : > { %4995 = vmatprep.subr.mxu0 %v7924_v30 }
 0x3f0   : > { %4996 = vmatpush3.msra.mxu0 %v7927_v35 }
 0x3f1   : > { %4997 = vmatprep.subr.mxu0 %v7930_v58 }
 0x3f2   : > { %4998 = vmatpush3.msra.mxu0 %v7933_v2 }
 0x3f3   : > { %4999 = vmatprep.subr.mxu0 %v7936_v41 }
 0x3f4   : > { %5000 = vmatpush3.msra.mxu0 %v7939_v31 }
 0x3f5   : > { %5049 = vmatprep.subr.mxu0 %v7846_v42 }
 0x40c   : > { %v1797_v23 = vpop.xlane.xlu0 %1796 }
 0x40d   : > { %v1798_v10 = vrot.slane %v1797_v23, 4 }
 0x40f   : > { %v1799_v15 = vadd.f32 %v1798_v10, %v1797_v23 }
 0x411   : > { %v1800_v25 = vrot.slane %v1799_v15, 2 }
 0x413   : > { %v1801_v36 = vadd.f32 %v1800_v25, %v1799_v15 }
 0x415   : > { %v1802_v19 = vrot.slane %v1801_v36, 1 }
 0x417   : > { %v1803_v46 = vadd.f32 %v1802_v19, %v1801_v36 }
 0x419   : > { %5817 = vpush %v1803_v46 }
 0x42c   : > { %v1822_v52 = vpop.xlane.xlu0 %1821 }
 0x42d   : > { %v1823_v50 = vrot.slane %v1822_v52, 4 }
 0x42f   : > { %v1824_v45 = vadd.f32 %v1823_v50, %v1822_v52 }
 0x431   : > { %v1825_v9 = vrot.slane %v1824_v45, 2 }
 0x433   : > { %v1826_v7 = vadd.f32 %v1825_v9, %v1824_v45 }
 0x435   : > { %v1827_v47 = vrot.slane %v1826_v7, 1 }
 0x437   : > { %v1828_v37 = vadd.f32 %v1827_v47, %v1826_v7 }
 0x439   : > { %5819 = vpush %v1828_v37 }
 0x464   : > { %v5587_v63 = vpop.f32.mrf.mxu0 }
 0x465   : > { %v2578_v23 = vadd.f32 %v5587_v63, %v7946_v57 }
 0x466   : > { %v2572_v10 = vpop.f32.mrf.mxu0 }
 0x467   : > { %v2612_v15 = vmul.f32 %v2578_v23, %v2578_v23  ;;  %v2573_v25 = vadd.f32 %v7946_v57, %v2572_v10 }
 0x469   : > { %v2620_v36 = vmul.f32 %v2612_v15, %v2578_v23  ;;  %v2611_v19 = vmul.f32 %v2573_v25, %v2573_v25 }
 0x46b   : > { %v2628_v46 = vmul.f32 0.044715, %v2620_v36  ;;  %v2619_v52 = vmul.f32 %v2611_v19, %v2573_v25 }
 0x46c   : > { %v5590_v50 = vpop.f32.mrf.mxu0 }
 0x46d   : > { %v2636_v45 = vadd.f32 %v2628_v46, %v2578_v23  ;;  %v2627_v9 = vmul.f32 0.044715, %v2619_v52  ;;  %v7951_v7 = vadd.f32 %v5590_v50, %v7946_v57 }
 0x46e   : > { %v2582_v47 = vpop.f32.mrf.mxu0 }
 0x46f   : > { %v2644_v37 = vmul.f32 0.7978846, %v2636_v45  ;;  %v2635_v22 = vadd.f32 %v2627_v9, %v2573_v25  ;;  %v2614_v63 = vmul.f32 %v7951_v7, %v7951_v7  ;;  %v7956_v4 = vadd.f32 %v7946_v57, %v2582_v47 }
 0x471   : > { %6039 = vtanh.f32 %v2644_v37  ;;  %v2643_v10 = vmul.f32 0.7978846, %v2635_v22  ;;  %v2622_v15 = vmul.f32 %v2614_v63, %v7951_v7  ;;  %v2613_v36 = vmul.f32 %v7956_v4, %v7956_v4 }
 0x473   : > { %6041 = vtanh.f32 %v2643_v10  ;;  %v2630_v19 = vmul.f32 0.044715, %v2622_v15  ;;  %v2621_v46 = vmul.f32 %v2613_v36, %v7956_v4 }
 0x474   : > { %v5593_v52 = vpop.f32.mrf.mxu0 }
 0x475   : > { %v2638_v50 = vadd.f32 %v2630_v19, %v7951_v7  ;;  %v2629_v45 = vmul.f32 0.044715, %v2621_v46  ;;  %v7964_v9 = vadd.f32 %v5593_v52, %v7946_v57 }
 0x476   : > { %v2592_v47 = vpop.f32.mrf.mxu0 }
 0x477   : > { %v2646_v6 = vmul.f32 0.7978846, %v2638_v50  ;;  %v2637_v22 = vadd.f32 %v2629_v45, %v7956_v4  ;;  %v2616_v37 = vmul.f32 %v7964_v9, %v7964_v9  ;;  %v7970_v63 = vadd.f32 %v7946_v57, %v2592_v47 }
 0x479   : > { %6043 = vtanh.f32 %v2646_v6  ;;  %v2645_v10 = vmul.f32 0.7978846, %v2637_v22  ;;  %v2624_v15 = vmul.f32 %v2616_v37, %v7964_v9  ;;  %v2615_v36 = vmul.f32 %v7970_v63, %v7970_v63 }
 0x47b   : > { %6045 = vtanh.f32 %v2645_v10  ;;  %v2632_v19 = vmul.f32 0.044715, %v2624_v15  ;;  %v2623_v46 = vmul.f32 %v2615_v36, %v7970_v63 }
 0x47c   : > { %v5596_v52 = vpop.f32.mrf.mxu0 }
 0x47d   : > { %v2640_v50 = vadd.f32 %v2632_v19, %v7964_v9  ;;  %v2631_v45 = vmul.f32 0.044715, %v2623_v46  ;;  %v7978_v0 = vadd.f32 %v5596_v52, %v7946_v57 }
 0x47e   : > { %v6040_v47 = vpop.eup %6039  ;;  %v2602_v1 = vpop.f32.mrf.mxu0 }
 0x47f   : > { %v2660_v6 = vadd.f32 1.0, %v6040_v47  ;;  %v2648_v22 = vmul.f32 0.7978846, %v2640_v50  ;;  %v2639_v37 = vadd.f32 %v2631_v45, %v7970_v63  ;;  %v2618_v20 = vmul.f32 %v7978_v0, %v7978_v0 }
 0x480   : > { %v6042_v10 = vpop.eup %6041  ;;  %v7984_v15 = vadd.f32 %v7946_v57, %v2602_v1 }
 0x481   : > { %v2668_v36 = vmul.f32 0.5, %v2660_v6  ;;  %v2659_v42 = vadd.f32 1.0, %v6042_v10  ;;  %6047 = vtanh.f32 %v2648_v22  ;;  %v2647_v19 = vmul.f32 0.7978846, %v2639_v37 }
 0x482   : > { %v2626_v46 = vmul.f32 %v2618_v20, %v7978_v0  ;;  %v2617_v52 = vmul.f32 %v7984_v15, %v7984_v15 }
 0x483   : > { %v2667_v47 = vmul.f32 0.5, %v2659_v42  ;;  %6049 = vtanh.f32 %v2647_v19  ;;  %v2676_v50 = vmul.f32 %v2668_v36, %v2578_v23 }
 0x484   : > { %v2634_v45 = vmul.f32 0.044715, %v2626_v46  ;;  %v2625_v31 = vmul.f32 %v2617_v52, %v7984_v15  ;;  %v5631_v41 = vpop.f32.mrf.mxu1 }
 0x485   : > { %v2675_v2 = vmul.f32 %v2667_v47, %v2573_v25  ;;  %v7991_v1 = vadd.f32 %v5631_v41, %v7946_v57  ;;  %v4519_v25 = vld [vmem:[%s6776_s30 + $0x40] sm:$0xff]  ;;  %v8004_v41 = vadd.f32 %v2676_v50, %v7772_v55 }
 0x486   : > { %v6044_v6 = vpop.eup %6043  ;;  %v2642_v22 = vadd.f32 %v2634_v45, %v7978_v0  ;;  %v2633_v20 = vmul.f32 0.044715, %v2625_v31  ;;  %v2757_v37 = vpop.f32.mrf.mxu1  ;;  %v4520_v45 = vld [vmem:[%s6776_s30 + $0x48] sm:$0xff] }
 0x487   : > { %v7995_v10 = vadd.f32 %v2675_v2, %v7769_v53  ;;  %v2662_v42 = vadd.f32 1.0, %v6044_v6  ;;  %v2797_v23 = vmul.f32 %v7991_v1, %v7991_v1  ;;  %v8000_v36 = vadd.f32 %v7946_v57, %v2757_v37 }
 0x488   : > { %v6046_v19 = vpop.eup %6045  ;;  %v2650_v46 = vmul.f32 0.7978846, %v2642_v22  ;;  %v2641_v52 = vadd.f32 %v2633_v20, %v7984_v15 }
 0x489   : > { %v2670_v31 = vmul.f32 0.5, %v2662_v42  ;;  %v2661_v47 = vadd.f32 1.0, %v6046_v19  ;;  %v2805_v53 = vmul.f32 %v2797_v23, %v7991_v1  ;;  %v2796_v2 = vmul.f32 %v8000_v36, %v8000_v36 }
 0x48a   : > { %6051 = vtanh.f32 %v2650_v46  ;;  %v2649_v6 = vmul.f32 0.7978846, %v2641_v52  ;;  %v2885_v37 = vmul.f32 %v4519_v25, %v7995_v10  ;;  %v2886_v42 = vmul.f32 %v4520_v45, %v8004_v41 }
 0x48b   : > { %v2669_v58 = vmul.f32 0.5, %v2661_v47  ;;  %v2813_v35 = vmul.f32 0.044715, %v2805_v53  ;;  %v2804_v55 = vmul.f32 %v2796_v2, %v8000_v36  ;;  %v5634_v50 = vpop.f32.mrf.mxu1  ;;  %v2678_v22 = vmul.f32 %v2670_v31, %v7951_v7  ;;  %v4521_v53 = vld [vmem:[%s6776_s30 + $0x50] sm:$0xff] }
 0x48c   : > { %6053 = vtanh.f32 %v2649_v6  ;;  %2963 = vmatprep.mubr.f32.mxu0 %v2885_v37  ;;  %v8015_v20 = vadd.f32 %v5634_v50, %v7946_v57 }
 0x48d   : > { %v2677_v23 = vmul.f32 %v2669_v58, %v7956_v4  ;;  %v2821_v19 = vadd.f32 %v2813_v35, %v7991_v1  ;;  %v2812_v25 = vmul.f32 0.044715, %v2804_v55  ;;  %2964 = vmatmul.mubr.f32.vlgmr.msra.gmra.mxu0 %v7995_v10  ;;  %v2767_v46 = vpop.f32.mrf.mxu1  ;;  %v8034_v45 = vadd.f32 %v2678_v22, %v7782_v34 }
 0x48e   : > { %v6048_v52 = vpop.eup %6047  ;;  %v2799_v7 = vmul.f32 %v8015_v20, %v8015_v20  ;;  %5050 = vmatpush3.msra.mxu0 %v7849_v18  ;;  %2968 = vmatprep.mubr.f32.mxu0 %v2886_v42  ;;  %v8025_v31 = vadd.f32 %v7946_v57, %v2767_v46  ;;  %v4522_v42 = vld [vmem:[%s6776_s30 + $0x58] sm:$0xff] }
 0x48f   : > { %v8028_v47 = vadd.f32 %v2677_v23, %v7779_v49  ;;  %v2664_v4 = vadd.f32 1.0, %v6048_v52  ;;  %v2829_v35 = vmul.f32 0.7978846, %v2821_v19  ;;  %v2820_v58 = vadd.f32 %v2812_v25, %v8000_v36  ;;  %5051 = vmatprep.subr.mxu0 %v7852_v59 }
 0x490   : > { %v6050_v2 = vpop.eup %6049  ;;  %v2807_v6 = vmul.f32 %v2799_v7, %v8015_v20  ;;  %v2798_v37 = vmul.f32 %v8025_v31, %v8025_v31  ;;  %5052 = vmatpush3.msra.mxu0 %v7855_v26 }
 0x491   : > { %v2672_v49 = vmul.f32 0.5, %v2664_v4  ;;  %v2663_v55 = vadd.f32 1.0, %v6050_v2  ;;  %6055 = vtanh.f32 %v2829_v35  ;;  %v2828_v50 = vmul.f32 0.7978846, %v2820_v58  ;;  %5053 = vmatprep.subr.mxu0 %v7858_v44  ;;  %2969 = vmatmul.mubr.f32.gmra.mxu0 %v8004_v41 }
 0x492   : > { %v2815_v23 = vmul.f32 0.044715, %v2807_v6  ;;  %v2806_v34 = vmul.f32 %v2798_v37, %v8025_v31  ;;  %5054 = vmatpush3.msra.mxu0 %v7861_v62  ;;  %v2887_v22 = vmul.f32 %v4521_v53, %v8028_v47  ;;  %v2888_v35 = vmul.f32 %v4522_v42, %v8034_v45 }
 0x493   : > { %v2680_v19 = vmul.f32 %v2672_v49, %v7964_v9  ;;  %v2671_v25 = vmul.f32 0.5, %v2663_v55  ;;  %6057 = vtanh.f32 %v2828_v50  ;;  %5055 = vmatprep.subr.mxu0 %v7864_v29  ;;  %v5637_v46 = vpop.f32.mrf.mxu1  ;;  %v4523_v49 = vld [vmem:[%s6776_s30 + $0x60] sm:$0xff] }
 0x494   : > { %v2823_v52 = vadd.f32 %v2815_v23, %v8015_v20  ;;  %v2814_v7 = vmul.f32 0.044715, %v2806_v34  ;;  %5056 = vmatpush3.msra.mxu0 %v7867_v28  ;;  %2973 = vmatprep.mubr.f32.mxu0 %v2887_v22  ;;  %v8051_v4 = vadd.f32 %v5637_v46, %v7946_v57  ;;  %v4524_v22 = vld [vmem:[%s6776_s30 + $0x68] sm:$0xff] }
 0x495   : > { %v2679_v58 = vmul.f32 %v2671_v25, %v7970_v63  ;;  %5057 = vmatprep.subr.mxu0 %v7870_v27  ;;  %2974 = vmatmul.mubr.f32.gmra.mxu0 %v8028_v47  ;;  %v2777_v9 = vpop.f32.mrf.mxu1  ;;  %v8066_v55 = vadd.f32 %v2680_v19, %v7792_v60 }
 0x496   : > { %v2831_v53 = vmul.f32 0.7978846, %v2823_v52  ;;  %v2822_v2 = vadd.f32 %v2814_v7, %v8025_v31  ;;  %v2801_v6 = vmul.f32 %v8051_v4, %v8051_v4  ;;  %5058 = vmatpush3.msra.mxu0 %v7873_v8  ;;  %2978 = vmatprep.mubr.f32.mxu0 %v2888_v35  ;;  %v8062_v37 = vadd.f32 %v7946_v57, %v2777_v9 }
 0x497   : > { %v6052_v63 = vpop.eup %6051  ;;  %v8069_v50 = vadd.f32 %v2679_v58, %v7789_v21  ;;  %5059 = vmatprep.subr.mxu0 %v7876_v38  ;;  %v2890_v58 = vmul.f32 %v4524_v22, %v8066_v55 }
 0x498   : > { %v2666_v42 = vadd.f32 1.0, %v6052_v63  ;;  %6059 = vtanh.f32 %v2831_v53  ;;  %v2830_v23 = vmul.f32 0.7978846, %v2822_v2  ;;  %v2809_v34 = vmul.f32 %v2801_v6, %v8051_v4  ;;  %5060 = vmatpush3.msra.mxu0 %v7879_v17 }
 0x499   : > { %v6054_v25 = vpop.eup %6053  ;;  %v2800_v46 = vmul.f32 %v8062_v37, %v8062_v37  ;;  %5061 = vmatprep.subr.mxu0 %v7882_v48  ;;  %2979 = vmatmul.mubr.f32.gmra.mxu0 %v8034_v45  ;;  %v2889_v21 = vmul.f32 %v4523_v49, %v8069_v50 }
 0x49a   : > { %v2674_v60 = vmul.f32 0.5, %v2666_v42  ;;  %v2665_v19 = vadd.f32 1.0, %v6054_v25  ;;  %6061 = vtanh.f32 %v2830_v23  ;;  %v2817_v52 = vmul.f32 0.044715, %v2809_v34  ;;  %5062 = vmatpush3.msra.mxu0 %v7885_v43 }
 0x49b   : > { %v2808_v7 = vmul.f32 %v2800_v46, %v8062_v37  ;;  %5063 = vmatprep.subr.mxu0 %v7888_v16  ;;  %2983 = vmatprep.mubr.f32.mxu0 %v2889_v21  ;;  %v5640_v35 = vpop.f32.mrf.mxu1  ;;  %v4525_v21 = vld [vmem:[%s6776_s30 + $0x70] sm:$0xff] }
 0x49c   : > { %v2682_v9 = vmul.f32 %v2674_v60, %v7978_v0  ;;  %v2673_v53 = vmul.f32 0.5, %v2665_v19  ;;  %v2825_v2 = vadd.f32 %v2817_v52, %v8051_v4  ;;  %5064 = vmatpush3.msra.mxu0 %v7891_v56  ;;  %v8088_v6 = vadd.f32 %v5640_v35, %v7946_v57 }
 0x49d   : > { %v2816_v49 = vmul.f32 0.044715, %v2808_v7  ;;  %5065 = vmatprep.subr.mxu0 %v7894_v39  ;;  %2984 = vmatmul.mubr.f32.gmra.mxu0 %v8069_v50  ;;  %v2787_v63 = vpop.f32.mrf.mxu1 }
 0x49e   : > { %v6056_v42 = vpop.eup %6055  ;;  %v2681_v23 = vmul.f32 %v2673_v53, %v7984_v15  ;;  %v2833_v34 = vmul.f32 0.7978846, %v2825_v2  ;;  %v2803_v0 = vmul.f32 %v8088_v6, %v8088_v6  ;;  %5066 = vmatpush3.msra.mxu0 %v7897_v3  ;;  %2988 = vmatprep.mubr.f32.mxu0 %v2890_v58  ;;  %v8099_v46 = vadd.f32 %v7946_v57, %v2787_v63 }
 0x49f   : > { %v2845_v22 = vadd.f32 1.0, %v6056_v42  ;;  %v2824_v25 = vadd.f32 %v2816_v49, %v8062_v37  ;;  %5067 = vmatprep.subr.mxu0 %v7900_v33  ;;  %v8103_v15 = vadd.f32 %v2682_v9, %v7802_v61  ;;  %v4526_v61 = vld [vmem:[%s6776_s30 + $0x78] sm:$0xff] }
 0x4a0   : > { %v6058_v60 = vpop.eup %6057  ;;  %v8106_v19 = vadd.f32 %v2681_v23, %v7799_v12  ;;  %6063 = vtanh.f32 %v2833_v34  ;;  %v2811_v52 = vmul.f32 %v2803_v0, %v8088_v6  ;;  %5068 = vmatpush3.msra.mxu0 %v7903_v32  ;;  %v2802_v57 = vmul.f32 %v8099_v46, %v8099_v46 }
 0x4a1   : > { %v2853_v7 = vmul.f32 0.5, %v2845_v22  ;;  %v2844_v35 = vadd.f32 1.0, %v6058_v60  ;;  %v2832_v58 = vmul.f32 0.7978846, %v2824_v25  ;;  %5069 = vmatprep.subr.mxu0 %v7906_v24  ;;  %2989 = vmatmul.mubr.f32.gmra.mxu0 %v8066_v55  ;;  %v2892_v42 = vmul.f32 %v4526_v61, %v8103_v15  ;;  %v9059_v61 = vld [vmem:[#allocation37_spill] sm:$0xff] }
 0x4a2   : > { %v2819_v9 = vmul.f32 0.044715, %v2811_v52  ;;  %5070 = vmatpush3.msra.mxu0 %v7909_v5  ;;  %v2891_v12 = vmul.f32 %v4525_v21, %v8106_v19  ;;  %v2810_v2 = vmul.f32 %v2802_v57, %v8099_v46 }
 0x4a3   : > { %v2852_v53 = vmul.f32 0.5, %v2844_v35  ;;  %6065 = vtanh.f32 %v2832_v58  ;;  %5071 = vmatprep.subr.mxu0 %v7912_v11  ;;  %v2861_v49 = vmul.f32 %v2853_v7, %v7991_v1  ;;  %v4529_v1 = vld [vmem:[%s6779_s0 + $0x40] sm:$0xff] }
 0x4a4   : > { %v2827_v63 = vadd.f32 %v2819_v9, %v8088_v6  ;;  %5072 = vmatpush3.msra.mxu0 %v7915_v54  ;;  %2993 = vmatprep.mubr.f32.mxu0 %v2891_v12  ;;  %v2818_v0 = vmul.f32 0.044715, %v2810_v2  ;;  %v9058_v58 = vld [vmem:[#allocation50_spill] sm:$0xff]  ;;  %v4530_v9 = vld [vmem:[%s6779_s0 + $0x48] sm:$0xff] }
 0x4a5   : > { %v6060_v23 = vpop.eup %6059  ;;  %v2860_v34 = vmul.f32 %v2852_v53, %v8000_v36  ;;  %5073 = vmatprep.subr.mxu0 %v7918_v51  ;;  %2994 = vmatmul.mubr.f32.gmra.mxu0 %v8106_v19  ;;  %v8134_v36 = vadd.f32 %v2861_v49, %v7812_v13  ;;  %v9060_v53 = vld [vmem:[#allocation51_spill] sm:$0xff]  ;;  %v9061_v13 = vld [vmem:[#allocation52_spill] sm:$0xff] }
 0x4a6   : > { %v2847_v22 = vadd.f32 1.0, %v6060_v23  ;;  %v2835_v25 = vmul.f32 0.7978846, %v2827_v63  ;;  %5074 = vmatpush3.msra.mxu0 %v7921_v40  ;;  %2998 = vmatprep.mubr.f32.mxu0 %v2892_v42  ;;  %v2826_v52 = vadd.f32 %v2818_v0, %v8099_v46  ;;  %v9062_v63 = vld [vmem:[#allocation53_spill] sm:$0xff]  ;;  %v4531_v0 = vld [vmem:[%s6779_s0 + $0x50] sm:$0xff] }
 0x4a7   : > { %v6062_v21 = vpop.eup %6061  ;;  %v8129_v60 = vadd.f32 %v2860_v34, %v7809_v14  ;;  %5075 = vmatprep.subr.mxu0 %v7924_v30  ;;  %v3221_v42 = vmul.f32 %v4530_v9, %v8134_v36  ;;  %v9063_v34 = vld [vmem:[#allocation49_spill] sm:$0xff] }
 0x4a8   : > { %v2855_v7 = vmul.f32 0.5, %v2847_v22  ;;  %v2846_v35 = vadd.f32 1.0, %v6062_v21  ;;  %6067 = vtanh.f32 %v2835_v25  ;;  %5076 = vmatpush3.msra.mxu0 %v9058_v58  ;;  %v2834_v57 = vmul.f32 0.7978846, %v2826_v52  ;;  %v9064_v22 = vld [vmem:[#allocation45_spill] sm:$0xff] }
 0x4a9   : > { %5077 = vmatprep.subr.mxu0 %v9059_v61  ;;  %2999 = vmatmul.mubr.f32.gmra.mxu0 %v8103_v15  ;;  %v3220_v14 = vmul.f32 %v4529_v1, %v8129_v60 }
 0x4aa   : > { %v2854_v12 = vmul.f32 0.5, %v2846_v35  ;;  %5078 = vmatpush3.msra.mxu0 %v9060_v53  ;;  %6069 = vtanh.f32 %v2834_v57  ;;  %v2863_v2 = vmul.f32 %v2855_v7, %v8015_v20  ;;  %v4532_v57 = vld [vmem:[%s6779_s0 + $0x58] sm:$0xff] }
 0x4ab   : > { %5079 = vmatprep.subr.mxu0 %v9061_v13  ;;  %3292 = vmatprep.mubr.f32.mxu0 %v3220_v14 }
 0x4ac   : > { %v2862_v49 = vmul.f32 %v2854_v12, %v8025_v31  ;;  %5080 = vmatpush3.msra.mxu0 %v9062_v63  ;;  %v9065_v31 = vld [vmem:[#allocation56_spill] sm:$0xff] }
 0x4ad   : > { %v6064_v23 = vpop.eup %6063  ;;  %3293 = vmatmul.mubr.f32.vlgmr.msra.gmra.mxu0 %v8129_v60  ;;  %5129 = vmatprep.subr.mxu0 %v9063_v34  ;;  %v8156_v21 = vadd.f32 %v2863_v2, %v9065_v31 }
 0x4ae   : > { %v8151_v25 = vadd.f32 %v2862_v49, %v9064_v22  ;;  %v2849_v1 = vadd.f32 1.0, %v6064_v23  ;;  %3297 = vmatprep.mubr.f32.mxu0 %v3221_v42  ;;  %5130 = vmatpush3.msra.mxu0 %v7849_v18  ;;  %v4533_v23 = vld [vmem:[%s6779_s0 + $0x60] sm:$0xff] }
 0x4af   : > { %5131 = vmatprep.subr.mxu0 %v7852_v59  ;;  %v3223_v12 = vmul.f32 %v4532_v57, %v8156_v21 }
 0x4b0   : > { %v6066_v20 = vpop.eup %6065  ;;  %v2857_v52 = vmul.f32 0.5, %v2849_v1  ;;  %5132 = vmatpush3.msra.mxu0 %v7855_v26  ;;  %v3222_v7 = vmul.f32 %v4531_v0, %v8151_v25  ;;  %v9066_v0 = vld [vmem:[#allocation46_spill] sm:$0xff]  ;;  %v9067_v1 = vld [vmem:[#allocation36_spill] sm:$0xff] }
 0x4b1   : > { %v2848_v35 = vadd.f32 1.0, %v6066_v20  ;;  %3298 = vmatmul.mubr.f32.gmra.mxu0 %v8134_v36  ;;  %5133 = vmatprep.subr.mxu0 %v7858_v44 }
 0x4b2   : > { %5134 = vmatpush3.msra.mxu0 %v7861_v62  ;;  %3302 = vmatprep.mubr.f32.mxu0 %v3222_v7  ;;  %v2865_v9 = vmul.f32 %v2857_v52, %v8051_v4  ;;  %v4534_v7 = vld [vmem:[%s6779_s0 + $0x68] sm:$0xff] }
 0x4b3   : > { %v2856_v14 = vmul.f32 0.5, %v2848_v35  ;;  %5135 = vmatprep.subr.mxu0 %v7864_v29 }
 0x4b4   : > { %5136 = vmatpush3.msra.mxu0 %v7867_v28  ;;  %v8178_v20 = vadd.f32 %v2865_v9, %v9067_v1 }
 0x4b5   : > { %v6068_v2 = vpop.eup %6067  ;;  %v2864_v49 = vmul.f32 %v2856_v14, %v8062_v37  ;;  %3303 = vmatmul.mubr.f32.gmra.mxu0 %v8151_v25  ;;  %5137 = vmatprep.subr.mxu0 %v7870_v27 }
 0x4b6   : > { %v2851_v42 = vadd.f32 1.0, %v6068_v2  ;;  %3307 = vmatprep.mubr.f32.mxu0 %v3223_v12  ;;  %5138 = vmatpush3.msra.mxu0 %v7873_v8  ;;  %v3225_v14 = vmul.f32 %v4534_v7, %v8178_v20  ;;  %v4535_v12 = vld [vmem:[%s6779_s0 + $0x70] sm:$0xff]  ;;  %v9068_v2 = vld [vmem:[#allocation47_spill] sm:$0xff] }
 0x4b7   : > { %v8174_v22 = vadd.f32 %v2864_v49, %v9066_v0  ;;  %5139 = vmatprep.subr.mxu0 %v7876_v38  ;;  %v6070_v4 = vpop.eup %6069 }
 0x4b8   : > { %v2859_v37 = vmul.f32 0.5, %v2851_v42  ;;  %5140 = vmatpush3.msra.mxu0 %v7879_v17  ;;  %v2850_v31 = vadd.f32 1.0, %v6070_v4 }
 0x4b9   : > { %3308 = vmatmul.mubr.f32.gmra.mxu0 %v8156_v21  ;;  %5141 = vmatprep.subr.mxu0 %v7882_v48  ;;  %v3224_v52 = vmul.f32 %v4533_v23, %v8174_v22  ;;  %v4536_v23 = vld [vmem:[%s6779_s0 + $0x78] sm:$0xff] }
 0x4ba   : > { %5142 = vmatpush3.msra.mxu0 %v7885_v43  ;;  %v2858_v35 = vmul.f32 0.5, %v2850_v31  ;;  %v2867_v57 = vmul.f32 %v2859_v37, %v8088_v6  ;;  %v9069_v6 = vld [vmem:[#allocation48_spill] sm:$0xff] }
 0x4bb   : > { %5143 = vmatprep.subr.mxu0 %v7888_v16  ;;  %3312 = vmatprep.mubr.f32.mxu0 %v3224_v52 }
 0x4bc   : > { %5144 = vmatpush3.msra.mxu0 %v7891_v56  ;;  %v2866_v9 = vmul.f32 %v2858_v35, %v8099_v46  ;;  %v8200_v42 = vadd.f32 %v2867_v57, %v9069_v6 }
 0x4bd   : > { %3313 = vmatmul.mubr.f32.gmra.mxu0 %v8174_v22  ;;  %5145 = vmatprep.subr.mxu0 %v7894_v39 }
 0x4be   : > { %3317 = vmatprep.mubr.f32.mxu0 %v3225_v14  ;;  %5146 = vmatpush3.msra.mxu0 %v7897_v3  ;;  %v8196_v49 = vadd.f32 %v2866_v9, %v9068_v2  ;;  %v3227_v0 = vmul.f32 %v4536_v23, %v8200_v42 }
 0x4bf   : > { %5147 = vmatprep.subr.mxu0 %v7900_v33 }
 0x4c0   : > { %5148 = vmatpush3.msra.mxu0 %v7903_v32  ;;  %v3226_v46 = vmul.f32 %v4535_v12, %v8196_v49 }
 0x4c1   : > { %3318 = vmatmul.mubr.f32.gmra.mxu0 %v8178_v20  ;;  %5149 = vmatprep.subr.mxu0 %v7906_v24 }
 0x4c2   : > { %5150 = vmatpush3.msra.mxu0 %v7909_v5  ;;  %3322 = vmatprep.mubr.f32.mxu0 %v3226_v46 }
 0x4c3   : > { %5151 = vmatprep.subr.mxu0 %v7912_v11 }
 0x4c4   : > { %5152 = vmatpush3.msra.mxu0 %v7915_v54 }
 0x4c5   : > { %3323 = vmatmul.mubr.f32.gmra.mxu0 %v8196_v49  ;;  %5153 = vmatprep.subr.mxu0 %v7918_v51 }
 0x4c6   : > { %3327 = vmatprep.mubr.f32.mxu0 %v3227_v0  ;;  %5154 = vmatpush3.msra.mxu0 %v7921_v40 }
 0x4c7   : > { %5155 = vmatprep.subr.mxu0 %v7924_v30 }
 0x4c8   : > { %5156 = vmatpush3.msra.mxu0 %v9058_v58 }
 0x4c9   : > { %3328 = vmatmul.mubr.f32.gmra.mxu0 %v8200_v42  ;;  %5157 = vmatprep.subr.mxu0 %v9059_v61 }
 0x4ca   : > { %5158 = vmatpush3.msra.mxu0 %v9060_v53  ;;  %3648 = vmatprep.mubr.f32.mxu0 %v8129_v60 }
 0x4cb   : > { %5159 = vmatprep.subr.mxu0 %v9061_v13 }
 0x4cc   : > { %5160 = vmatpush3.msra.mxu0 %v9062_v63 }
 0x4cd   : > { %3649 = vmatmul.mubr.f32.vlgmr.msra.gmra.mxu0 %v7995_v10  ;;  %5209 = vmatprep.subr.mxu0 %v9063_v34 }
 0x4ce   : > { %3653 = vmatprep.mubr.f32.mxu0 %v8134_v36  ;;  %5210 = vmatpush3.msra.mxu0 %v7849_v18  ;;  %v8239_v18 = vld [vmem:[#allocation13 + $0xf8] sm:$0xff] }
 0x4cf   : > { %5211 = vmatprep.subr.mxu0 %v7852_v59  ;;  %5641 = vmatprep.subr.mxu1 %v8239_v18  ;;  %v8245_v59 = vld [vmem:[#allocation13 + $0xf0] sm:$0xff] }
 0x4d0   : > { %5212 = vmatpush3.msra.mxu0 %v7855_v26  ;;  %5642 = vmatpush3.msra.mxu1 %v8239_v18  ;;  %v8255_v26 = vld [vmem:[#allocation13 + $0xe8] sm:$0xff] }
 0x4d1   : > { %3654 = vmatmul.mubr.f32.gmra.mxu0 %v8004_v41  ;;  %5213 = vmatprep.subr.mxu0 %v7858_v44  ;;  %v8265_v44 = vld [vmem:[#allocation13 + $0xe0] sm:$0xff] }
 0x4d2   : > { %3658 = vmatprep.mubr.f32.mxu0 %v8151_v25  ;;  %5214 = vmatpush3.msra.mxu0 %v7861_v62  ;;  %v8275_v62 = vld [vmem:[#allocation13 + $0xd8] sm:$0xff] }
 0x4d3   : > { %5215 = vmatprep.subr.mxu0 %v7864_v29  ;;  %5643 = vmatprep.subr.mxu1 %v8245_v59  ;;  %v8285_v29 = vld [vmem:[#allocation13 + $0xd0] sm:$0xff] }
 0x4d4   : > { %5216 = vmatpush3.msra.mxu0 %v7867_v28  ;;  %5644 = vmatpush3.msra.mxu1 %v8245_v59  ;;  %v8291_v28 = vld [vmem:[#allocation13 + $0xc8] sm:$0xff] }
 0x4d5   : > { %3659 = vmatmul.mubr.f32.gmra.mxu0 %v8028_v47  ;;  %5217 = vmatprep.subr.mxu0 %v7870_v27  ;;  %v8297_v27 = vld [vmem:[#allocation13 + $0xc0] sm:$0xff] }
 0x4d6   : > { %3663 = vmatprep.mubr.f32.mxu0 %v8156_v21  ;;  %5218 = vmatpush3.msra.mxu0 %v7873_v8  ;;  %v8302_v8 = vld [vmem:[#allocation13 + $0xb8] sm:$0xff] }
 0x4d7   : > { %5219 = vmatprep.subr.mxu0 %v7876_v38  ;;  %5645 = vmatprep.subr.mxu1 %v8255_v26  ;;  %v8307_v38 = vld [vmem:[#allocation13 + $0xb0] sm:$0xff] }
 0x4d8   : > { %5220 = vmatpush3.msra.mxu0 %v7879_v17  ;;  %5646 = vmatpush3.msra.mxu1 %v8255_v26  ;;  %v8312_v17 = vld [vmem:[#allocation13 + $0xa8] sm:$0xff] }
 0x4d9   : > { %3664 = vmatmul.mubr.f32.gmra.mxu0 %v8034_v45  ;;  %5221 = vmatprep.subr.mxu0 %v7882_v48  ;;  %v8317_v48 = vld [vmem:[#allocation13 + $0xa0] sm:$0xff] }
 0x4da   : > { %3668 = vmatprep.mubr.f32.mxu0 %v8174_v22  ;;  %5222 = vmatpush3.msra.mxu0 %v7885_v43  ;;  %v8322_v43 = vld [vmem:[#allocation13 + $0x98] sm:$0xff] }
 0x4db   : > { %5223 = vmatprep.subr.mxu0 %v7888_v16  ;;  %5647 = vmatprep.subr.mxu1 %v8265_v44  ;;  %v8327_v16 = vld [vmem:[#allocation13 + $0x90] sm:$0xff] }
 0x4dc   : > { %5224 = vmatpush3.msra.mxu0 %v7891_v56  ;;  %5648 = vmatpush3.msra.mxu1 %v8265_v44  ;;  %v8332_v56 = vld [vmem:[#allocation13 + $0x88] sm:$0xff] }
 0x4dd   : > { %3669 = vmatmul.mubr.f32.gmra.mxu0 %v8069_v50  ;;  %5225 = vmatprep.subr.mxu0 %v7894_v39  ;;  %v8337_v39 = vld [vmem:[#allocation13 + $0x80] sm:$0xff] }
 0x4de   : > { %3673 = vmatprep.mubr.f32.mxu0 %v8178_v20  ;;  %5226 = vmatpush3.msra.mxu0 %v7897_v3 }
 0x4df   : > { %5227 = vmatprep.subr.mxu0 %v7900_v33  ;;  %5649 = vmatprep.subr.mxu1 %v8275_v62  ;;  %v8353_v33 = vld [vmem:[%s8909_s7 + $0x1] ss:$0 sm:$0xff] }
 0x4e0   : > { %5228 = vmatpush3.msra.mxu0 %v7903_v32  ;;  %5650 = vmatpush3.msra.mxu1 %v8275_v62 }
 0x4e1   : > { %3674 = vmatmul.mubr.f32.gmra.mxu0 %v8066_v55  ;;  %5229 = vmatprep.subr.mxu0 %v7906_v24 }
 0x4e2   : > { %3678 = vmatprep.mubr.f32.mxu0 %v8196_v49  ;;  %5230 = vmatpush3.msra.mxu0 %v7909_v5 }
 0x4e3   : > { %5231 = vmatprep.subr.mxu0 %v7912_v11  ;;  %5651 = vmatprep.subr.mxu1 %v8285_v29 }
 0x4e4   : > { %5232 = vmatpush3.msra.mxu0 %v7915_v54  ;;  %5652 = vmatpush3.msra.mxu1 %v8285_v29 }
 0x4e5   : > { %3679 = vmatmul.mubr.f32.gmra.mxu0 %v8106_v19  ;;  %5233 = vmatprep.subr.mxu0 %v7918_v51 }
 0x4e6   : > { %3683 = vmatprep.mubr.f32.mxu0 %v8200_v42  ;;  %5234 = vmatpush3.msra.mxu0 %v7921_v40 }
 0x4e7   : > { %5235 = vmatprep.subr.mxu0 %v7924_v30  ;;  %5653 = vmatprep.subr.mxu1 %v8291_v28 }
 0x4e8   : > { %5236 = vmatpush3.msra.mxu0 %v9058_v58  ;;  %5654 = vmatpush3.msra.mxu1 %v8291_v28 }
 0x4e9   : > { %3684 = vmatmul.mubr.f32.gmra.mxu0 %v8103_v15  ;;  %5237 = vmatprep.subr.mxu0 %v9059_v61 }
 0x4ea   : > { %5238 = vmatpush3.msra.mxu0 %v9060_v53  ;;  %3946 = vmatprep.mubr.f32.mxu0 %v7995_v10 }
 0x4eb   : > { %5239 = vmatprep.subr.mxu0 %v9061_v13  ;;  %5655 = vmatprep.subr.mxu1 %v8297_v27 }
 0x4ec   : > { %5240 = vmatpush3.msra.mxu0 %v9062_v63  ;;  %5656 = vmatpush3.msra.mxu1 %v8297_v27 }
 0x4ed   : > { %3947 = vmatmul.mubr.f32.vlgmr.msra.gmra.mxu0 %v8129_v60  ;;  %5657 = vmatprep.subr.mxu1 %v8302_v8 }
 0x4ee   : > { %3951 = vmatprep.mubr.f32.mxu0 %v8004_v41  ;;  %5658 = vmatpush3.msra.mxu1 %v8302_v8 }
 0x4ef   : > { %5659 = vmatprep.subr.mxu1 %v8307_v38 }
 0x4f0   : > { %5660 = vmatpush3.msra.mxu1 %v8307_v38 }
 0x4f1   : > { %3952 = vmatmul.mubr.f32.gmra.mxu0 %v8134_v36  ;;  %5661 = vmatprep.subr.mxu1 %v8312_v17 }
 0x4f2   : > { %3956 = vmatprep.mubr.f32.mxu0 %v8028_v47  ;;  %5662 = vmatpush3.msra.mxu1 %v8312_v17 }
 0x4f3   : > { %5663 = vmatprep.subr.mxu1 %v8317_v48 }
 0x4f4   : > { %5664 = vmatpush3.msra.mxu1 %v8317_v48 }
 0x4f5   : > { %3957 = vmatmul.mubr.f32.gmra.mxu0 %v8151_v25  ;;  %5665 = vmatprep.subr.mxu1 %v8322_v43 }
 0x4f6   : > { %3961 = vmatprep.mubr.f32.mxu0 %v8034_v45  ;;  %5666 = vmatpush3.msra.mxu1 %v8322_v43 }
 0x4f7   : > { %5667 = vmatprep.subr.mxu1 %v8327_v16 }
 0x4f8   : > { %5668 = vmatpush3.msra.mxu1 %v8327_v16 }
 0x4f9   : > { %3962 = vmatmul.mubr.f32.gmra.mxu0 %v8156_v21  ;;  %5669 = vmatprep.subr.mxu1 %v8332_v56 }
 0x4fa   : > { %3966 = vmatprep.mubr.f32.mxu0 %v8069_v50  ;;  %5670 = vmatpush3.msra.mxu1 %v8332_v56 }
 0x4fb   : > { %5671 = vmatprep.subr.mxu1 %v8337_v39 }
 0x4fc   : > { %5672 = vmatpush3.msra.mxu1 %v8337_v39 }
 0x4fd   : > { %3967 = vmatmul.mubr.f32.gmra.mxu0 %v8174_v22  ;;  %5685 = vmatprep.subr.mxu1 %v8239_v18 }
 0x4fe   : > { %3971 = vmatprep.mubr.f32.mxu0 %v8066_v55 }
 0x501   : > { %3972 = vmatmul.mubr.f32.gmra.mxu0 %v8178_v20 }
 0x502   : > { %3976 = vmatprep.mubr.f32.mxu0 %v8106_v19 }
 0x505   : > { %3977 = vmatmul.mubr.f32.gmra.mxu0 %v8196_v49 }
 0x506   : > { %3981 = vmatprep.mubr.f32.mxu0 %v8103_v15 }
 0x509   : > { %3982 = vmatmul.mubr.f32.gmra.mxu0 %v8200_v42 }
 0x54d   : > { %v5001_v3 = vpop.f32.mrf.mxu0 }
 0x54f   : > { %v5002_v32 = vpop.f32.mrf.mxu0 }
 0x550   : > { %v5003_v24 = vadd.f32 %v5002_v32, %v5001_v3 }
 0x551   : > { %v5004_v5 = vpop.f32.mrf.mxu0 }
 0x552   : > { %v8356_v11 = vadd.f32 %v5003_v24, %v8353_v33 }
 0x553   : > { %v5005_v54 = vpop.f32.mrf.mxu0 }
 0x554   : > { %v3004_v51 = vmul.f32 %v8356_v11, %v8356_v11  ;;  %v5006_v40 = vadd.f32 %v5005_v54, %v5004_v5 }
 0x555   : > { %v5007_v30 = vpop.f32.mrf.mxu0 }
 0x556   : > { %v3012_v58 = vmul.f32 %v3004_v51, %v8356_v11  ;;  %v8362_v61 = vadd.f32 %v5006_v40, %v8353_v33 }
 0x557   : > { %v5008_v53 = vpop.f32.mrf.mxu0 }
 0x558   : > { %v3020_v13 = vmul.f32 0.044715, %v3012_v58  ;;  %v3005_v63 = vmul.f32 %v8362_v61, %v8362_v61  ;;  %v5009_v34 = vadd.f32 %v5008_v53, %v5007_v30 }
 0x559   : > { %v5010_v4 = vpop.f32.mrf.mxu0 }
 0x55a   : > { %v3028_v1 = vadd.f32 %v3020_v13, %v8356_v11  ;;  %v3013_v37 = vmul.f32 %v3005_v63, %v8362_v61  ;;  %v8369_v31 = vadd.f32 %v5009_v34, %v8353_v33 }
 0x55b   : > { %v5011_v52 = vpop.f32.mrf.mxu0 }
 0x55c   : > { %v3021_v7 = vmul.f32 0.044715, %v3013_v37  ;;  %v3006_v35 = vmul.f32 %v8369_v31, %v8369_v31  ;;  %v5012_v57 = vadd.f32 %v5011_v52, %v5010_v4  ;;  %v3036_v14 = vmul.f32 0.7978846, %v3028_v1 }
 0x55d   : > { %v5013_v9 = vpop.f32.mrf.mxu0 }
 0x55e   : > { %v3029_v12 = vadd.f32 %v3021_v7, %v8362_v61  ;;  %v3014_v2 = vmul.f32 %v3006_v35, %v8369_v31  ;;  %v8376_v6 = vadd.f32 %v5012_v57, %v8353_v33  ;;  %6071 = vtanh.f32 %v3036_v14 }
 0x55f   : > { %v5014_v46 = vpop.f32.mrf.mxu0 }
 0x560   : > { %v3037_v23 = vmul.f32 0.7978846, %v3029_v12  ;;  %v3022_v0 = vmul.f32 0.044715, %v3014_v2  ;;  %v3007_v3 = vmul.f32 %v8376_v6, %v8376_v6  ;;  %v5015_v32 = vadd.f32 %v5014_v46, %v5013_v9 }
 0x561   : > { %v5016_v24 = vpop.f32.mrf.mxu0 }
 0x562   : > { %6073 = vtanh.f32 %v3037_v23  ;;  %v3030_v5 = vadd.f32 %v3022_v0, %v8369_v31  ;;  %v3015_v54 = vmul.f32 %v3007_v3, %v8376_v6  ;;  %v8383_v51 = vadd.f32 %v5015_v32, %v8353_v33 }
 0x563   : > { %v5017_v40 = vpop.f32.mrf.mxu0 }
 0x564   : > { %v3023_v30 = vmul.f32 0.044715, %v3015_v54  ;;  %v3008_v58 = vmul.f32 %v8383_v51, %v8383_v51  ;;  %v5018_v53 = vadd.f32 %v5017_v40, %v5016_v24  ;;  %v3038_v13 = vmul.f32 0.7978846, %v3030_v5 }
 0x565   : > { %v5019_v63 = vpop.f32.mrf.mxu0 }
 0x566   : > { %v3031_v34 = vadd.f32 %v3023_v30, %v8376_v6  ;;  %v3016_v4 = vmul.f32 %v3008_v58, %v8383_v51  ;;  %v8390_v1 = vadd.f32 %v5018_v53, %v8353_v33  ;;  %6075 = vtanh.f32 %v3038_v13 }
 0x567   : > { %v5020_v37 = vpop.f32.mrf.mxu0 }
 0x568   : > { %v3024_v52 = vmul.f32 0.044715, %v3016_v4  ;;  %v3009_v7 = vmul.f32 %v8390_v1, %v8390_v1  ;;  %v5021_v35 = vadd.f32 %v5020_v37, %v5019_v63  ;;  %v3039_v57 = vmul.f32 0.7978846, %v3031_v34 }
 0x569   : > { %v5022_v14 = vpop.f32.mrf.mxu0 }
 0x56a   : > { %v3032_v9 = vadd.f32 %v3024_v52, %v8383_v51  ;;  %v3017_v12 = vmul.f32 %v3009_v7, %v8390_v1  ;;  %v8397_v2 = vadd.f32 %v5021_v35, %v8353_v33  ;;  %6077 = vtanh.f32 %v3039_v57 }
 0x56b   : > { %v6072_v46 = vpop.eup %6071  ;;  %v5023_v23 = vpop.f32.mrf.mxu0 }
 0x56c   : > { %v3025_v0 = vmul.f32 0.044715, %v3017_v12  ;;  %v3010_v3 = vmul.f32 %v8397_v2, %v8397_v2  ;;  %v5024_v32 = vadd.f32 %v5023_v23, %v5022_v14  ;;  %v3052_v24 = vadd.f32 1.0, %v6072_v46 }
 0x56d   : > { %v5081_v5 = vpop.f32.mrf.mxu0  ;;  %v3040_v54 = vmul.f32 0.7978846, %v3032_v9 }
 0x56e   : > { %v3033_v40 = vadd.f32 %v3025_v0, %v8390_v1  ;;  %v3018_v30 = vmul.f32 %v3010_v3, %v8397_v2  ;;  %v8404_v58 = vadd.f32 %v5024_v32, %v8353_v33  ;;  %v3060_v53 = vmul.f32 0.5, %v3052_v24 }
 0x56f   : > { %v6074_v13 = vpop.eup %6073  ;;  %v5082_v63 = vpop.f32.mrf.mxu0  ;;  %6079 = vtanh.f32 %v3040_v54 }
 0x570   : > { %v3053_v34 = vadd.f32 1.0, %v6074_v13  ;;  %v3026_v4 = vmul.f32 0.044715, %v3018_v30  ;;  %v3011_v37 = vmul.f32 %v8404_v58, %v8404_v58  ;;  %v5083_v52 = vadd.f32 %v5082_v63, %v5081_v5 }
 0x571   : > { %v5084_v7 = vpop.f32.mrf.mxu0  ;;  %v3068_v35 = vmul.f32 %v3060_v53, %v8356_v11  ;;  %v3041_v57 = vmul.f32 0.7978846, %v3033_v40 }
 0x572   : > { %v3061_v14 = vmul.f32 0.5, %v3053_v34  ;;  %v3034_v9 = vadd.f32 %v3026_v4, %v8397_v2  ;;  %v3019_v12 = vmul.f32 %v3011_v37, %v8404_v58  ;;  %v8412_v46 = vadd.f32 %v5083_v52, %v8353_v33 }
 0x573   : > { %v6076_v23 = vpop.eup %6075  ;;  %5673 = vmatprep.mubr.f32.mxu1 %v3068_v35  ;;  %v5085_v0 = vpop.f32.mrf.mxu0  ;;  %6081 = vtanh.f32 %v3041_v57 }
 0x574   : > { %v3069_v3 = vmul.f32 %v3061_v14, %v8362_v61  ;;  %v3027_v32 = vmul.f32 0.044715, %v3019_v12  ;;  %v3333_v24 = vmul.f32 %v8412_v46, %v8412_v46  ;;  %v5086_v11 = vadd.f32 %v5085_v0, %v5084_v7 }
 0x575   : > { %v5087_v5 = vpop.f32.mrf.mxu0  ;;  %v3054_v54 = vadd.f32 1.0, %v6076_v23  ;;  %v3042_v40 = vmul.f32 0.7978846, %v3034_v9 }
 0x576   : > { %v3035_v30 = vadd.f32 %v3027_v32, %v8404_v58  ;;  %v3341_v53 = vmul.f32 %v3333_v24, %v8412_v46  ;;  %v8420_v13 = vadd.f32 %v5086_v11, %v8353_v33  ;;  %5674 = vmatmul.mubr.f32.vlgmr.msra.gmra.mxu1 %v3069_v3 }
 0x577   : > { %v6078_v63 = vpop.eup %6077  ;;  %v5088_v34 = vpop.f32.mrf.mxu0  ;;  %5686 = vmatpush3.msra.mxu1 %v8239_v18  ;;  %v3062_v61 = vmul.f32 0.5, %v3054_v54  ;;  %6083 = vtanh.f32 %v3042_v40 }
 0x578   : > { %v3349_v4 = vmul.f32 0.044715, %v3341_v53  ;;  %v3334_v37 = vmul.f32 %v8420_v13, %v8420_v13  ;;  %v5089_v52 = vadd.f32 %v5088_v34, %v5087_v5  ;;  %5687 = vmatprep.subr.mxu1 %v8245_v59  ;;  %v3055_v7 = vadd.f32 1.0, %v6078_v63 }
 0x579   : > { %v5090_v35 = vpop.f32.mrf.mxu0  ;;  %5688 = vmatpush3.msra.mxu1 %v8245_v59  ;;  %v3070_v57 = vmul.f32 %v3062_v61, %v8369_v31  ;;  %v3043_v14 = vmul.f32 0.7978846, %v3035_v30 }
 0x57a   : > { %v3357_v9 = vadd.f32 %v3349_v4, %v8412_v46  ;;  %v3342_v12 = vmul.f32 %v3334_v37, %v8420_v13  ;;  %v8431_v23 = vadd.f32 %v5089_v52, %v8353_v33  ;;  %5689 = vmatprep.subr.mxu1 %v8255_v26  ;;  %v3063_v0 = vmul.f32 0.5, %v3055_v7 }
 0x57b   : > { %5676 = vmatprep.mubr.f32.mxu1 %v3070_v57  ;;  %v5091_v3 = vpop.f32.mrf.mxu0  ;;  %5690 = vmatpush3.msra.mxu1 %v8255_v26  ;;  %6085 = vtanh.f32 %v3043_v14 }
 0x57c   : > { %v6080_v32 = vpop.eup %6079  ;;  %v3350_v24 = vmul.f32 0.044715, %v3342_v12  ;;  %v3335_v31 = vmul.f32 %v8431_v23, %v8431_v23  ;;  %v5092_v11 = vadd.f32 %v5091_v3, %v5090_v35  ;;  %5691 = vmatprep.subr.mxu1 %v8265_v44  ;;  %v3071_v5 = vmul.f32 %v3063_v0, %v8376_v6 }
 0x57d   : > { %v5093_v54 = vpop.f32.mrf.mxu0  ;;  %5692 = vmatpush3.msra.mxu1 %v8265_v44  ;;  %v3056_v40 = vadd.f32 1.0, %v6080_v32  ;;  %v3365_v30 = vmul.f32 0.7978846, %v3357_v9 }
 0x57e   : > { %v3358_v53 = vadd.f32 %v3350_v24, %v8420_v13  ;;  %v3343_v63 = vmul.f32 %v3335_v31, %v8431_v23  ;;  %v8443_v34 = vadd.f32 %v5092_v11, %v8353_v33  ;;  %5677 = vmatmul.mubr.f32.gmra.mxu1 %v3071_v5  ;;  %5693 = vmatprep.subr.mxu1 %v8275_v62 }
 0x57f   : > { %v5094_v61 = vpop.f32.mrf.mxu0  ;;  %5694 = vmatpush3.msra.mxu1 %v8275_v62  ;;  %v3064_v4 = vmul.f32 0.5, %v3056_v40  ;;  %6087 = vtanh.f32 %v3365_v30 }
 0x580   : > { %v6082_v6 = vpop.eup %6081  ;;  %v3366_v37 = vmul.f32 0.7978846, %v3358_v53  ;;  %v3351_v52 = vmul.f32 0.044715, %v3343_v63  ;;  %v3336_v7 = vmul.f32 %v8443_v34, %v8443_v34  ;;  %v5095_v35 = vadd.f32 %v5094_v61, %v5093_v54  ;;  %5695 = vmatprep.subr.mxu1 %v8285_v29 }
 0x581   : > { %v5096_v57 = vpop.f32.mrf.mxu0  ;;  %5696 = vmatpush3.msra.mxu1 %v8285_v29  ;;  %v3072_v14 = vmul.f32 %v3064_v4, %v8383_v51  ;;  %v3057_v9 = vadd.f32 1.0, %v6082_v6 }
 0x582   : > { %6089 = vtanh.f32 %v3366_v37  ;;  %v3359_v12 = vadd.f32 %v3351_v52, %v8431_v23  ;;  %v3344_v0 = vmul.f32 %v3336_v7, %v8443_v34  ;;  %v8455_v3 = vadd.f32 %v5095_v35, %v8353_v33  ;;  %5697 = vmatprep.subr.mxu1 %v8291_v28 }
 0x583   : > { %5679 = vmatprep.mubr.f32.mxu1 %v3072_v14  ;;  %v5097_v32 = vpop.f32.mrf.mxu0  ;;  %5698 = vmatpush3.msra.mxu1 %v8291_v28  ;;  %v3065_v24 = vmul.f32 0.5, %v3057_v9 }
 0x584   : > { %v6084_v31 = vpop.eup %6083  ;;  %v3352_v11 = vmul.f32 0.044715, %v3344_v0  ;;  %v3337_v51 = vmul.f32 %v8455_v3, %v8455_v3  ;;  %v5098_v5 = vadd.f32 %v5097_v32, %v5096_v57  ;;  %5699 = vmatprep.subr.mxu1 %v8297_v27  ;;  %v3367_v54 = vmul.f32 0.7978846, %v3359_v12 }
 0x585   : > { %v5099_v40 = vpop.f32.mrf.mxu0  ;;  %5700 = vmatpush3.msra.mxu1 %v8297_v27  ;;  %v3073_v30 = vmul.f32 %v3065_v24, %v8390_v1  ;;  %v3058_v53 = vadd.f32 1.0, %v6084_v31 }
 0x586   : > { %v3360_v63 = vadd.f32 %v3352_v11, %v8443_v34  ;;  %v3345_v61 = vmul.f32 %v3337_v51, %v8455_v3  ;;  %v8467_v4 = vadd.f32 %v5098_v5, %v8353_v33  ;;  %5701 = vmatprep.subr.mxu1 %v8302_v8  ;;  %6091 = vtanh.f32 %v3367_v54 }
 0x587   : > { %5680 = vmatmul.mubr.f32.gmra.mxu1 %v3073_v30  ;;  %v5100_v6 = vpop.f32.mrf.mxu0  ;;  %v3066_v37 = vmul.f32 0.5, %v3058_v53 }
 0x588   : > { %v6086_v52 = vpop.eup %6085  ;;  %v3353_v7 = vmul.f32 0.044715, %v3345_v61  ;;  %v3338_v35 = vmul.f32 %v8467_v4, %v8467_v4  ;;  %v5101_v1 = vadd.f32 %v5100_v6, %v5099_v40  ;;  %5702 = vmatpush3.msra.mxu1 %v8302_v8  ;;  %v3368_v57 = vmul.f32 0.7978846, %v3360_v63 }
 0x589   : > { %5703 = vmatprep.subr.mxu1 %v8307_v38  ;;  %v5102_v14 = vpop.f32.mrf.mxu0  ;;  %v3074_v9 = vmul.f32 %v3066_v37, %v8397_v2  ;;  %v3059_v12 = vadd.f32 1.0, %v6086_v52 }
 0x58a   : > { %v3361_v0 = vadd.f32 %v3353_v7, %v8455_v3  ;;  %v3346_v32 = vmul.f32 %v3338_v35, %v8467_v4  ;;  %v8478_v24 = vadd.f32 %v5101_v1, %v8353_v33  ;;  %5704 = vmatpush3.msra.mxu1 %v8307_v38  ;;  %6093 = vtanh.f32 %v3368_v57 }
 0x58b   : > { %5682 = vmatprep.mubr.f32.mxu1 %v3074_v9  ;;  %5705 = vmatprep.subr.mxu1 %v8312_v17  ;;  %v5103_v31 = vpop.f32.mrf.mxu0  ;;  %v3067_v11 = vmul.f32 0.5, %v3059_v12 }
 0x58c   : > { %v6088_v51 = vpop.eup %6087  ;;  %v3354_v5 = vmul.f32 0.044715, %v3346_v32  ;;  %v3339_v2 = vmul.f32 %v8478_v24, %v8478_v24  ;;  %v5104_v54 = vadd.f32 %v5103_v31, %v5102_v14  ;;  %5706 = vmatpush3.msra.mxu1 %v8312_v17  ;;  %v3369_v40 = vmul.f32 0.7978846, %v3361_v0 }
 0x58d   : > { %5707 = vmatprep.subr.mxu1 %v8317_v48  ;;  %v5161_v30 = vpop.f32.mrf.mxu0  ;;  %v3075_v53 = vmul.f32 %v3067_v11, %v8404_v58  ;;  %v3381_v63 = vadd.f32 1.0, %v6088_v51 }
 0x58e   : > { %v3362_v61 = vadd.f32 %v3354_v5, %v8467_v4  ;;  %v3347_v6 = vmul.f32 %v3339_v2, %v8478_v24  ;;  %v8490_v37 = vadd.f32 %v5104_v54, %v8353_v33  ;;  %5708 = vmatpush3.msra.mxu1 %v8317_v48  ;;  %6095 = vtanh.f32 %v3369_v40 }
 0x58f   : > { %v6090_v52 = vpop.eup %6089  ;;  %5683 = vmatmul.mubr.f32.gmra.mxu1 %v3075_v53  ;;  %5709 = vmatprep.subr.mxu1 %v8322_v43  ;;  %v5162_v7 = vpop.f32.mrf.mxu0  ;;  %v3389_v35 = vmul.f32 0.5, %v3381_v63 }
 0x590   : > { %v3382_v1 = vadd.f32 1.0, %v6090_v52  ;;  %v3355_v57 = vmul.f32 0.044715, %v3347_v6  ;;  %v3340_v58 = vmul.f32 %v8490_v37, %v8490_v37  ;;  %5710 = vmatpush3.msra.mxu1 %v8322_v43  ;;  %v5163_v14 = vadd.f32 %v5162_v7, %v5161_v30 }
 0x591   : > { %5711 = vmatprep.subr.mxu1 %v8327_v16  ;;  %v5164_v9 = vpop.f32.mrf.mxu0  ;;  %v3397_v12 = vmul.f32 %v3389_v35, %v8412_v46  ;;  %v3370_v0 = vmul.f32 0.7978846, %v3362_v61 }
 0x592   : > { %v3390_v32 = vmul.f32 0.5, %v3382_v1  ;;  %v3363_v31 = vadd.f32 %v3355_v57, %v8478_v24  ;;  %v3348_v11 = vmul.f32 %v3340_v58, %v8490_v37  ;;  %v8502_v51 = vadd.f32 %v5163_v14, %v8353_v33  ;;  %5712 = vmatpush3.msra.mxu1 %v8327_v16 }
 0x593   : > { %v6092_v5 = vpop.eup %6091  ;;  %5713 = vmatprep.subr.mxu1 %v8332_v56  ;;  %5717 = vmatprep.mubr.f32.mxu1 %v3397_v12  ;;  %v5165_v2 = vpop.f32.mrf.mxu0  ;;  %6097 = vtanh.f32 %v3370_v0 }
 0x594   : > { %v3398_v54 = vmul.f32 %v3390_v32, %v8420_v13  ;;  %v3356_v46 = vmul.f32 0.044715, %v3348_v11  ;;  %v3689_v40 = vmul.f32 %v8502_v51, %v8502_v51  ;;  %5714 = vmatpush3.msra.mxu1 %v8332_v56  ;;  %v5166_v30 = vadd.f32 %v5165_v2, %v5164_v9 }
 0x595   : > { %5715 = vmatprep.subr.mxu1 %v8337_v39  ;;  %v5167_v53 = vpop.f32.mrf.mxu0  ;;  %v3383_v63 = vadd.f32 1.0, %v6092_v5  ;;  %v3371_v61 = vmul.f32 0.7978846, %v3363_v31 }
 0x596   : > { %v3364_v6 = vadd.f32 %v3356_v46, %v8490_v37  ;;  %v3697_v52 = vmul.f32 %v3689_v40, %v8502_v51  ;;  %v8514_v7 = vadd.f32 %v5166_v30, %v8353_v33  ;;  %5716 = vmatpush3.msra.mxu1 %v8337_v39 }
 0x597   : > { %v6094_v13 = vpop.eup %6093  ;;  %5718 = vmatmul.mubr.f32.vlgmr.msra.gmra.mxu1 %v3398_v54  ;;  %5729 = vmatprep.subr.mxu1 %v8239_v18  ;;  %v5168_v35 = vpop.f32.mrf.mxu0  ;;  %v3391_v1 = vmul.f32 0.5, %v3383_v63  ;;  %6099 = vtanh.f32 %v3371_v61 }
 0x598   : > { %v3705_v57 = vmul.f32 0.044715, %v3697_v52  ;;  %v3690_v58 = vmul.f32 %v8514_v7, %v8514_v7  ;;  %v5169_v14 = vadd.f32 %v5168_v35, %v5167_v53  ;;  %5730 = vmatpush3.msra.mxu1 %v8239_v18  ;;  %v3384_v9 = vadd.f32 1.0, %v6094_v13 }
 0x599   : > { %5731 = vmatprep.subr.mxu1 %v8245_v59  ;;  %v5170_v12 = vpop.f32.mrf.mxu0  ;;  %v3399_v0 = vmul.f32 %v3391_v1, %v8431_v23  ;;  %v3372_v32 = vmul.f32 0.7978846, %v3364_v6 }
 0x59a   : > { %v3713_v31 = vadd.f32 %v3705_v57, %v8502_v51  ;;  %v3698_v11 = vmul.f32 %v3690_v58, %v8514_v7  ;;  %v8526_v5 = vadd.f32 %v5169_v14, %v8353_v33  ;;  %5732 = vmatpush3.msra.mxu1 %v8245_v59  ;;  %v3392_v2 = vmul.f32 0.5, %v3384_v9 }
 0x59b   : > { %v6096_v54 = vpop.eup %6095  ;;  %5720 = vmatprep.mubr.f32.mxu1 %v3399_v0  ;;  %5733 = vmatprep.subr.mxu1 %v8255_v26  ;;  %v5171_v46 = vpop.f32.mrf.mxu0  ;;  %6101 = vtanh.f32 %v3372_v32 }
 0x59c   : > { %v3706_v40 = vmul.f32 0.044715, %v3698_v11  ;;  %v3691_v23 = vmul.f32 %v8526_v5, %v8526_v5  ;;  %v5172_v30 = vadd.f32 %v5171_v46, %v5170_v12  ;;  %5734 = vmatpush3.msra.mxu1 %v8255_v26  ;;  %v3400_v53 = vmul.f32 %v3392_v2, %v8443_v34 }
 0x59d   : > { %5735 = vmatprep.subr.mxu1 %v8265_v44  ;;  %v5173_v63 = vpop.f32.mrf.mxu0  ;;  %v3385_v61 = vadd.f32 1.0, %v6096_v54  ;;  %v3721_v6 = vmul.f32 0.7978846, %v3713_v31 }
 0x59e   : > { %v3714_v52 = vadd.f32 %v3706_v40, %v8514_v7  ;;  %v3699_v13 = vmul.f32 %v3691_v23, %v8526_v5  ;;  %v8538_v35 = vadd.f32 %v5172_v30, %v8353_v33  ;;  %5736 = vmatpush3.msra.mxu1 %v8265_v44 }
 0x59f   : > { %5721 = vmatmul.mubr.f32.gmra.mxu1 %v3400_v53  ;;  %5737 = vmatprep.subr.mxu1 %v8275_v62  ;;  %v5174_v1 = vpop.f32.mrf.mxu0  ;;  %v3393_v57 = vmul.f32 0.5, %v3385_v61  ;;  %6103 = vtanh.f32 %v3721_v6 }
 0x5a0   : > { %v6098_v34 = vpop.eup %6097  ;;  %v3722_v58 = vmul.f32 0.7978846, %v3714_v52  ;;  %v3707_v14 = vmul.f32 0.044715, %v3699_v13  ;;  %v3692_v9 = vmul.f32 %v8538_v35, %v8538_v35  ;;  %v5175_v12 = vadd.f32 %v5174_v1, %v5173_v63  ;;  %5738 = vmatpush3.msra.mxu1 %v8275_v62 }
 0x5a1   : > { %5739 = vmatprep.subr.mxu1 %v8285_v29  ;;  %v5176_v0 = vpop.f32.mrf.mxu0  ;;  %v3401_v32 = vmul.f32 %v3393_v57, %v8455_v3  ;;  %v3386_v31 = vadd.f32 1.0, %v6098_v34 }
 0x5a2   : > { %6105 = vtanh.f32 %v3722_v58  ;;  %v3715_v11 = vadd.f32 %v3707_v14, %v8526_v5  ;;  %v3700_v2 = vmul.f32 %v3692_v9, %v8538_v35  ;;  %v8550_v54 = vadd.f32 %v5175_v12, %v8353_v33  ;;  %5740 = vmatpush3.msra.mxu1 %v8285_v29 }
 0x5a3   : > { %5723 = vmatprep.mubr.f32.mxu1 %v3401_v32  ;;  %5741 = vmatprep.subr.mxu1 %v8291_v28  ;;  %v5177_v46 = vpop.f32.mrf.mxu0  ;;  %v3394_v40 = vmul.f32 0.5, %v3386_v31 }
 0x5a4   : > { %v6100_v23 = vpop.eup %6099  ;;  %v3708_v30 = vmul.f32 0.044715, %v3700_v2  ;;  %v3693_v3 = vmul.f32 %v8550_v54, %v8550_v54  ;;  %v5178_v53 = vadd.f32 %v5177_v46, %v5176_v0  ;;  %5742 = vmatpush3.msra.mxu1 %v8291_v28  ;;  %v3723_v63 = vmul.f32 0.7978846, %v3715_v11 }
 0x5a5   : > { %5743 = vmatprep.subr.mxu1 %v8297_v27  ;;  %v5179_v61 = vpop.f32.mrf.mxu0  ;;  %v3402_v6 = vmul.f32 %v3394_v40, %v8467_v4  ;;  %v3387_v52 = vadd.f32 1.0, %v6100_v23 }
 0x5a6   : > { %v3716_v13 = vadd.f32 %v3708_v30, %v8538_v35  ;;  %v3701_v1 = vmul.f32 %v3693_v3, %v8550_v54  ;;  %v8562_v57 = vadd.f32 %v5178_v53, %v8353_v33  ;;  %5744 = vmatpush3.msra.mxu1 %v8297_v27  ;;  %6107 = vtanh.f32 %v3723_v63 }
 0x5a7   : > { %5724 = vmatmul.mubr.f32.gmra.mxu1 %v3402_v6  ;;  %5745 = vmatprep.subr.mxu1 %v8302_v8  ;;  %v5180_v34 = vpop.f32.mrf.mxu0  ;;  %v3395_v58 = vmul.f32 0.5, %v3387_v52 }
 0x5a8   : > { %v6102_v14 = vpop.eup %6101  ;;  %v3709_v9 = vmul.f32 0.044715, %v3701_v1  ;;  %v3694_v4 = vmul.f32 %v8562_v57, %v8562_v57  ;;  %v5181_v12 = vadd.f32 %v5180_v34, %v5179_v61  ;;  %5746 = vmatpush3.msra.mxu1 %v8302_v8  ;;  %v3724_v0 = vmul.f32 0.7978846, %v3716_v13 }
 0x5a9   : > { %5747 = vmatprep.subr.mxu1 %v8307_v38  ;;  %v5182_v32 = vpop.f32.mrf.mxu0  ;;  %v3403_v27 = vmul.f32 %v3395_v58, %v8478_v24  ;;  %v3388_v31 = vadd.f32 1.0, %v6102_v14 }
 0x5aa   : > { %v3717_v11 = vadd.f32 %v3709_v9, %v8550_v54  ;;  %v3702_v2 = vmul.f32 %v3694_v4, %v8562_v57  ;;  %v8574_v46 = vadd.f32 %v5181_v12, %v8353_v33  ;;  %5748 = vmatpush3.msra.mxu1 %v8307_v38  ;;  %6109 = vtanh.f32 %v3724_v0 }
 0x5ab   : > { %5726 = vmatprep.mubr.f32.mxu1 %v3403_v27  ;;  %5749 = vmatprep.subr.mxu1 %v8312_v17  ;;  %v5183_v8 = vpop.f32.mrf.mxu0  ;;  %v3396_v40 = vmul.f32 0.5, %v3388_v31 }
 0x5ac   : > { %v6104_v23 = vpop.eup %6103  ;;  %v3710_v30 = vmul.f32 0.044715, %v3702_v2  ;;  %v3695_v24 = vmul.f32 %v8574_v46, %v8574_v46  ;;  %v5184_v3 = vadd.f32 %v5183_v8, %v5182_v32  ;;  %5750 = vmatpush3.msra.mxu1 %v8312_v17  ;;  %v3725_v53 = vmul.f32 0.7978846, %v3717_v11 }
 0x5ad   : > { %5751 = vmatprep.subr.mxu1 %v8317_v48  ;;  %v5241_v63 = vpop.f32.mrf.mxu0  ;;  %v3404_v38 = vmul.f32 %v3396_v40, %v8490_v37  ;;  %v3737_v61 = vadd.f32 1.0, %v6104_v23 }
 0x5ae   : > { %v3718_v6 = vadd.f32 %v3710_v30, %v8562_v57  ;;  %v3703_v52 = vmul.f32 %v3695_v24, %v8574_v46  ;;  %v8586_v13 = vadd.f32 %v5184_v3, %v8353_v33  ;;  %5752 = vmatpush3.msra.mxu1 %v8317_v48  ;;  %6111 = vtanh.f32 %v3725_v53 }
 0x5af   : > { %v6106_v1 = vpop.eup %6105  ;;  %5727 = vmatmul.mubr.f32.gmra.mxu1 %v3404_v38  ;;  %5753 = vmatprep.subr.mxu1 %v8322_v43  ;;  %v5242_v17 = vpop.f32.mrf.mxu0  ;;  %v3745_v34 = vmul.f32 0.5, %v3737_v61 }
 0x5b0   : > { %v3738_v58 = vadd.f32 1.0, %v6106_v1  ;;  %v3711_v14 = vmul.f32 0.044715, %v3703_v52  ;;  %v3696_v37 = vmul.f32 %v8586_v13, %v8586_v13  ;;  %5754 = vmatpush3.msra.mxu1 %v8322_v43  ;;  %v5243_v9 = vadd.f32 %v5242_v17, %v5241_v63 }
 0x5b1   : > { %5755 = vmatprep.subr.mxu1 %v8327_v16  ;;  %v5244_v4 = vpop.f32.mrf.mxu0  ;;  %v3753_v48 = vmul.f32 %v3745_v34, %v8502_v51  ;;  %v3726_v12 = vmul.f32 0.7978846, %v3718_v6 }
 0x5b2   : > { %v3746_v0 = vmul.f32 0.5, %v3738_v58  ;;  %v3719_v32 = vadd.f32 %v3711_v14, %v8574_v46  ;;  %v3704_v27 = vmul.f32 %v3696_v37, %v8586_v13  ;;  %v8598_v31 = vadd.f32 %v5243_v9, %v8353_v33  ;;  %5756 = vmatpush3.msra.mxu1 %v8327_v16 }
 0x5b3   : > { %v6108_v11 = vpop.eup %6107  ;;  %5757 = vmatprep.subr.mxu1 %v8332_v56  ;;  %5761 = vmatprep.mubr.f32.mxu1 %v3753_v48  ;;  %v5245_v43 = vpop.f32.mrf.mxu0  ;;  %6113 = vtanh.f32 %v3726_v12  ;;  %v6147_v12 = vld [vmem:[#allocation13 + $0xe8] sm:$0xff] }
 0x5b4   : > { %v3754_v2 = vmul.f32 %v3746_v0, %v8514_v7  ;;  %v3712_v51 = vmul.f32 0.044715, %v3704_v27  ;;  %v3987_v8 = vmul.f32 %v8598_v31, %v8598_v31  ;;  %5758 = vmatpush3.msra.mxu1 %v8332_v56  ;;  %v5246_v40 = vadd.f32 %v5245_v43, %v5244_v4 }
 0x5b5   : > { %5759 = vmatprep.subr.mxu1 %v8337_v39  ;;  %v5247_v23 = vpop.f32.mrf.mxu0  ;;  %v3739_v30 = vadd.f32 1.0, %v6108_v11  ;;  %v3727_v16 = vmul.f32 0.7978846, %v3719_v32 }
 0x5b6   : > { %v3720_v24 = vadd.f32 %v3712_v51, %v8586_v13  ;;  %v3995_v3 = vmul.f32 %v3987_v8, %v8598_v31  ;;  %v8610_v53 = vadd.f32 %v5246_v40, %v8353_v33  ;;  %5760 = vmatpush3.msra.mxu1 %v8337_v39 }
 0x5b7   : > { %v6110_v7 = vpop.eup %6109  ;;  %5762 = vmatmul.mubr.f32.vlgmr.msra.gmra.mxu1 %v3754_v2  ;;  %5773 = vmatprep.subr.mxu1 %v8239_v18  ;;  %v5248_v56 = vpop.f32.mrf.mxu0  ;;  %v3747_v63 = vmul.f32 0.5, %v3739_v30  ;;  %6115 = vtanh.f32 %v3727_v16  ;;  %v6148_v2 = vld [vmem:[#allocation13 + $0xe0] sm:$0xff]  ;;  %v6149_v16 = vld [vmem:[#allocation13 + $0xd8] sm:$0xff] }
 0x5b8   : > { %v4003_v38 = vmul.f32 0.044715, %v3995_v3  ;;  %v3988_v61 = vmul.f32 %v8610_v53, %v8610_v53  ;;  %v5249_v6 = vadd.f32 %v5248_v56, %v5247_v23  ;;  %5774 = vmatpush3.msra.mxu1 %v8239_v18  ;;  %v3740_v52 = vadd.f32 1.0, %v6110_v7 }
 0x5b9   : > { %5775 = vmatprep.subr.mxu1 %v8245_v59  ;;  %v5250_v1 = vpop.f32.mrf.mxu0  ;;  %v3755_v39 = vmul.f32 %v3747_v63, %v8526_v5  ;;  %v3728_v17 = vmul.f32 0.7978846, %v3720_v24 }
 0x5ba   : > { %v4011_v34 = vadd.f32 %v4003_v38, %v8598_v31  ;;  %v3996_v58 = vmul.f32 %v3988_v61, %v8610_v53  ;;  %v8622_v14 = vadd.f32 %v5249_v6, %v8353_v33  ;;  %5776 = vmatpush3.msra.mxu1 %v8245_v59  ;;  %v3748_v37 = vmul.f32 0.5, %v3740_v52  ;;  %v6150_v38 = vld [vmem:[#allocation13 + $0xd0] sm:$0xff] }
 0x5bb   : > { %v6112_v9 = vpop.eup %6111  ;;  %5764 = vmatprep.mubr.f32.mxu1 %v3755_v39  ;;  %5777 = vmatprep.subr.mxu1 %v8255_v26  ;;  %v5251_v18 = vpop.f32.mrf.mxu0  ;;  %6117 = vtanh.f32 %v3728_v17  ;;  %v6151_v39 = vld [vmem:[#allocation13 + $0xc8] sm:$0xff] }
 0x5bc   : > { %v4004_v4 = vmul.f32 0.044715, %v3996_v58  ;;  %v3989_v5 = vmul.f32 %v8622_v14, %v8622_v14  ;;  %v5252_v48 = vadd.f32 %v5251_v18, %v5250_v1  ;;  %5778 = vmatpush3.msra.mxu1 %v6147_v12  ;;  %v3756_v0 = vmul.f32 %v3748_v37, %v8538_v35 }
 0x5bd   : > { %5779 = vmatprep.subr.mxu1 %v8265_v44  ;;  %v5253_v32 = vpop.f32.mrf.mxu0  ;;  %v3741_v59 = vadd.f32 1.0, %v6112_v9  ;;  %v4019_v27 = vmul.f32 0.7978846, %v4011_v34  ;;  %v6152_v34 = vld [vmem:[#allocation13 + $0xc0] sm:$0xff] }
 0x5be   : > { %v4012_v11 = vadd.f32 %v4004_v4, %v8610_v53  ;;  %v3997_v26 = vmul.f32 %v3989_v5, %v8622_v14  ;;  %v8633_v43 = vadd.f32 %v5252_v48, %v8353_v33  ;;  %5780 = vmatpush3.msra.mxu1 %v6148_v2  ;;  %v6153_v5 = vld [vmem:[#allocation13 + $0xb8] sm:$0xff] }
 0x5bf   : > { %5765 = vmatmul.mubr.f32.gmra.mxu1 %v3756_v0  ;;  %5781 = vmatprep.subr.mxu1 %v8275_v62  ;;  %v5254_v51 = vpop.f32.mrf.mxu0  ;;  %v3749_v8 = vmul.f32 0.5, %v3741_v59  ;;  %6119 = vtanh.f32 %v4019_v27 }
 0x5c0   : > { %v6114_v35 = vpop.eup %6113  ;;  %v4020_v44 = vmul.f32 0.7978846, %v4012_v11  ;;  %v4005_v40 = vmul.f32 0.044715, %v3997_v26  ;;  %v3990_v23 = vmul.f32 %v8633_v43, %v8633_v43  ;;  %v5255_v30 = vadd.f32 %v5254_v51, %v5253_v32  ;;  %5782 = vmatpush3.msra.mxu1 %v6149_v16  ;;  %v6154_v11 = vld [vmem:[#allocation13 + $0xb0] sm:$0xff] }
 0x5c1   : > { %5783 = vmatprep.subr.mxu1 %v8285_v29  ;;  %v5256_v24 = vpop.f32.mrf.mxu0  ;;  %v3757_v3 = vmul.f32 %v3749_v8, %v8550_v54  ;;  %v3742_v7 = vadd.f32 1.0, %v6114_v35 }
 0x5c2   : > { %6121 = vtanh.f32 %v4020_v44  ;;  %v4013_v62 = vadd.f32 %v4005_v40, %v8622_v14  ;;  %v3998_v56 = vmul.f32 %v3990_v23, %v8633_v43  ;;  %v8643_v63 = vadd.f32 %v5255_v30, %v8353_v33  ;;  %5784 = vmatpush3.msra.mxu1 %v6150_v38  ;;  %v6155_v40 = vld [vmem:[#allocation13 + $0xa8] sm:$0xff] }
 0x5c3   : > { %5767 = vmatprep.mubr.f32.mxu1 %v3757_v3  ;;  %5785 = vmatprep.subr.mxu1 %v8291_v28  ;;  %v5257_v61 = vpop.f32.mrf.mxu0  ;;  %v3750_v6 = vmul.f32 0.5, %v3742_v7 }
 0x5c4   : > { %v6116_v29 = vpop.eup %6115  ;;  %v4006_v52 = vmul.f32 0.044715, %v3998_v56  ;;  %v3991_v54 = vmul.f32 %v8643_v63, %v8643_v63  ;;  %v5258_v1 = vadd.f32 %v5257_v61, %v5256_v24  ;;  %5786 = vmatpush3.msra.mxu1 %v6151_v39  ;;  %v4021_v17 = vmul.f32 0.7978846, %v4013_v62  ;;  %v6156_v62 = vld [vmem:[#allocation13 + $0xa0] sm:$0xff] }
 0x5c5   : > { %5787 = vmatprep.subr.mxu1 %v6152_v34  ;;  %v5259_v58 = vpop.f32.mrf.mxu0  ;;  %v3758_v37 = vmul.f32 %v3750_v6, %v8562_v57  ;;  %v3743_v9 = vadd.f32 1.0, %v6116_v29  ;;  %v6157_v6 = vld [vmem:[%s8909_s7 + $0x1] ss:$0 sm:$0xff] }
 0x5c6   : > { %v4014_v18 = vadd.f32 %v4006_v52, %v8633_v43  ;;  %v3999_v28 = vmul.f32 %v3991_v54, %v8643_v63  ;;  %v8652_v4 = vadd.f32 %v5258_v1, %v8353_v33  ;;  %5788 = vmatpush3.msra.mxu1 %v6152_v34  ;;  %6123 = vtanh.f32 %v4021_v17  ;;  %v6158_v54 = vld [vmem:[#allocation13 + $0x98] sm:$0xff] }
 0x5c7   : > { %5768 = vmatmul.mubr.f32.gmra.mxu1 %v3758_v37  ;;  %5789 = vmatprep.subr.mxu1 %v6153_v5  ;;  %v5260_v48 = vpop.f32.mrf.mxu0  ;;  %v3751_v12 = vmul.f32 0.5, %v3743_v9 }
 0x5c8   : > { %v6118_v0 = vpop.eup %6117  ;;  %v4007_v32 = vmul.f32 0.044715, %v3999_v28  ;;  %v3992_v57 = vmul.f32 %v8652_v4, %v8652_v4  ;;  %v5261_v59 = vadd.f32 %v5260_v48, %v5259_v58  ;;  %5790 = vmatpush3.msra.mxu1 %v6153_v5  ;;  %v4022_v27 = vmul.f32 0.7978846, %v4014_v18  ;;  %v6159_v58 = vld [vmem:[#allocation13 + $0x90] sm:$0xff]  ;;  %v6160_v48 = vld [vmem:[#allocation13 + $0x88] sm:$0xff] }
 0x5c9   : > { %5791 = vmatprep.subr.mxu1 %v6154_v11  ;;  %v5262_v26 = vpop.f32.mrf.mxu0  ;;  %v3759_v2 = vmul.f32 %v3751_v12, %v8574_v46  ;;  %v3744_v51 = vadd.f32 1.0, %v6118_v0 }
 0x5ca   : > { %v4015_v8 = vadd.f32 %v4007_v32, %v8643_v63  ;;  %v4000_v35 = vmul.f32 %v3992_v57, %v8652_v4  ;;  %v8660_v44 = vadd.f32 %v5261_v59, %v8353_v33  ;;  %5792 = vmatpush3.msra.mxu1 %v6154_v11  ;;  %6125 = vtanh.f32 %v4022_v27  ;;  %v6161_v59 = vld [vmem:[#allocation13 + $0x80] sm:$0xff] }
 0x5cb   : > { %5770 = vmatprep.mubr.f32.mxu1 %v3759_v2  ;;  %5793 = vmatprep.subr.mxu1 %v6155_v40  ;;  %v5263_v23 = vpop.f32.mrf.mxu0  ;;  %v3752_v30 = vmul.f32 0.5, %v3744_v51 }
 0x5cc   : > { %v6120_v16 = vpop.eup %6119  ;;  %v4008_v24 = vmul.f32 0.044715, %v4000_v35  ;;  %v3993_v46 = vmul.f32 %v8660_v44, %v8660_v44  ;;  %v5264_v3 = vadd.f32 %v5263_v23, %v5262_v26  ;;  %5794 = vmatpush3.msra.mxu1 %v6155_v40  ;;  %v4023_v7 = vmul.f32 0.7978846, %v4015_v8 }
 0x5cd   : > { %5795 = vmatprep.subr.mxu1 %v6156_v62  ;;  %v3760_v33 = vmul.f32 %v3752_v30, %v8586_v13  ;;  %v4035_v56 = vadd.f32 1.0, %v6120_v16 }
 0x5ce   : > { %v4016_v38 = vadd.f32 %v4008_v24, %v8652_v4  ;;  %v4001_v61 = vmul.f32 %v3993_v46, %v8660_v44  ;;  %v8670_v29 = vadd.f32 %v6157_v6, %v5264_v3  ;;  %5796 = vmatpush3.msra.mxu1 %v6156_v62  ;;  %6127 = vtanh.f32 %v4023_v7 }
 0x5cf   : > { %v6122_v52 = vpop.eup %6121  ;;  %5771 = vmatmul.mubr.f32.gmra.mxu1 %v3760_v33  ;;  %5797 = vmatprep.subr.mxu1 %v6158_v54  ;;  %v4043_v1 = vmul.f32 0.5, %v4035_v56 }
 0x5d0   : > { %v4036_v39 = vadd.f32 1.0, %v6122_v52  ;;  %v4009_v13 = vmul.f32 0.044715, %v4001_v61  ;;  %v3994_v17 = vmul.f32 %v8670_v29, %v8670_v29  ;;  %5798 = vmatpush3.msra.mxu1 %v6158_v54  ;;  %v4024_v34 = vmul.f32 0.7978846, %v4016_v38 }
 0x5d1   : > { %5799 = vmatprep.subr.mxu1 %v6159_v58  ;;  %v4051_v37 = vmul.f32 %v4043_v1, %v8598_v31 }
 0x5d2   : > { %v4044_v9 = vmul.f32 0.5, %v4036_v39  ;;  %v4017_v18 = vadd.f32 %v4009_v13, %v8660_v44  ;;  %v4002_v28 = vmul.f32 %v3994_v17, %v8670_v29  ;;  %5800 = vmatpush3.msra.mxu1 %v6159_v58  ;;  %6129 = vtanh.f32 %v4024_v34 }
 0x5d3   : > { %v6124_v5 = vpop.eup %6123  ;;  %5801 = vmatprep.subr.mxu1 %v6160_v48  ;;  %5805 = vmatprep.mubr.f32.mxu1 %v4051_v37 }
 0x5d4   : > { %v4052_v12 = vmul.f32 %v4044_v9, %v8610_v53  ;;  %v4010_v0 = vmul.f32 0.044715, %v4002_v28  ;;  %5802 = vmatpush3.msra.mxu1 %v6160_v48  ;;  %v4037_v32 = vadd.f32 1.0, %v6124_v5  ;;  %v4025_v57 = vmul.f32 0.7978846, %v4017_v18 }
 0x5d5   : > { %5803 = vmatprep.subr.mxu1 %v6161_v59 }
 0x5d6   : > { %v4018_v31 = vadd.f32 %v4010_v0, %v8670_v29  ;;  %5804 = vmatpush3.msra.mxu1 %v6161_v59  ;;  %v4045_v27 = vmul.f32 0.5, %v4037_v32  ;;  %6131 = vtanh.f32 %v4025_v57 }
 0x5d7   : > { %v6126_v11 = vpop.eup %6125  ;;  %5806 = vmatmul.mubr.f32.vlgmr.msra.gmra.mxu1 %v4052_v12 }
 0x5d8   : > { %v4053_v26 = vmul.f32 %v4045_v27, %v8622_v14  ;;  %v4038_v2 = vadd.f32 1.0, %v6126_v11  ;;  %v4026_v51 = vmul.f32 0.7978846, %v4018_v31 }
 0x5da   : > { %5808 = vmatprep.mubr.f32.mxu1 %v4053_v26  ;;  %v4046_v8 = vmul.f32 0.5, %v4038_v2  ;;  %6133 = vtanh.f32 %v4026_v51 }
 0x5db   : > { %v6128_v53 = vpop.eup %6127 }
 0x5dc   : > { %v4054_v35 = vmul.f32 %v4046_v8, %v8633_v43  ;;  %v4039_v40 = vadd.f32 1.0, %v6128_v53 }
 0x5de   : > { %5809 = vmatmul.mubr.f32.gmra.mxu1 %v4054_v35  ;;  %v4047_v23 = vmul.f32 0.5, %v4039_v40 }
 0x5df   : > { %v6130_v30 = vpop.eup %6129 }
 0x5e0   : > { %v4055_v16 = vmul.f32 %v4047_v23, %v8643_v63  ;;  %v4040_v24 = vadd.f32 1.0, %v6130_v30 }
 0x5e2   : > { %5811 = vmatprep.mubr.f32.mxu1 %v4055_v16  ;;  %v4048_v46 = vmul.f32 0.5, %v4040_v24 }
 0x5e3   : > { %v6132_v3 = vpop.eup %6131 }
 0x5e4   : > { %v4056_v14 = vmul.f32 %v4048_v46, %v8652_v4  ;;  %v4041_v7 = vadd.f32 1.0, %v6132_v3  ;;  %v8690_v4 = vld [vmem:[%s8911_s9 + $0x1] ss:$0 sm:$0xff] }
 0x5e6   : > { %5812 = vmatmul.mubr.f32.gmra.mxu1 %v4056_v14  ;;  %v4049_v62 = vmul.f32 0.5, %v4041_v7 }
 0x5e7   : > { %v6134_v33 = vpop.eup %6133 }
 0x5e8   : > { %v4057_v56 = vmul.f32 %v4049_v62, %v8660_v44  ;;  %v4042_v38 = vadd.f32 1.0, %v6134_v33 }
 0x5ea   : > { %5814 = vmatprep.mubr.f32.mxu1 %v4057_v56  ;;  %v4050_v43 = vmul.f32 0.5, %v4042_v38 }
 0x5ec   : > { %v4058_v61 = vmul.f32 %v4050_v43, %v8670_v29 }
 0x5ee   : > { %5815 = vmatmul.mubr.f32.gmra.mxu1 %v4058_v61 }
 0x636   : > { %v5675_v6 = vpop.f32.mrf.mxu1 }
 0x637   : > { %v3182_v54 = vadd.f32 %v5675_v6, %v8004_v41 }
 0x638   : > { %v3142_v63 = vpop.f32.mrf.mxu1 }
 0x639   : > { %v3181_v52 = vadd.f32 %v3142_v63, %v7995_v10  ;;  %v3196_v29 = vadd.f32 %v8690_v4, %v3182_v54 }
 0x63b   : > { %v3195_v44 = vadd.f32 %v8690_v4, %v3181_v52  ;;  %v3204_v37 = vsub.f32 %v3196_v29, %v8004_v41 }
 0x63d   : > { %v3203_v34 = vsub.f32 %v3195_v44, %v7995_v10  ;;  %v3535_v12 = vmul.f32 %v3204_v37, %v3204_v37 }
 0x63e   : > { %v5678_v1 = vpop.f32.mrf.mxu1 }
 0x63f   : > { %v3184_v58 = vadd.f32 %v5678_v1, %v8034_v45  ;;  %v3534_v28 = vmul.f32 %v3203_v34, %v3203_v34 }
 0x640   : > { %v3152_v39 = vpop.f32.mrf.mxu1 }
 0x641   : > { %v3183_v13 = vadd.f32 %v3152_v39, %v8028_v47  ;;  %v3198_v5 = vadd.f32 %v8690_v4, %v3184_v58  ;;  %v3542_v59 = vadd.f32 %v3535_v12, %v3534_v28 }
 0x643   : > { %v3197_v17 = vadd.f32 %v8690_v4, %v3183_v13  ;;  %v3206_v31 = vsub.f32 %v3198_v5, %v8034_v45 }
 0x645   : > { %v3205_v9 = vsub.f32 %v3197_v17, %v8028_v47  ;;  %v3537_v8 = vmul.f32 %v3206_v31, %v3206_v31 }
 0x647   : > { %v5681_v18 = vpop.f32.mrf.mxu1  ;;  %v3536_v0 = vmul.f32 %v3205_v9, %v3205_v9 }
 0x648   : > { %v3186_v32 = vadd.f32 %v5681_v18, %v8066_v55 }
 0x649   : > { %v3162_v48 = vpop.f32.mrf.mxu1  ;;  %v3543_v11 = vadd.f32 %v3542_v59, %v3536_v0 }
 0x64a   : > { %v3185_v57 = vadd.f32 %v3162_v48, %v8069_v50  ;;  %v3200_v26 = vadd.f32 %v8690_v4, %v3186_v32 }
 0x64b   : > { %v3544_v24 = vadd.f32 %v3543_v11, %v3537_v8 }
 0x64c   : > { %v3199_v27 = vadd.f32 %v8690_v4, %v3185_v57  ;;  %v3208_v23 = vsub.f32 %v3200_v26, %v8066_v55 }
 0x64e   : > { %v3207_v2 = vsub.f32 %v3199_v27, %v8069_v50  ;;  %v3539_v14 = vmul.f32 %v3208_v23, %v3208_v23 }
 0x64f   : > { %v5684_v51 = vpop.f32.mrf.mxu1 }
 0x650   : > { %v3538_v53 = vmul.f32 %v3207_v2, %v3207_v2  ;;  %v3188_v35 = vadd.f32 %v5684_v51, %v8103_v15 }
 0x651   : > { %v3172_v40 = vpop.f32.mrf.mxu1 }
 0x652   : > { %v3202_v30 = vadd.f32 %v8690_v4, %v3188_v35  ;;  %v3187_v16 = vadd.f32 %v3172_v40, %v8106_v19  ;;  %v3545_v3 = vadd.f32 %v3544_v24, %v3538_v53 }
 0x654   : > { %v3201_v46 = vadd.f32 %v8690_v4, %v3187_v16  ;;  %v3210_v62 = vsub.f32 %v3202_v30, %v8103_v15  ;;  %v3546_v38 = vadd.f32 %v3545_v3, %v3539_v14 }
 0x656   : > { %v3209_v7 = vsub.f32 %v3201_v46, %v8106_v19  ;;  %v3541_v61 = vmul.f32 %v3210_v62, %v3210_v62 }
 0x657   : > { %v5719_v33 = vpop.f32.mrf.mxu1 }
 0x658   : > { %v3540_v56 = vmul.f32 %v3209_v7, %v3209_v7  ;;  %v3511_v54 = vadd.f32 %v5719_v33, %v8134_v36 }
 0x659   : > { %v3471_v43 = vpop.f32.mrf.mxu1 }
 0x65a   : > { %v3547_v6 = vadd.f32 %v3546_v38, %v3540_v56  ;;  %v3510_v63 = vadd.f32 %v3471_v43, %v8129_v60  ;;  %v3519_v13 = vadd.f32 %v8690_v4, %v3511_v54 }
 0x65c   : > { %v3548_v52 = vadd.f32 %v3547_v6, %v3541_v61  ;;  %v3518_v44 = vadd.f32 %v8690_v4, %v3510_v63  ;;  %v3527_v37 = vsub.f32 %v3519_v13, %v8134_v36 }
 0x65e   : > { %3549 = vadd.xlane.f32.xlu1 %v3548_v52  ;;  %v3526_v17 = vsub.f32 %v3518_v44, %v8129_v60  ;;  %v3560_v12 = vmul.f32 %v3527_v37, %v3527_v37 }
 0x65f   : > { %v5722_v1 = vpop.f32.mrf.mxu1 }
 0x660   : > { %v3513_v34 = vadd.f32 %v5722_v1, %v8156_v21  ;;  %v3559_v28 = vmul.f32 %v3526_v17, %v3526_v17 }
 0x661   : > { %v3481_v39 = vpop.f32.mrf.mxu1 }
 0x662   : > { %v3512_v29 = vadd.f32 %v3481_v39, %v8151_v25  ;;  %v3521_v5 = vadd.f32 %v8690_v4, %v3513_v34  ;;  %v3567_v59 = vadd.f32 %v3560_v12, %v3559_v28 }
 0x664   : > { %v3520_v58 = vadd.f32 %v8690_v4, %v3512_v29  ;;  %v3529_v31 = vsub.f32 %v3521_v5, %v8156_v21 }
 0x666   : > { %v3528_v9 = vsub.f32 %v3520_v58, %v8151_v25  ;;  %v3562_v8 = vmul.f32 %v3529_v31, %v3529_v31 }
 0x667   : > { %v5725_v18 = vpop.f32.mrf.mxu1 }
 0x668   : > { %v3561_v0 = vmul.f32 %v3528_v9, %v3528_v9  ;;  %v3515_v32 = vadd.f32 %v5725_v18, %v8178_v20 }
 0x669   : > { %v3491_v48 = vpop.f32.mrf.mxu1 }
 0x66a   : > { %v3514_v57 = vadd.f32 %v3491_v48, %v8174_v22  ;;  %v3568_v11 = vadd.f32 %v3567_v59, %v3561_v0  ;;  %v3523_v26 = vadd.f32 %v8690_v4, %v3515_v32 }
 0x66c   : > { %v3522_v27 = vadd.f32 %v8690_v4, %v3514_v57  ;;  %v3531_v23 = vsub.f32 %v3523_v26, %v8178_v20  ;;  %v3569_v30 = vadd.f32 %v3568_v11, %v3562_v8 }
 0x66e   : > { %v3530_v2 = vsub.f32 %v3522_v27, %v8174_v22  ;;  %v3564_v14 = vmul.f32 %v3531_v23, %v3531_v23 }
 0x66f   : > { %v5728_v51 = vpop.f32.mrf.mxu1 }
 0x670   : > { %v3563_v53 = vmul.f32 %v3530_v2, %v3530_v2  ;;  %v3517_v35 = vadd.f32 %v5728_v51, %v8200_v42 }
 0x671   : > { %v3501_v40 = vpop.f32.mrf.mxu1 }
 0x672   : > { %v3525_v16 = vadd.f32 %v8690_v4, %v3517_v35  ;;  %v3516_v24 = vadd.f32 %v3501_v40, %v8196_v49  ;;  %v3570_v46 = vadd.f32 %v3569_v30, %v3563_v53 }
 0x674   : > { %v3524_v3 = vadd.f32 %v8690_v4, %v3516_v24  ;;  %v3533_v62 = vsub.f32 %v3525_v16, %v8200_v42  ;;  %v3571_v43 = vadd.f32 %v3570_v46, %v3564_v14 }
 0x676   : > { %v3532_v7 = vsub.f32 %v3524_v3, %v8196_v49  ;;  %v3566_v52 = vmul.f32 %v3533_v62, %v3533_v62 }
 0x677   : > { %v5763_v33 = vpop.f32.mrf.mxu1 }
 0x678   : > { %v3565_v56 = vmul.f32 %v3532_v7, %v3532_v7  ;;  %v3867_v38 = vadd.f32 %v5763_v33, %v8004_v41 }
 0x679   : > { %v3827_v61 = vpop.f32.mrf.mxu1 }
 0x67a   : > { %v3875_v6 = vadd.f32 %v8690_v4, %v3867_v38  ;;  %v3866_v63 = vadd.f32 %v3827_v61, %v7995_v10  ;;  %v3572_v54 = vadd.f32 %v3571_v43, %v3565_v56 }
 0x67c   : > { %4181 = vst [vmem:[%s8742_s14 + $0x8] sm:$0xff] %v3875_v6  ;;  %v3874_v1 = vadd.f32 %v8690_v4, %v3866_v63  ;;  %v3573_v44 = vadd.f32 %v3572_v54, %v3566_v52 }
 0x67e   : > { %4180 = vst [vmem:[%s8742_s14] sm:$0xff] %v3874_v1  ;;  %3574 = vadd.xlane.f32.xlu1 %v3573_v44 }
 0x67f   : > { %v5766_v41 = vpop.f32.mrf.mxu1 }
 0x680   : > { %v3869_v39 = vadd.f32 %v5766_v41, %v8034_v45 }
 0x681   : > { %v3837_v10 = vpop.f32.mrf.mxu1 }
 0x682   : > { %v3877_v13 = vadd.f32 %v8690_v4, %v3869_v39  ;;  %v3868_v29 = vadd.f32 %v3837_v10, %v8028_v47 }
 0x684   : > { %4183 = vst [vmem:[%s8742_s14 + $0x18] sm:$0xff] %v3877_v13  ;;  %v3876_v17 = vadd.f32 %v8690_v4, %v3868_v29 }
 0x686   : > { %4182 = vst [vmem:[%s8742_s14 + $0x10] sm:$0xff] %v3876_v17 }
 0x687   : > { %v5769_v34 = vpop.f32.mrf.mxu1 }
 0x688   : > { %v3871_v58 = vadd.f32 %v5769_v34, %v8066_v55 }
 0x689   : > { %v3847_v37 = vpop.f32.mrf.mxu1 }
 0x68a   : > { %v3879_v9 = vadd.f32 %v8690_v4, %v3871_v58  ;;  %v3870_v18 = vadd.f32 %v3847_v37, %v8069_v50 }
 0x68c   : > { %4185 = vst [vmem:[%s8742_s14 + $0x28] sm:$0xff] %v3879_v9  ;;  %v3878_v45 = vadd.f32 %v8690_v4, %v3870_v18 }
 0x68e   : > { %4184 = vst [vmem:[%s8742_s14 + $0x20] sm:$0xff] %v3878_v45 }
 0x68f   : > { %v5772_v47 = vpop.f32.mrf.mxu1 }
 0x690   : > { %v3873_v28 = vadd.f32 %v5772_v47, %v8103_v15 }
 0x691   : > { %v3857_v5 = vpop.f32.mrf.mxu1 }
 0x692   : > { %v3881_v48 = vadd.f32 %v8690_v4, %v3873_v28  ;;  %v3872_v12 = vadd.f32 %v3857_v5, %v8106_v19 }
 0x694   : > { %4187 = vst [vmem:[%s8742_s14 + $0x38] sm:$0xff] %v3881_v48  ;;  %v3880_v55 = vadd.f32 %v8690_v4, %v3872_v12 }
 0x696   : > { %4186 = vst [vmem:[%s8742_s14 + $0x30] sm:$0xff] %v3880_v55 }
 0x697   : > { %v5807_v0 = vpop.f32.mrf.mxu1 }
 0x698   : > { %v4165_v50 = vadd.f32 %v5807_v0, %v8134_v36 }
 0x699   : > { %v4125_v32 = vpop.f32.mrf.mxu1 }
 0x69a   : > { %v4173_v57 = vadd.f32 %v8690_v4, %v4165_v50  ;;  %v4164_v59 = vadd.f32 %v4125_v32, %v8129_v60 }
 0x69c   : > { %4189 = vst [vmem:[%s8769_s6 + $0x8] sm:$0xff] %v4173_v57  ;;  %v4172_v15 = vadd.f32 %v8690_v4, %v4164_v59 }
 0x69e   : > { %4188 = vst [vmem:[%s8769_s6] sm:$0xff] %v4172_v15  ;;  %v5810_v19 = vpop.f32.mrf.mxu1 }
 0x69f   : > { %v4167_v36 = vadd.f32 %v5810_v19, %v8156_v21 }
 0x6a0   : > { %v4135_v31 = vpop.f32.mrf.mxu1 }
 0x6a1   : > { %v4175_v27 = vadd.f32 %v8690_v4, %v4167_v36  ;;  %v4166_v60 = vadd.f32 %v4135_v31, %v8151_v25 }
 0x6a3   : > { %4191 = vst [vmem:[%s8769_s6 + $0x18] sm:$0xff] %v4175_v27  ;;  %v4174_v11 = vadd.f32 %v8690_v4, %v4166_v60 }
 0x6a5   : > { %4190 = vst [vmem:[%s8769_s6 + $0x10] sm:$0xff] %v4174_v11 }
 0x6a6   : > { %v5813_v26 = vpop.f32.mrf.mxu1 }
 0x6a7   : > { %v4169_v2 = vadd.f32 %v5813_v26, %v8178_v20 }
 0x6a8   : > { %v4145_v51 = vpop.f32.mrf.mxu1 }
 0x6a9   : > { %v4177_v21 = vadd.f32 %v8690_v4, %v4169_v2  ;;  %v4168_v8 = vadd.f32 %v4145_v51, %v8174_v22 }
 0x6ab   : > { %4193 = vst [vmem:[%s8769_s6 + $0x28] sm:$0xff] %v4177_v21  ;;  %v4176_v25 = vadd.f32 %v8690_v4, %v4168_v8 }
 0x6ad   : > { %4192 = vst [vmem:[%s8769_s6 + $0x20] sm:$0xff] %v4176_v25 }
 0x6ae   : > { %v5816_v53 = vpop.f32.mrf.mxu1 }
 0x6af   : > { %v4171_v35 = vadd.f32 %v5816_v53, %v8200_v42 }
 0x6b0   : > { %v4155_v40 = vpop.f32.mrf.mxu1 }
 0x6b1   : > { %v4179_v20 = vadd.f32 %v8690_v4, %v4171_v35  ;;  %v4170_v23 = vadd.f32 %v4155_v40, %v8196_v49 }
 0x6b3   : > { %4195 = vst [vmem:[%s8769_s6 + $0x38] sm:$0xff] %v4179_v20  ;;  %v4178_v30 = vadd.f32 %v8690_v4, %v4170_v23 }
 0x6b5   : > { %4194 = vst [vmem:[%s8769_s6 + $0x30] sm:$0xff] %v4178_v30 }
 0x6b6   : > { %6305 = shalt.err (!%p6302_p7)
}
 0x6b7   : > { %s6306_s21 = scalar_lea.hbm %s8804_s27, 1024  ;;  %s6310_s0 = scalar_lea.hbm %s8913_s11, 2048 }
 0x6b8   : > { %p6307_p9 = scmp.ne.s32.totalorder %s8804_s27, %s6306_s21  ;;  %p6311_p13 = scmp.lt.s32.totalorder %s8804_s27, %s8913_s11 }
 0x6b9   : > { %p6312_p4 = scmp.lt.s32.totalorder %s6310_s0, %s6306_s21 }
 0x6ba   : > { %p6308_p8 = pnand %p6307_p9, %p9070_p1 }
 0x6bb   : > { %p6313_p12 = por %p6312_p4, %p6311_p13 }
 0x6bc   : > { %p6309_p5 = pneg %p6308_p8 }
 0x6be   : > { %p6314_p10 = pnand %p6313_p12, %p6309_p5 }
 0x6c0   : > { %6317 = shalt.err (!%p6314_p10)
}
 0x6c1   : > { %s6450_s12 = smov 128   ;;  %s6451_s16 = smov 8  }
 0x6c2   : > { %5860 = dma.vmem_to_hbm [thread:$0]  (%p9070_p1), %s8795_s8, 1024, %s8804_s27, %s4204_s4, %s6450_s12, %s6450_s12, %s6451_s16  }
 0x6c3   : > { %s8837_s17 = scalar_lea.hbm %s8912_s10, %s4551_s19  ;;  %s4199_s20 = scalar_lea.sflag [#allocation4], %s6751_s26 }
 0x6c4   : > { %s6318_s21 = scalar_lea.vmem %s8797_s29, 1024  ;;  %s6452_s30 = smov [#allocation14]  }
 0x6c5   : > { %p6319_p6 = scmp.ne.s32.totalorder %s8797_s29, %s6318_s21  ;;  %s6322_s23 = sshll.u32 %s6452_s30, 4  ;;  %s6323_s23 = int_to_ptr.vmem [resolvable:$false] %s6322_s23 }
 0x6c6   : > { %s6324_s0 = scalar_lea.vmem %s6323_s23, 2048  ;;  %p6325_p2 = scmp.lt.s32.totalorder %s8797_s29, %s6323_s23 }
 0x6c7   : > { %p6320_p11 = pnand %p6319_p6, %p9070_p1  ;;  %p6326_p0 = scmp.lt.s32.totalorder %s6324_s0, %s6318_s21 }
 0x6c9   : > { %p6321_p3 = pneg %p6320_p11  ;;  %p6327_p7 = por %p6326_p0, %p6325_p2 }
 0x6cb   : > { %p6328_p9 = pnand %p6327_p7, %p6321_p3 }
 0x6cd   : > { %6331 = shalt.err (!%p6328_p9)
}
 0x6ce   : > { %s6332_s8 = scalar_lea.hbm %s8837_s17, 1024  ;;  %s6336_s14 = scalar_lea.hbm %s8912_s10, 2048 }
 0x6cf   : > { %p6333_p8 = scmp.ne.s32.totalorder %s8837_s17, %s6332_s8  ;;  %p6337_p4 = scmp.lt.s32.totalorder %s8837_s17, %s8912_s10 }
 0x6d0   : > { %p6338_p12 = scmp.lt.s32.totalorder %s6336_s14, %s6332_s8 }
 0x6d1   : > { %p6334_p5 = pnand %p6333_p8, %p9070_p1 }
 0x6d2   : > { %p6339_p10 = por %p6338_p12, %p6337_p4 }
 0x6d3   : > { %p6335_p13 = pneg %p6334_p5 }
 0x6d5   : > { %p6340_p6 = pnand %p6339_p10, %p6335_p13 }
 0x6d7   : > { %6343 = shalt.err (!%p6340_p6)
}
 0x6d8   : > { %5859 = dma.vmem_to_hbm [thread:$0]  (%p9070_p1), %s8797_s29, 1024, %s8837_s17, %s4199_s20, %s6450_s12, %s6450_s12, %s6451_s16  }
 0x6d9   : > { %s4511_s18 = sshll.u32 %s6751_s26, 3  ;;  %s5818_s29 = spop %5817 }
 0x6da   : > { %s5820_s12 = spop %5819  ;;  %s659_s20 = scalar_lea.vmem [#allocation17], %s4511_s18 }
 0x6db   : > { %s1830_s17 = sadd.f32 %s5820_s12, %s5818_s29  ;;  %s4254_s21 = sshll.u32 %s659_s20, 4  ;;  %s4255_s21 = int_to_ptr.vmem [resolvable:$true] %s4254_s21 }
 0x6dc   : > { %s4544_s23 = sshll.u32 %s6540_s25, 7  ;;  %s9071_s14 = sld [smem:[#allocation61_spill]] }
 0x6dd   : > { %s6344_s28 = scalar_lea.vmem %s4255_s21, 128  ;;  %s6453_s26 = smov [#allocation17]  }
 0x6de   : > { %p6345_p11 = scmp.ne.s32.totalorder %s4255_s21, %s6344_s28  ;;  %s6348_s29 = sshll.u32 %s6453_s26, 4  ;;  %s6349_s29 = int_to_ptr.vmem [resolvable:$false] %s6348_s29 }
 0x6df   : > { %s6350_s18 = scalar_lea.vmem %s6349_s29, 256  ;;  %p6351_p0 = scmp.lt.s32.totalorder %s4255_s21, %s6349_s29 }
 0x6e0   : > { %p6346_p3 = pnand %p6345_p11, %p9070_p1  ;;  %p6352_p7 = scmp.lt.s32.totalorder %s6350_s18, %s6344_s28 }
 0x6e2   : > { %s4252_s6 = scalar_lea.hbm %s9071_s14, %s4544_s23  ;;  %p6347_p2 = pneg %p6346_p3 }
 0x6e3   : > { %p6353_p9 = por %p6352_p7, %p6351_p0 }
 0x6e5   : > { %p6354_p8 = pnand %p6353_p9, %p6347_p2 }
 0x6e7   : > { %v3550_v22 = vpop.xlane.xlu1 %3549 }
 0x6e8   : > { %v3551_v49 = vrot.slane %v3550_v22, 4 }
 0x6ea   : > { %v3552_v42 = vadd.f32 %v3551_v49, %v3550_v22 }
 0x6ec   : > { %v3553_v4 = vrot.slane %v3552_v42, 2 }
 0x6ee   : > { %v3554_v16 = vadd.f32 %v3553_v4, %v3552_v42 }
 0x6f0   : > { %v3555_v24 = vrot.slane %v3554_v16, 1 }
 0x6f2   : > { %v3556_v46 = vadd.f32 %v3555_v24, %v3554_v16 }
 0x6f4   : > { %5821 = vpush %v3556_v46 }
 0x707   : > { %v3575_v3 = vpop.xlane.xlu1 %3574 }
 0x708   : > { %v3576_v14 = vrot.slane %v3575_v3, 4 }
 0x70a   : > { %v3577_v7 = vadd.f32 %v3576_v14, %v3575_v3 }
 0x70c   : > { %v3578_v62 = vrot.slane %v3577_v7, 2 }
 0x70e   : > { %v3579_v33 = vadd.f32 %v3578_v62, %v3577_v7 }
 0x710   : > { %v3580_v56 = vrot.slane %v3579_v33, 1 }
 0x712   : > { %v3581_v38 = vadd.f32 %v3580_v56, %v3579_v33 }
 0x714   : > { %5823 = vpush %v3581_v38 }
 0x725   : > { %s5822_s16 = spop %5821 }
 0x726   : > { %s3558_s30 = sadd.f32 %s5822_s16, %s1830_s17 }
 0x745   : > { %s5824_s0 = spop %5823 }
 0x746   : > { %s3583_s8 = sadd.f32 %s5824_s0, %s3558_s30 }
 0x748   : > { %v4196_v43 = vstv %s3583_s8 }
 0x749   : > { %4197 = vst [vmem:[%s659_s20] sm:$0xff] %v4196_v43 }
 0x74a   : > { %6357 = shalt.err (!%p6354_p8)
}
 0x74b   : > { %s6358_s25 = scalar_lea.hbm %s4252_s6, 128  ;;  %s6362_s17 = scalar_lea.hbm %s9071_s14, 256 }
 0x74c   : > { %p6359_p5 = scmp.ne.s32.totalorder %s4252_s6, %s6358_s25  ;;  %p6363_p12 = scmp.lt.s32.totalorder %s4252_s6, %s9071_s14 }
 0x74d   : > { %p6364_p10 = scmp.lt.s32.totalorder %s6362_s17, %s6358_s25 }
 0x74e   : > { %p6360_p13 = pnand %p6359_p5, %p9070_p1 }
 0x74f   : > { %p6365_p6 = por %p6364_p10, %p6363_p12 }
 0x750   : > { %p6361_p4 = pneg %p6360_p13 }
 0x752   : > { %p6366_p11 = pnand %p6365_p6, %p6361_p4 }
 0x754   : > { %6369 = shalt.err (!%p6366_p11)
}
 0x755   : > { %5861 = dma.vmem_to_hbm [thread:$0]  (%p9070_p1), %s4255_s21, 128, %s4252_s6, %s4204_s4  }
 0x756 PF: > { %s9072_s23 = sld [smem:[#allocation31_spill]]  ;;  %p9075_p2 = scmp.ge.s32.totalorder %s6428_s24, 2 }
 0x757   : > { %s9073_s0 = sld [smem:[#allocation35_spill]] }
 0x75c   : > { %s4266_s8 = sand.u32 1, %s9072_s23  }
 0x75d   : > { %p9074_p3 = scmp.ne.s32.totalorder %s9073_s0, 0  ;;  %s4267_s19 = scalar_lea.sflag [#allocation4], %s4266_s8 }
 0x75f   : > { %p5876_p0 = pnand %p9075_p2, %p9074_p3 }
 0x761   : > { %p5877_p7 = pneg %p5876_p0 }
 0x763   : > { %6407 = dma.done.wait (%p5877_p7), %s4267_s19, 1024  }
 0x764   : > { %6409 = vsyncadd (%p5877_p7), %s4267_s19, 4294966272  ;;  %s9076_s27 = sadd.s32 4294967294, %s6428_s24  }
 0x765   : > { %s4275_s28 = sand.u32 1, %s9076_s27  }
 0x766   : > { %s4276_s26 = scalar_lea.sflag [#allocation16], %s4275_s28 }
 0x767   : > { %6411 = dma.done.wait (%p5877_p7), %s4276_s26, 1152  }
 0x768   : > { %6413 = vsyncadd (%p5877_p7), %s4276_s26, 4294966144  ;;  %s9077_s24 = sld [smem:[#allocation33_spill]]  ;;  %s9080_s21 = smov %s6420_s22 }
 0x769   : > { %s9078_s15 = sld [smem:[#allocation32_spill]] }
 0x76a   : > { %s9079_s23 = sld [smem:[#allocation34_spill]] }
 0x76e   : > { %p36_p1 = scmp.ge.s32.totalorder %s9077_s24, 4  }
 0x76f   : > { %s9081_s22 = smov %s9078_s15 }
 0x770   :  { %38 = sbr.rel (!%p36_p1) target bundleno = 18 (0x12), region = 204 }
 0x775   :  { %4290 = vsyncpa [#allocation3], 1 }
 0x776   :  { %4292 = vsyncpa [#allocation3 + $0x1], 1 }
 0x777   :  { %4293 = vsyncpa [#allocation6], 1 }
 0x778   :  { %4295 = vsyncpa [#allocation6 + $0x1], 1 }
 0x779   :  { %4296 = vsyncpa [#allocation9], 1 }
 0x77a   :  { %4298 = vsyncpa [#allocation9 + $0x1], 1 }
 0x77b   :  { %4299 = vsyncpa [#allocation12], 1 }
 0x77c   :  { %4300 = vsyncpa [#allocation4], 1 }
 0x77d   :  { %4302 = vsyncpa [#allocation4 + $0x1], 1 }
 0x77e   :  { %4303 = vsyncpa [#allocation16], 1 }
 0x77f   :  { %4305 = vsyncpa [#allocation16 + $0x1], 1 }

</bundles_post_ra>
